<compile_context>
chip_gen: v7x
topology: tpu7x:2x2x1
jax: 0.10.0
libtpu: 0.0.40
codegen_flags: <defaults>
</compile_context>

<pallas_src>
import math

import jax
import jax.numpy as jnp
import numpy as np
from jax import lax
from jax.experimental import pallas as pl
from jax.experimental.pallas import tpu as pltpu

BIG_NEG = -1e30  # finite mask value (avoids -inf - -inf NaNs in the max-subtract)


def _layernorm(x, g, b, eps=1e-5):
    mu = jnp.mean(x, axis=-1, keepdims=True)
    xc = x - mu
    var = jnp.mean(xc * xc, axis=-1, keepdims=True)
    return xc * lax.rsqrt(var + eps) * g + b


def _gelu_erf_kernel(x):
    # Abramowitz & Stegun 7.1.26 erf (|err| < 1.5e-7); the divide goes to the EUP via
    # pl.reciprocal(approx=True), exp is EUP too -> very little VALU work.
    a1, a2, a3, a4, a5 = 0.254829592, -0.284496736, 1.421413741, -1.453152027, 1.061405429
    p = 0.3275911
    z = x * (1.0 / math.sqrt(2.0))
    sign = jnp.where(z < 0.0, -1.0, 1.0)
    az = jnp.abs(z)
    t = pl.reciprocal(1.0 + p * az, approx=True)
    poly = ((((a5 * t + a4) * t + a3) * t + a2) * t + a1) * t
    erf = sign * (1.0 - poly * jnp.exp(-az * az))
    return 0.5 * x * (1.0 + erf)


def init_params(key, n_states, n_actions, hidden_size, max_episode_len, seq_len, n_layer):
    H, L2, NL = hidden_size, 2 * seq_len, n_layer
    ks = jax.random.split(key, 14)

    def nrm(k, shape):
        return 0.02 * jax.random.normal(k, shape, jnp.float32)

    return dict(
        emb_p=nrm(ks[0], (max_episode_len, H)),
        emb_s_w=nrm(ks[1], (n_states, H)), emb_s_b=nrm(ks[2], (1, H)),
        emb_a_w=nrm(ks[3], (n_actions, H)), emb_a_b=nrm(ks[4], (1, H)),
        eln_g=jnp.ones((1, H), jnp.float32), eln_b=jnp.zeros((1, H), jnp.float32),
        wpe=nrm(ks[5], (L2, H)),
        ln1_g=jnp.ones((NL, 1, H), jnp.float32), ln1_b=jnp.zeros((NL, 1, H), jnp.float32),
        attn_w=nrm(ks[6], (NL, H, 3 * H)), attn_b=nrm(ks[7], (NL, 1, 3 * H)),
        aproj_w=nrm(ks[8], (NL, H, H)), aproj_b=nrm(ks[9], (NL, 1, H)),
        ln2_g=jnp.ones((NL, 1, H), jnp.float32), ln2_b=jnp.zeros((NL, 1, H), jnp.float32),
        fc_w=nrm(ks[10], (NL, H, 4 * H)), fc_b=nrm(ks[11], (NL, 1, 4 * H)),
        mproj_w=nrm(ks[12], (NL, 4 * H, H)), mproj_b=nrm(ks[13], (NL, 1, H)),
        lnf_g=jnp.ones((1, H), jnp.float32), lnf_b=jnp.zeros((1, H), jnp.float32),
    )


def make_common_gpt2_forward(params, *, n_states, n_actions, seq_len, hidden_size,
                             max_episode_len, n_layer, n_head, batch_size=None):
    S, A, H, T = n_states, n_actions, hidden_size, seq_len
    E, NL, NH = max_episode_len, n_layer, n_head
    L2, HD = 2 * T, hidden_size // n_head
    scale = 1.0 / math.sqrt(HD)
    SAE = S + A + 2 + E                       # [state | action | s-bias sel | a-bias sel | one-hot t]
    SAE_PAD = SAE + ((-SAE) % 8)
    f32, bf16 = jnp.float32, jnp.bfloat16

    # Batch-block so every grid step sees M = BBLK*2T rows (MXU M fill), but cap by the
    # configured batch size so tiny batches are not padded (review item).
    BBLK = max(4, 128 // L2)
    if batch_size is not None and int(batch_size) < BBLK:
        BBLK = max(1, int(batch_size))
        while (BBLK * L2) % 8:                # keep sublane alignment
            BBLK += 1
    else:
        while (BBLK * L2) % 8 or (2 * BBLK) % 8:
            BBLK += 1
    M = BBLK * L2

    # ---------- pack all width-H parameter rows into one (R, H) array (8-row aligned) ----------
    segs, offs = [], {}

    def _add(name, a):
        offs[name] = sum(s.shape[0] for s in segs)
        pad = (-a.shape[0]) % 8
        if pad:
            a = jnp.concatenate([a, jnp.zeros((pad, a.shape[1]), a.dtype)], axis=0)
        segs.append(a.astype(f32))

    _add('emb', jnp.concatenate([params['emb_s_w'], params['emb_a_w'],
                                 params['emb_s_b'], params['emb_a_b'],
                                 params['emb_p']], axis=0))                    # (SAE, H)
    _add('wpe', jnp.tile(params['wpe'], (BBLK, 1)))                            # (M, H) pre-tiled
    _add('glob', jnp.concatenate([params['eln_g'], params['eln_b'],
                                  params['lnf_g'], params['lnf_b']], axis=0))  # (4, H)
    for l in range(NL):
        _add(f'ln{l}', jnp.concatenate([params['ln1_g'][l], params['ln1_b'][l],
                                        params['ln2_g'][l], params['ln2_b'][l]], axis=0))
    w_rows = jnp.concatenate(segs, axis=0)
    O_EMB, O_WPE, O_G = offs['emb'], offs['wpe'], offs['glob']
    O_LN = [offs[f'ln{l}'] for l in range(NL)]

    # ---------- per-layer weights (bf16 operands) and biases (f32, added post-matmul) ----------
    qscale = jnp.concatenate([jnp.full((1, 1, H), scale, f32),
                              jnp.ones((1, 1, 2 * H), f32)], axis=-1)   # fold 1/sqrt(HD) into Q
    attn_w = (params['attn_w'] * qscale).astype(bf16)    # (NL, H, 3H)
    attn_b = (params['attn_b'] * qscale).astype(f32)     # (NL, 1, 3H)
    aproj_w = params['aproj_w'].astype(bf16)             # (NL, H, H)
    aproj_b = params['aproj_b'].astype(f32)              # (NL, 1, H)
    fc_w = params['fc_w'].astype(bf16)                   # (NL, H, 4H)
    fc_b = params['fc_b'].astype(f32)                    # (NL, 1, 4H)
    mproj_w = params['mproj_w'].astype(bf16)             # (NL, 4H, H)
    mproj_b = params['mproj_b'].astype(f32)              # (NL, 1, H)

    # ---------- compile-time constant masks / selection matrices ----------
    r = np.arange(M)[:, None]
    c = np.arange(M)[None, :]
    struct = jnp.asarray((((r // L2) == (c // L2)) & (c <= r)).astype(np.float32))  # same-seq & causal
    rr = np.arange(2 * BBLK)[:, None]
    out_sel = jnp.asarray(
        (np.arange(M)[None, :] == (rr // 2) * L2 + (L2 - 2) + (rr % 2)).astype(np.float32))

    def kernel(tok_ref, km_ref, struct_ref, sel_ref, wrow_ref,
               attnw_ref, attnb_ref, aprojw_ref, aprojb_ref,
               fcw_ref, fcb_ref, mprojw_ref, mprojb_ref, out_ref):
        tok = tok_ref[0]                                  # (M, SAE_PAD) pre-interleaved tokens
        km = km_ref[0]                                    # (1, M) 1 = valid key
        # Additive attention mask hoisted out of the head/layer loops.
        mask_add = jnp.where((struct_ref[...] * km) > 0.5, 0.0, BIG_NEG)   # (M, M)

        # Embedding: state/action linear (+bias selectors) and timestep one-hot gather in ONE matmul.
        x = jnp.dot(tok, wrow_ref[O_EMB:O_EMB + SAE_PAD, :], preferred_element_type=f32)
        x = _layernorm(x, wrow_ref[O_G:O_G + 1, :], wrow_ref[O_G + 1:O_G + 2, :])   # embed_ln
        x = x + wrow_ref[O_WPE:O_WPE + M, :]              # GPT2 learned positions, pre-tiled

        for l in range(NL):
            b0 = O_LN[l]
            # --- attention block ---
            h = _layernorm(x, wrow_ref[b0:b0 + 1, :], wrow_ref[b0 + 1:b0 + 2, :])
            qkv = jnp.dot(h.astype(bf16), attnw_ref[l],
                          preferred_element_type=f32) + attnb_ref[l]       # (M, 3H)
            aw_l = aprojw_ref[l]                          # (H, H) bf16, row-sliced per head
            attn = aprojb_ref[l]                          # (1, H), broadcasts into the sum
            for hh in range(NH):
                lo, hi = hh * HD, (hh + 1) * HD
                q = qkv[:, lo:hi].astype(bf16)            # scale already folded into W_q / b_q
                k = qkv[:, H + lo:H + hi].astype(bf16)
                v = qkv[:, 2 * H + lo:2 * H + hi].astype(bf16)
                s = lax.dot_general(q, k, (((1,), (1,)), ((), ())),
                                    preferred_element_type=f32) + mask_add  # (M, M)
                s = s - jnp.max(s, axis=-1, keepdims=True)
                p = jnp.exp(s)
                p = p * pl.reciprocal(jnp.sum(p, axis=-1, keepdims=True), approx=True)
                hvec = jnp.dot(p.astype(bf16), v, preferred_element_type=f32)   # (M, HD)
                # Per-head output projection via static weight row-slice (no heads concat).
                attn = attn + jnp.dot(hvec.astype(bf16), aw_l[lo:hi, :],
                                      preferred_element_type=f32)
            x = x + attn
            # --- MLP block ---
            h2 = _layernorm(x, wrow_ref[b0 + 2:b0 + 3, :], wrow_ref[b0 + 3:b0 + 4, :])
            f = jnp.dot(h2.astype(bf16), fcw_ref[l], preferred_element_type=f32) + fcb_ref[l]
            f = _gelu_erf_kernel(f)
            x = x + jnp.dot(f.astype(bf16), mprojw_ref[l],
                            preferred_element_type=f32) + mprojb_ref[l]

        x = _layernorm(x, wrow_ref[O_G + 2:O_G + 3, :], wrow_ref[O_G + 3:O_G + 4, :])
        # Gather last state-token / action-token hidden of every sequence in one (f32) matmul.
        out_ref[0] = jnp.dot(sel_ref[...], x, preferred_element_type=f32)   # (2*BBLK, H)

    def run(positions, states, actions, attention_mask):
        B = states.shape[0]
        pos = positions.astype(jnp.int32)
        pad = pos == -1
        pos_c = jnp.where(pad, 0, pos)
        st = jnp.where(pad[..., None], 0.0, states.astype(f32))
        ac = jnp.where(pad[..., None], 0.0, actions.astype(f32))

        # Pre-interleave (state_t, action_t) tokens with bias-selector columns and the
        # one-hot timestep columns (layout plumbing only; all matmuls stay in the kernel).
        zS = jnp.zeros((B, T, S), f32)
        zA = jnp.zeros((B, T, A), f32)
        one1 = jnp.ones((B, T, 1), f32)
        zero1 = jnp.zeros((B, T, 1), f32)
        oh = jax.nn.one_hot(pos_c, E, dtype=f32)                      # (B, T, E)
        se = jnp.concatenate([st, zA, one1, zero1, oh], axis=-1)
        ae = jnp.concatenate([zS, ac, zero1, one1, oh], axis=-1)
        tok = jnp.stack([se, ae], axis=2).reshape(B, L2, SAE)
        if SAE_PAD != SAE:
            tok = jnp.concatenate([tok, jnp.zeros((B, L2, SAE_PAD - SAE), f32)], axis=-1)
        km2 = jnp.stack([attention_mask, attention_mask], axis=2).reshape(B, L2).astype(f32)

        # Pad batch to a multiple of BBLK and fold BBLK sequences into each grid step.
        G = -(-B // BBLK)
        BP = G * BBLK
        if BP != B:
            pb = BP - B
            tok = jnp.concatenate([tok, jnp.zeros((pb, L2, SAE_PAD), f32)], axis=0)
            # km=1 on pad sequences: struct confines them to their own block, outputs sliced off.
            km2 = jnp.concatenate([km2, jnp.ones((pb, L2), f32)], axis=0)
        tok_g = tok.reshape(G, M, SAE_PAD)
        km_g = km2.reshape(G, M)[:, None, :]

        in_specs = [
            pl.BlockSpec((1, M, SAE_PAD), lambda g: (g, 0, 0)),
            pl.BlockSpec((1, 1, M), lambda g: (g, 0, 0)),
            pl.BlockSpec((M, M), lambda g: (0, 0)),
            pl.BlockSpec((2 * BBLK, M), lambda g: (0, 0)),
            pl.BlockSpec(w_rows.shape, lambda g: (0, 0)),
            pl.BlockSpec(attn_w.shape, lambda g: (0, 0, 0)),
            pl.BlockSpec(attn_b.shape, lambda g: (0, 0, 0)),
            pl.BlockSpec(aproj_w.shape, lambda g: (0, 0, 0)),
            pl.BlockSpec(aproj_b.shape, lambda g: (0, 0, 0)),
            pl.BlockSpec(fc_w.shape, lambda g: (0, 0, 0)),
            pl.BlockSpec(fc_b.shape, lambda g: (0, 0, 0)),
            pl.BlockSpec(mproj_w.shape, lambda g: (0, 0, 0)),
            pl.BlockSpec(mproj_b.shape, lambda g: (0, 0, 0)),
        ]
        out = pl.pallas_call(
            kernel,
            out_shape=jax.ShapeDtypeStruct((G, 2 * BBLK, H), f32),
            grid_spec=pltpu.PrefetchScalarGridSpec(
                num_scalar_prefetch=0,
                grid=(G,),
                in_specs=in_specs,
                out_specs=pl.BlockSpec((1, 2 * BBLK, H), lambda g: (g, 0, 0))),
            compiler_params=pltpu.CompilerParams(
                dimension_semantics=("parallel",),      # batch blocks independent (v7x 2 TCs)
                vmem_limit_bytes=32 * 1024 * 1024),
        )(tok_g, km_g, struct, out_sel, w_rows,
          attn_w, attn_b, aproj_w, aproj_b, fc_w, fc_b, mproj_w, mproj_b)

        out = out.reshape(BP, 2, H)
        return out[:B, 0, :], out[:B, 1, :]

    return run


def common_gpt2_forward(run_kernel, positions, states, actions, *, n_states, n_actions,
                        seq_len, batched=False, attention_mask=None):
    """JAX equivalent of CommonGPT2.forward (setup_shapes glue + Pallas transformer)."""
    positions = positions.astype(jnp.int32)
    if not batched:
        positions = positions.reshape(1, -1)
        states = states.reshape(1, -1, n_states)
        actions = actions.reshape(1, -1, n_actions)
    pad_mask = positions == -1
    states = states[:, -seq_len:]
    actions = actions[:, -seq_len:]
    positions = positions[:, -seq_len:]
    if attention_mask is None:
        # TODO(synk): reference builds a (1, max_length) mask and boolean-indexes it with a
        # (B, T) pad mask, which only type-checks for B == 1; generalized here per-batch.
        attention_mask = jnp.where(pad_mask[:, -seq_len:], 0, 1).astype(jnp.int32)
    sp, sap = run_kernel(positions, states.astype(jnp.float32),
                         actions.astype(jnp.float32), attention_mask)
    return sp, sap, attention_mask


def reference_forward(params, positions, states, actions, attention_mask, *, n_head):
    """Pure-JAX f32 reference (eval-mode GPT2) used to validate the kernel."""
    B, T, _ = states.shape
    H = params['emb_s_w'].shape[1]
    NH, HD, L2 = n_head, H // n_head, 2 * T
    pad = positions == -1
    pos_c = jnp.where(pad, 0, positions)
    st = jnp.where(pad[..., None], 0.0, states)
    ac = jnp.where(pad[..., None], 0.0, actions)
    s_emb = st @ params['emb_s_w'] + params['emb_s_b'][0]
    a_emb = ac @ params['emb_a_w'] + params['emb_a_b'][0]
    t_emb = params['emb_p'][pos_c]
    s_emb = s_emb + t_emb
    a_emb = a_emb + t_emb
    x = jnp.stack([s_emb, a_emb], axis=2).reshape(B, L2, H)
    x = _layernorm(x, params['eln_g'][0], params['eln_b'][0])
    x = x + params['wpe'][None, :, :]
    km = jnp.repeat(attention_mask.astype(jnp.float32), 2, axis=1)
    key_bias = ((1.0 - km) * BIG_NEG)[:, None, None, :]
    causal = jnp.tril(jnp.ones((L2, L2), bool))
    for l in range(params['attn_w'].shape[0]):
        h = _layernorm(x, params['ln1_g'][l, 0], params['ln1_b'][l, 0])
        qkv = h @ params['attn_w'][l] + params['attn_b'][l, 0]
        q, k, v = jnp.split(qkv, 3, axis=-1)
        heads = lambda t: t.reshape(B, L2, NH, HD).transpose(0, 2, 1, 3)
        qh, kh, vh = heads(q), heads(k), heads(v)
        s = jnp.einsum('bhqd,bhkd->bhqk', qh, kh) / math.sqrt(HD)
        s = jnp.where(causal[None, None], s, BIG_NEG) + key_bias
        p = jax.nn.softmax(s, axis=-1)
        o = jnp.einsum('bhqk,bhkd->bhqd', p, vh).transpose(0, 2, 1, 3).reshape(B, L2, H)
        x = x + (o @ params['aproj_w'][l] + params['aproj_b'][l, 0])
        h2 = _layernorm(x, params['ln2_g'][l, 0], params['ln2_b'][l, 0])
        f = h2 @ params['fc_w'][l] + params['fc_b'][l, 0]
        f = 0.5 * f * (1.0 + lax.erf(f / math.sqrt(2.0)))
        x = x + (f @ params['mproj_w'][l] + params['mproj_b'][l, 0])
    x = _layernorm(x, params['lnf_g'][0], params['lnf_b'][0])
    return x[:, L2 - 2, :], x[:, L2 - 1, :]


if __name__ == "__main__":
    # Small shapes consistent with the module: hidden=32 -> n_head=4, n_layer=2.
    N_STATES, N_ACTIONS, HIDDEN, SEQ, MAX_EP, N_LAYER = 8, 4, 32, 8, 16, 2
    N_HEAD = HIDDEN // 8
    B = 2

    key = jax.random.PRNGKey(0)
    kp, ks, ka = jax.random.split(key, 3)
    params = init_params(kp, N_STATES, N_ACTIONS, HIDDEN, MAX_EP, SEQ, N_LAYER)

    states = jax.random.normal(ks, (B, SEQ, N_STATES), jnp.float32)
    actions = jax.random.normal(ka, (B, SEQ, N_ACTIONS), jnp.float32)
    positions = jnp.stack([
        jnp.array([-1, -1, 0, 1, 2, 3, 4, 5], jnp.int32),   # padded trajectory
        jnp.array([0, 1, 2, 3, 4, 5, 6, 7], jnp.int32),      # full trajectory
    ])

    run_kernel = make_common_gpt2_forward(
        params, n_states=N_STATES, n_actions=N_ACTIONS, seq_len=SEQ,
        hidden_size=HIDDEN, max_episode_len=MAX_EP, n_layer=N_LAYER,
        n_head=N_HEAD, batch_size=B)

    state_pred, state_action_pred, attn_mask = common_gpt2_forward(
        run_kernel, positions, states, actions,
        n_states=N_STATES, n_actions=N_ACTIONS, seq_len=SEQ, batched=True)
    jax.block_until_ready((state_pred, state_action_pred, attn_mask))

    ref_sp, ref_sap = reference_forward(params, positions, states, actions,
                                        attn_mask, n_head=N_HEAD)
    # bf16 matmul operands -> loosened tolerance vs the f32 reference (review caveat).
    np.testing.assert_allclose(np.asarray(state_pred), np.asarray(ref_sp),
                               rtol=1e-2, atol=1e-2)
    np.testing.assert_allclose(np.asarray(state_action_pred), np.asarray(ref_sap),
                               rtol=1e-2, atol=1e-2)
    print("KERNEL_OK")
</pallas_src>

<mosaic_0001>
module attributes {stable_mosaic.version = 11 : i64} {
  func.func @kernel(%arg0: i32, %arg1: memref<1x32x32xf32, #tpu.memory_space<vmem>>, %arg2: memref<1x1x32xf32, #tpu.memory_space<vmem>>, %arg3: memref<32x32xf32, #tpu.memory_space<vmem>>, %arg4: memref<4x32xf32, #tpu.memory_space<vmem>>, %arg5: memref<88x32xf32, #tpu.memory_space<vmem>>, %arg6: memref<2x32x96xbf16, #tpu.memory_space<vmem>>, %arg7: memref<2x1x96xf32, #tpu.memory_space<vmem>>, %arg8: memref<2x32x32xbf16, #tpu.memory_space<vmem>>, %arg9: memref<2x1x32xf32, #tpu.memory_space<vmem>>, %arg10: memref<2x32x128xbf16, #tpu.memory_space<vmem>>, %arg11: memref<2x1x128xf32, #tpu.memory_space<vmem>>, %arg12: memref<2x128x32xbf16, #tpu.memory_space<vmem>>, %arg13: memref<2x1x32xf32, #tpu.memory_space<vmem>>, %arg14: memref<1x4x32xf32, #tpu.memory_space<vmem>>) attributes {dimension_semantics = [#tpu.dimension_semantics<parallel>], iteration_bounds = array<i64: 1>, scalar_prefetch = 0 : i64, scratch_operands = 0 : i64, tpu.core_type = #tpu.core_type<tc>, window_params = [{transform_indices = @transform_0, window_bounds = array<i64: 1, 32, 32>}, {transform_indices = @transform_1, window_bounds = array<i64: 1, 1, 32>}, {pipeline_mode = #tpu.pipeline_mode<synchronous>, transform_indices = @transform_2, window_bounds = array<i64: 32, 32>}, {pipeline_mode = #tpu.pipeline_mode<synchronous>, transform_indices = @transform_3, window_bounds = array<i64: 4, 32>}, {pipeline_mode = #tpu.pipeline_mode<synchronous>, transform_indices = @transform_4, window_bounds = array<i64: 88, 32>}, {pipeline_mode = #tpu.pipeline_mode<synchronous>, transform_indices = @transform_5, window_bounds = array<i64: 2, 32, 96>}, {pipeline_mode = #tpu.pipeline_mode<synchronous>, transform_indices = @transform_6, window_bounds = array<i64: 2, 1, 96>}, {pipeline_mode = #tpu.pipeline_mode<synchronous>, transform_indices = @transform_7, window_bounds = array<i64: 2, 32, 32>}, {pipeline_mode = #tpu.pipeline_mode<synchronous>, transform_indices = @transform_8, window_bounds = array<i64: 2, 1, 32>}, {pipeline_mode = #tpu.pipeline_mode<synchronous>, transform_indices = @transform_9, window_bounds = array<i64: 2, 32, 128>}, {pipeline_mode = #tpu.pipeline_mode<synchronous>, transform_indices = @transform_10, window_bounds = array<i64: 2, 1, 128>}, {pipeline_mode = #tpu.pipeline_mode<synchronous>, transform_indices = @transform_11, window_bounds = array<i64: 2, 128, 32>}, {pipeline_mode = #tpu.pipeline_mode<synchronous>, transform_indices = @transform_12, window_bounds = array<i64: 2, 1, 32>}, {transform_indices = @transform_13, window_bounds = array<i64: 1, 4, 32>}]} {
    %c0 = arith.constant 0 : index
    %c0_0 = arith.constant 0 : index
    %c0_1 = arith.constant 0 : index
    %0 = vector.load %arg1[%c0, %c0_0, %c0_1] : memref<1x32x32xf32, #tpu.memory_space<vmem>>, vector<1x32x32xf32>
    %1 = vector.shape_cast %0 : vector<1x32x32xf32> to vector<32x32xf32>
    %c0_2 = arith.constant 0 : index
    %c0_3 = arith.constant 0 : index
    %c0_4 = arith.constant 0 : index
    %2 = vector.load %arg2[%c0_2, %c0_3, %c0_4] : memref<1x1x32xf32, #tpu.memory_space<vmem>>, vector<1x1x32xf32>
    %3 = vector.shape_cast %2 : vector<1x1x32xf32> to vector<1x32xf32>
    %c0_5 = arith.constant 0 : index
    %c0_6 = arith.constant 0 : index
    %4 = vector.load %arg3[%c0_5, %c0_6] : memref<32x32xf32, #tpu.memory_space<vmem>>, vector<32x32xf32>
    %5 = vector.broadcast %3 : vector<1x32xf32> to vector<32x32xf32>
    %6 = arith.mulf %4, %5 : vector<32x32xf32>
    %cst = arith.constant 5.000000e-01 : f32
    %7 = vector.broadcast %cst : f32 to vector<32x32xf32>
    %8 = arith.cmpf ogt, %6, %7 : vector<32x32xf32>
    %cst_7 = arith.constant 0.000000e+00 : f32
    %cst_8 = arith.constant -1.000000e+30 : f32
    %9 = vector.broadcast %cst_7 : f32 to vector<32x32xf32>
    %10 = vector.broadcast %cst_8 : f32 to vector<32x32xf32>
    %11 = arith.select %8, %9, %10 : vector<32x32xi1>, vector<32x32xf32>
    %c0_9 = arith.constant 0 : index
    %c0_10 = arith.constant 0 : index
    %12 = vector.load %arg5[%c0_9, %c0_10] : memref<88x32xf32, #tpu.memory_space<vmem>>, vector<32x32xf32>
    %cst_11 = arith.constant dense<0.000000e+00> : vector<32x32xf32>
    %13 = tpu.matmul %1, %12, %cst_11 {dimension_numbers = #tpu.dot_dimension_numbers<[1], [0], [0], [1], [0, 0, 1, 1], [], []>} : vector<32x32xf32>, vector<32x32xf32>, vector<32x32xf32> -> vector<32x32xf32>
    %c64 = arith.constant 64 : index
    %c0_12 = arith.constant 0 : index
    %14 = vector.load %arg5[%c64, %c0_12] : memref<88x32xf32, #tpu.memory_space<vmem>>, vector<1x32xf32>
    %c65 = arith.constant 65 : index
    %c0_13 = arith.constant 0 : index
    %15 = vector.load %arg5[%c65, %c0_13] : memref<88x32xf32, #tpu.memory_space<vmem>>, vector<1x32xf32>
    %cst_14 = arith.constant dense<0.000000e+00> : vector<32xf32>
    %16 = vector.multi_reduction <add>, %13, %cst_14 [1] : vector<32x32xf32> to vector<32xf32>
    %17 = vector.shape_cast %16 : vector<32xf32> to vector<32x1xf32>
    %cst_15 = arith.constant 3.200000e+01 : f32
    %18 = vector.broadcast %cst_15 : f32 to vector<32x1xf32>
    %19 = arith.divf %17, %18 : vector<32x1xf32>
    %20 = vector.broadcast %19 : vector<32x1xf32> to vector<32x32xf32>
    %21 = arith.subf %13, %20 : vector<32x32xf32>
    %22 = arith.mulf %21, %21 : vector<32x32xf32>
    %cst_16 = arith.constant dense<0.000000e+00> : vector<32xf32>
    %23 = vector.multi_reduction <add>, %22, %cst_16 [1] : vector<32x32xf32> to vector<32xf32>
    %24 = vector.shape_cast %23 : vector<32xf32> to vector<32x1xf32>
    %cst_17 = arith.constant 3.200000e+01 : f32
    %25 = vector.broadcast %cst_17 : f32 to vector<32x1xf32>
    %26 = arith.divf %24, %25 : vector<32x1xf32>
    %cst_18 = arith.constant 9.99999974E-6 : f32
    %27 = vector.broadcast %cst_18 : f32 to vector<32x1xf32>
    %28 = arith.addf %26, %27 : vector<32x1xf32>
    %29 = math.rsqrt %28 : vector<32x1xf32>
    %30 = vector.broadcast %29 : vector<32x1xf32> to vector<32x32xf32>
    %31 = arith.mulf %21, %30 : vector<32x32xf32>
    %32 = vector.broadcast %14 : vector<1x32xf32> to vector<32x32xf32>
    %33 = arith.mulf %31, %32 : vector<32x32xf32>
    %34 = vector.broadcast %15 : vector<1x32xf32> to vector<32x32xf32>
    %35 = arith.addf %33, %34 : vector<32x32xf32>
    %c32 = arith.constant 32 : index
    %c0_19 = arith.constant 0 : index
    %36 = vector.load %arg5[%c32, %c0_19] : memref<88x32xf32, #tpu.memory_space<vmem>>, vector<32x32xf32>
    %37 = arith.addf %35, %36 : vector<32x32xf32>
    %c72 = arith.constant 72 : index
    %c0_20 = arith.constant 0 : index
    %38 = vector.load %arg5[%c72, %c0_20] : memref<88x32xf32, #tpu.memory_space<vmem>>, vector<1x32xf32>
    %c73 = arith.constant 73 : index
    %c0_21 = arith.constant 0 : index
    %39 = vector.load %arg5[%c73, %c0_21] : memref<88x32xf32, #tpu.memory_space<vmem>>, vector<1x32xf32>
    %cst_22 = arith.constant dense<0.000000e+00> : vector<32xf32>
    %40 = vector.multi_reduction <add>, %37, %cst_22 [1] : vector<32x32xf32> to vector<32xf32>
    %41 = vector.shape_cast %40 : vector<32xf32> to vector<32x1xf32>
    %cst_23 = arith.constant 3.200000e+01 : f32
    %42 = vector.broadcast %cst_23 : f32 to vector<32x1xf32>
    %43 = arith.divf %41, %42 : vector<32x1xf32>
    %44 = vector.broadcast %43 : vector<32x1xf32> to vector<32x32xf32>
    %45 = arith.subf %37, %44 : vector<32x32xf32>
    %46 = arith.mulf %45, %45 : vector<32x32xf32>
    %cst_24 = arith.constant dense<0.000000e+00> : vector<32xf32>
    %47 = vector.multi_reduction <add>, %46, %cst_24 [1] : vector<32x32xf32> to vector<32xf32>
    %48 = vector.shape_cast %47 : vector<32xf32> to vector<32x1xf32>
    %cst_25 = arith.constant 3.200000e+01 : f32
    %49 = vector.broadcast %cst_25 : f32 to vector<32x1xf32>
    %50 = arith.divf %48, %49 : vector<32x1xf32>
    %cst_26 = arith.constant 9.99999974E-6 : f32
    %51 = vector.broadcast %cst_26 : f32 to vector<32x1xf32>
    %52 = arith.addf %50, %51 : vector<32x1xf32>
    %53 = math.rsqrt %52 : vector<32x1xf32>
    %54 = vector.broadcast %53 : vector<32x1xf32> to vector<32x32xf32>
    %55 = arith.mulf %45, %54 : vector<32x32xf32>
    %56 = vector.broadcast %38 : vector<1x32xf32> to vector<32x32xf32>
    %57 = arith.mulf %55, %56 : vector<32x32xf32>
    %58 = vector.broadcast %39 : vector<1x32xf32> to vector<32x32xf32>
    %59 = arith.addf %57, %58 : vector<32x32xf32>
    %60 = arith.truncf %59 : vector<32x32xf32> to vector<32x32xbf16>
    %c0_27 = arith.constant 0 : index
    %c0_28 = arith.constant 0 : index
    %c0_29 = arith.constant 0 : index
    %61 = vector.load %arg6[%c0_27, %c0_28, %c0_29] : memref<2x32x96xbf16, #tpu.memory_space<vmem>>, vector<1x32x96xbf16>
    %62 = vector.shape_cast %61 : vector<1x32x96xbf16> to vector<32x96xbf16>
    %cst_30 = arith.constant dense<0.000000e+00> : vector<32x96xf32>
    %63 = tpu.matmul %60, %62, %cst_30 {dimension_numbers = #tpu.dot_dimension_numbers<[1], [0], [0], [1], [0, 0, 1, 1], [], []>} : vector<32x32xbf16>, vector<32x96xbf16>, vector<32x96xf32> -> vector<32x96xf32>
    %c0_31 = arith.constant 0 : index
    %c0_32 = arith.constant 0 : index
    %c0_33 = arith.constant 0 : index
    %64 = vector.load %arg7[%c0_31, %c0_32, %c0_33] : memref<2x1x96xf32, #tpu.memory_space<vmem>>, vector<1x1x96xf32>
    %65 = vector.shape_cast %64 : vector<1x1x96xf32> to vector<1x96xf32>
    %66 = vector.broadcast %65 : vector<1x96xf32> to vector<32x96xf32>
    %67 = arith.addf %63, %66 : vector<32x96xf32>
    %c0_34 = arith.constant 0 : index
    %c0_35 = arith.constant 0 : index
    %c0_36 = arith.constant 0 : index
    %68 = vector.load %arg8[%c0_34, %c0_35, %c0_36] : memref<2x32x32xbf16, #tpu.memory_space<vmem>>, vector<1x32x32xbf16>
    %69 = vector.shape_cast %68 : vector<1x32x32xbf16> to vector<32x32xbf16>
    %c0_37 = arith.constant 0 : index
    %c0_38 = arith.constant 0 : index
    %c0_39 = arith.constant 0 : index
    %70 = vector.load %arg9[%c0_37, %c0_38, %c0_39] : memref<2x1x32xf32, #tpu.memory_space<vmem>>, vector<1x1x32xf32>
    %71 = vector.shape_cast %70 : vector<1x1x32xf32> to vector<1x32xf32>
    %72 = vector.extract_strided_slice %67 {offsets = [0, 0], sizes = [32, 8], strides = [1, 1]} : vector<32x96xf32> to vector<32x8xf32>
    %73 = arith.truncf %72 : vector<32x8xf32> to vector<32x8xbf16>
    %74 = vector.extract_strided_slice %67 {offsets = [0, 32], sizes = [32, 8], strides = [1, 1]} : vector<32x96xf32> to vector<32x8xf32>
    %75 = arith.truncf %74 : vector<32x8xf32> to vector<32x8xbf16>
    %76 = vector.extract_strided_slice %67 {offsets = [0, 64], sizes = [32, 8], strides = [1, 1]} : vector<32x96xf32> to vector<32x8xf32>
    %77 = arith.truncf %76 : vector<32x8xf32> to vector<32x8xbf16>
    %cst_40 = arith.constant dense<0.000000e+00> : vector<32x32xf32>
    %78 = tpu.matmul %73, %75, %cst_40 {dimension_numbers = #tpu.dot_dimension_numbers<[1], [1], [0], [0], [0, 0, 1, 0], [], []>} : vector<32x8xbf16>, vector<32x8xbf16>, vector<32x32xf32> -> vector<32x32xf32>
    %79 = arith.addf %78, %11 : vector<32x32xf32>
    %cst_41 = arith.constant dense<0xFF800000> : vector<32xf32>
    %80 = vector.multi_reduction <maximumf>, %79, %cst_41 [1] : vector<32x32xf32> to vector<32xf32>
    %81 = vector.shape_cast %80 : vector<32xf32> to vector<32x1xf32>
    %82 = vector.broadcast %81 : vector<32x1xf32> to vector<32x32xf32>
    %83 = arith.subf %79, %82 : vector<32x32xf32>
    %84 = math.exp %83 : vector<32x32xf32>
    %cst_42 = arith.constant dense<0.000000e+00> : vector<32xf32>
    %85 = vector.multi_reduction <add>, %84, %cst_42 [1] : vector<32x32xf32> to vector<32xf32>
    %86 = vector.shape_cast %85 : vector<32xf32> to vector<32x1xf32>
    %87 = tpu.reciprocal %86 {approx = true} : vector<32x1xf32> -> vector<32x1xf32>
    %88 = vector.broadcast %87 : vector<32x1xf32> to vector<32x32xf32>
    %89 = arith.mulf %84, %88 : vector<32x32xf32>
    %90 = arith.truncf %89 : vector<32x32xf32> to vector<32x32xbf16>
    %cst_43 = arith.constant dense<0.000000e+00> : vector<32x8xf32>
    %91 = tpu.matmul %90, %77, %cst_43 {dimension_numbers = #tpu.dot_dimension_numbers<[1], [0], [0], [1], [0, 0, 1, 1], [], []>} : vector<32x32xbf16>, vector<32x8xbf16>, vector<32x8xf32> -> vector<32x8xf32>
    %92 = arith.truncf %91 : vector<32x8xf32> to vector<32x8xbf16>
    %93 = vector.extract_strided_slice %69 {offsets = [0, 0], sizes = [8, 32], strides = [1, 1]} : vector<32x32xbf16> to vector<8x32xbf16>
    %cst_44 = arith.constant dense<0.000000e+00> : vector<32x32xf32>
    %94 = tpu.matmul %92, %93, %cst_44 {dimension_numbers = #tpu.dot_dimension_numbers<[1], [0], [0], [1], [0, 0, 1, 1], [], []>} : vector<32x8xbf16>, vector<8x32xbf16>, vector<32x32xf32> -> vector<32x32xf32>
    %95 = vector.broadcast %71 : vector<1x32xf32> to vector<32x32xf32>
    %96 = arith.addf %95, %94 : vector<32x32xf32>
    %97 = vector.extract_strided_slice %67 {offsets = [0, 8], sizes = [32, 8], strides = [1, 1]} : vector<32x96xf32> to vector<32x8xf32>
    %98 = arith.truncf %97 : vector<32x8xf32> to vector<32x8xbf16>
    %99 = vector.extract_strided_slice %67 {offsets = [0, 40], sizes = [32, 8], strides = [1, 1]} : vector<32x96xf32> to vector<32x8xf32>
    %100 = arith.truncf %99 : vector<32x8xf32> to vector<32x8xbf16>
    %101 = vector.extract_strided_slice %67 {offsets = [0, 72], sizes = [32, 8], strides = [1, 1]} : vector<32x96xf32> to vector<32x8xf32>
    %102 = arith.truncf %101 : vector<32x8xf32> to vector<32x8xbf16>
    %cst_45 = arith.constant dense<0.000000e+00> : vector<32x32xf32>
    %103 = tpu.matmul %98, %100, %cst_45 {dimension_numbers = #tpu.dot_dimension_numbers<[1], [1], [0], [0], [0, 0, 1, 0], [], []>} : vector<32x8xbf16>, vector<32x8xbf16>, vector<32x32xf32> -> vector<32x32xf32>
    %104 = arith.addf %103, %11 : vector<32x32xf32>
    %cst_46 = arith.constant dense<0xFF800000> : vector<32xf32>
    %105 = vector.multi_reduction <maximumf>, %104, %cst_46 [1] : vector<32x32xf32> to vector<32xf32>
    %106 = vector.shape_cast %105 : vector<32xf32> to vector<32x1xf32>
    %107 = vector.broadcast %106 : vector<32x1xf32> to vector<32x32xf32>
    %108 = arith.subf %104, %107 : vector<32x32xf32>
    %109 = math.exp %108 : vector<32x32xf32>
    %cst_47 = arith.constant dense<0.000000e+00> : vector<32xf32>
    %110 = vector.multi_reduction <add>, %109, %cst_47 [1] : vector<32x32xf32> to vector<32xf32>
    %111 = vector.shape_cast %110 : vector<32xf32> to vector<32x1xf32>
    %112 = tpu.reciprocal %111 {approx = true} : vector<32x1xf32> -> vector<32x1xf32>
    %113 = vector.broadcast %112 : vector<32x1xf32> to vector<32x32xf32>
    %114 = arith.mulf %109, %113 : vector<32x32xf32>
    %115 = arith.truncf %114 : vector<32x32xf32> to vector<32x32xbf16>
    %cst_48 = arith.constant dense<0.000000e+00> : vector<32x8xf32>
    %116 = tpu.matmul %115, %102, %cst_48 {dimension_numbers = #tpu.dot_dimension_numbers<[1], [0], [0], [1], [0, 0, 1, 1], [], []>} : vector<32x32xbf16>, vector<32x8xbf16>, vector<32x8xf32> -> vector<32x8xf32>
    %117 = arith.truncf %116 : vector<32x8xf32> to vector<32x8xbf16>
    %118 = vector.extract_strided_slice %69 {offsets = [8, 0], sizes = [8, 32], strides = [1, 1]} : vector<32x32xbf16> to vector<8x32xbf16>
    %cst_49 = arith.constant dense<0.000000e+00> : vector<32x32xf32>
    %119 = tpu.matmul %117, %118, %cst_49 {dimension_numbers = #tpu.dot_dimension_numbers<[1], [0], [0], [1], [0, 0, 1, 1], [], []>} : vector<32x8xbf16>, vector<8x32xbf16>, vector<32x32xf32> -> vector<32x32xf32>
    %120 = arith.addf %96, %119 : vector<32x32xf32>
    %121 = vector.extract_strided_slice %67 {offsets = [0, 16], sizes = [32, 8], strides = [1, 1]} : vector<32x96xf32> to vector<32x8xf32>
    %122 = arith.truncf %121 : vector<32x8xf32> to vector<32x8xbf16>
    %123 = vector.extract_strided_slice %67 {offsets = [0, 48], sizes = [32, 8], strides = [1, 1]} : vector<32x96xf32> to vector<32x8xf32>
    %124 = arith.truncf %123 : vector<32x8xf32> to vector<32x8xbf16>
    %125 = vector.extract_strided_slice %67 {offsets = [0, 80], sizes = [32, 8], strides = [1, 1]} : vector<32x96xf32> to vector<32x8xf32>
    %126 = arith.truncf %125 : vector<32x8xf32> to vector<32x8xbf16>
    %cst_50 = arith.constant dense<0.000000e+00> : vector<32x32xf32>
    %127 = tpu.matmul %122, %124, %cst_50 {dimension_numbers = #tpu.dot_dimension_numbers<[1], [1], [0], [0], [0, 0, 1, 0], [], []>} : vector<32x8xbf16>, vector<32x8xbf16>, vector<32x32xf32> -> vector<32x32xf32>
    %128 = arith.addf %127, %11 : vector<32x32xf32>
    %cst_51 = arith.constant dense<0xFF800000> : vector<32xf32>
    %129 = vector.multi_reduction <maximumf>, %128, %cst_51 [1] : vector<32x32xf32> to vector<32xf32>
    %130 = vector.shape_cast %129 : vector<32xf32> to vector<32x1xf32>
    %131 = vector.broadcast %130 : vector<32x1xf32> to vector<32x32xf32>
    %132 = arith.subf %128, %131 : vector<32x32xf32>
    %133 = math.exp %132 : vector<32x32xf32>
    %cst_52 = arith.constant dense<0.000000e+00> : vector<32xf32>
    %134 = vector.multi_reduction <add>, %133, %cst_52 [1] : vector<32x32xf32> to vector<32xf32>
    %135 = vector.shape_cast %134 : vector<32xf32> to vector<32x1xf32>
    %136 = tpu.reciprocal %135 {approx = true} : vector<32x1xf32> -> vector<32x1xf32>
    %137 = vector.broadcast %136 : vector<32x1xf32> to vector<32x32xf32>
    %138 = arith.mulf %133, %137 : vector<32x32xf32>
    %139 = arith.truncf %138 : vector<32x32xf32> to vector<32x32xbf16>
    %cst_53 = arith.constant dense<0.000000e+00> : vector<32x8xf32>
    %140 = tpu.matmul %139, %126, %cst_53 {dimension_numbers = #tpu.dot_dimension_numbers<[1], [0], [0], [1], [0, 0, 1, 1], [], []>} : vector<32x32xbf16>, vector<32x8xbf16>, vector<32x8xf32> -> vector<32x8xf32>
    %141 = arith.truncf %140 : vector<32x8xf32> to vector<32x8xbf16>
    %142 = vector.extract_strided_slice %69 {offsets = [16, 0], sizes = [8, 32], strides = [1, 1]} : vector<32x32xbf16> to vector<8x32xbf16>
    %cst_54 = arith.constant dense<0.000000e+00> : vector<32x32xf32>
    %143 = tpu.matmul %141, %142, %cst_54 {dimension_numbers = #tpu.dot_dimension_numbers<[1], [0], [0], [1], [0, 0, 1, 1], [], []>} : vector<32x8xbf16>, vector<8x32xbf16>, vector<32x32xf32> -> vector<32x32xf32>
    %144 = arith.addf %120, %143 : vector<32x32xf32>
    %145 = vector.extract_strided_slice %67 {offsets = [0, 24], sizes = [32, 8], strides = [1, 1]} : vector<32x96xf32> to vector<32x8xf32>
    %146 = arith.truncf %145 : vector<32x8xf32> to vector<32x8xbf16>
    %147 = vector.extract_strided_slice %67 {offsets = [0, 56], sizes = [32, 8], strides = [1, 1]} : vector<32x96xf32> to vector<32x8xf32>
    %148 = arith.truncf %147 : vector<32x8xf32> to vector<32x8xbf16>
    %149 = vector.extract_strided_slice %67 {offsets = [0, 88], sizes = [32, 8], strides = [1, 1]} : vector<32x96xf32> to vector<32x8xf32>
    %150 = arith.truncf %149 : vector<32x8xf32> to vector<32x8xbf16>
    %cst_55 = arith.constant dense<0.000000e+00> : vector<32x32xf32>
    %151 = tpu.matmul %146, %148, %cst_55 {dimension_numbers = #tpu.dot_dimension_numbers<[1], [1], [0], [0], [0, 0, 1, 0], [], []>} : vector<32x8xbf16>, vector<32x8xbf16>, vector<32x32xf32> -> vector<32x32xf32>
    %152 = arith.addf %151, %11 : vector<32x32xf32>
    %cst_56 = arith.constant dense<0xFF800000> : vector<32xf32>
    %153 = vector.multi_reduction <maximumf>, %152, %cst_56 [1] : vector<32x32xf32> to vector<32xf32>
    %154 = vector.shape_cast %153 : vector<32xf32> to vector<32x1xf32>
    %155 = vector.broadcast %154 : vector<32x1xf32> to vector<32x32xf32>
    %156 = arith.subf %152, %155 : vector<32x32xf32>
    %157 = math.exp %156 : vector<32x32xf32>
    %cst_57 = arith.constant dense<0.000000e+00> : vector<32xf32>
    %158 = vector.multi_reduction <add>, %157, %cst_57 [1] : vector<32x32xf32> to vector<32xf32>
    %159 = vector.shape_cast %158 : vector<32xf32> to vector<32x1xf32>
    %160 = tpu.reciprocal %159 {approx = true} : vector<32x1xf32> -> vector<32x1xf32>
    %161 = vector.broadcast %160 : vector<32x1xf32> to vector<32x32xf32>
    %162 = arith.mulf %157, %161 : vector<32x32xf32>
    %163 = arith.truncf %162 : vector<32x32xf32> to vector<32x32xbf16>
    %cst_58 = arith.constant dense<0.000000e+00> : vector<32x8xf32>
    %164 = tpu.matmul %163, %150, %cst_58 {dimension_numbers = #tpu.dot_dimension_numbers<[1], [0], [0], [1], [0, 0, 1, 1], [], []>} : vector<32x32xbf16>, vector<32x8xbf16>, vector<32x8xf32> -> vector<32x8xf32>
    %165 = arith.truncf %164 : vector<32x8xf32> to vector<32x8xbf16>
    %166 = vector.extract_strided_slice %69 {offsets = [24, 0], sizes = [8, 32], strides = [1, 1]} : vector<32x32xbf16> to vector<8x32xbf16>
    %cst_59 = arith.constant dense<0.000000e+00> : vector<32x32xf32>
    %167 = tpu.matmul %165, %166, %cst_59 {dimension_numbers = #tpu.dot_dimension_numbers<[1], [0], [0], [1], [0, 0, 1, 1], [], []>} : vector<32x8xbf16>, vector<8x32xbf16>, vector<32x32xf32> -> vector<32x32xf32>
    %168 = arith.addf %144, %167 : vector<32x32xf32>
    %169 = arith.addf %37, %168 : vector<32x32xf32>
    %c74 = arith.constant 74 : index
    %c0_60 = arith.constant 0 : index
    %170 = vector.load %arg5[%c74, %c0_60] : memref<88x32xf32, #tpu.memory_space<vmem>>, vector<1x32xf32>
    %c75 = arith.constant 75 : index
    %c0_61 = arith.constant 0 : index
    %171 = vector.load %arg5[%c75, %c0_61] : memref<88x32xf32, #tpu.memory_space<vmem>>, vector<1x32xf32>
    %cst_62 = arith.constant dense<0.000000e+00> : vector<32xf32>
    %172 = vector.multi_reduction <add>, %169, %cst_62 [1] : vector<32x32xf32> to vector<32xf32>
    %173 = vector.shape_cast %172 : vector<32xf32> to vector<32x1xf32>
    %cst_63 = arith.constant 3.200000e+01 : f32
    %174 = vector.broadcast %cst_63 : f32 to vector<32x1xf32>
    %175 = arith.divf %173, %174 : vector<32x1xf32>
    %176 = vector.broadcast %175 : vector<32x1xf32> to vector<32x32xf32>
    %177 = arith.subf %169, %176 : vector<32x32xf32>
    %178 = arith.mulf %177, %177 : vector<32x32xf32>
    %cst_64 = arith.constant dense<0.000000e+00> : vector<32xf32>
    %179 = vector.multi_reduction <add>, %178, %cst_64 [1] : vector<32x32xf32> to vector<32xf32>
    %180 = vector.shape_cast %179 : vector<32xf32> to vector<32x1xf32>
    %cst_65 = arith.constant 3.200000e+01 : f32
    %181 = vector.broadcast %cst_65 : f32 to vector<32x1xf32>
    %182 = arith.divf %180, %181 : vector<32x1xf32>
    %cst_66 = arith.constant 9.99999974E-6 : f32
    %183 = vector.broadcast %cst_66 : f32 to vector<32x1xf32>
    %184 = arith.addf %182, %183 : vector<32x1xf32>
    %185 = math.rsqrt %184 : vector<32x1xf32>
    %186 = vector.broadcast %185 : vector<32x1xf32> to vector<32x32xf32>
    %187 = arith.mulf %177, %186 : vector<32x32xf32>
    %188 = vector.broadcast %170 : vector<1x32xf32> to vector<32x32xf32>
    %189 = arith.mulf %187, %188 : vector<32x32xf32>
    %190 = vector.broadcast %171 : vector<1x32xf32> to vector<32x32xf32>
    %191 = arith.addf %189, %190 : vector<32x32xf32>
    %192 = arith.truncf %191 : vector<32x32xf32> to vector<32x32xbf16>
    %c0_67 = arith.constant 0 : index
    %c0_68 = arith.constant 0 : index
    %c0_69 = arith.constant 0 : index
    %193 = vector.load %arg10[%c0_67, %c0_68, %c0_69] : memref<2x32x128xbf16, #tpu.memory_space<vmem>>, vector<1x32x128xbf16>
    %194 = vector.shape_cast %193 : vector<1x32x128xbf16> to vector<32x128xbf16>
    %cst_70 = arith.constant dense<0.000000e+00> : vector<32x128xf32>
    %195 = tpu.matmul %192, %194, %cst_70 {dimension_numbers = #tpu.dot_dimension_numbers<[1], [0], [0], [1], [0, 0, 1, 1], [], []>} : vector<32x32xbf16>, vector<32x128xbf16>, vector<32x128xf32> -> vector<32x128xf32>
    %c0_71 = arith.constant 0 : index
    %c0_72 = arith.constant 0 : index
    %c0_73 = arith.constant 0 : index
    %196 = vector.load %arg11[%c0_71, %c0_72, %c0_73] : memref<2x1x128xf32, #tpu.memory_space<vmem>>, vector<1x1x128xf32>
    %197 = vector.shape_cast %196 : vector<1x1x128xf32> to vector<1x128xf32>
    %198 = vector.broadcast %197 : vector<1x128xf32> to vector<32x128xf32>
    %199 = arith.addf %195, %198 : vector<32x128xf32>
    %cst_74 = arith.constant 0.707106769 : f32
    %200 = vector.broadcast %cst_74 : f32 to vector<32x128xf32>
    %201 = arith.mulf %199, %200 : vector<32x128xf32>
    %cst_75 = arith.constant 0.000000e+00 : f32
    %202 = vector.broadcast %cst_75 : f32 to vector<32x128xf32>
    %203 = arith.cmpf olt, %201, %202 : vector<32x128xf32>
    %cst_76 = arith.constant -1.000000e+00 : f32
    %cst_77 = arith.constant 1.000000e+00 : f32
    %204 = vector.broadcast %cst_76 : f32 to vector<32x128xf32>
    %205 = vector.broadcast %cst_77 : f32 to vector<32x128xf32>
    %206 = arith.select %203, %204, %205 : vector<32x128xi1>, vector<32x128xf32>
    %207 = math.absf %201 : vector<32x128xf32>
    %cst_78 = arith.constant 0.327591091 : f32
    %208 = vector.broadcast %cst_78 : f32 to vector<32x128xf32>
    %209 = arith.mulf %208, %207 : vector<32x128xf32>
    %cst_79 = arith.constant 1.000000e+00 : f32
    %210 = vector.broadcast %cst_79 : f32 to vector<32x128xf32>
    %211 = arith.addf %210, %209 : vector<32x128xf32>
    %212 = tpu.reciprocal %211 {approx = true} : vector<32x128xf32> -> vector<32x128xf32>
    %cst_80 = arith.constant 1.06140542 : f32
    %213 = vector.broadcast %cst_80 : f32 to vector<32x128xf32>
    %214 = arith.mulf %213, %212 : vector<32x128xf32>
    %cst_81 = arith.constant -1.45315206 : f32
    %215 = vector.broadcast %cst_81 : f32 to vector<32x128xf32>
    %216 = arith.addf %214, %215 : vector<32x128xf32>
    %217 = arith.mulf %216, %212 : vector<32x128xf32>
    %cst_82 = arith.constant 1.42141378 : f32
    %218 = vector.broadcast %cst_82 : f32 to vector<32x128xf32>
    %219 = arith.addf %217, %218 : vector<32x128xf32>
    %220 = arith.mulf %219, %212 : vector<32x128xf32>
    %cst_83 = arith.constant -0.284496725 : f32
    %221 = vector.broadcast %cst_83 : f32 to vector<32x128xf32>
    %222 = arith.addf %220, %221 : vector<32x128xf32>
    %223 = arith.mulf %222, %212 : vector<32x128xf32>
    %cst_84 = arith.constant 0.254829586 : f32
    %224 = vector.broadcast %cst_84 : f32 to vector<32x128xf32>
    %225 = arith.addf %223, %224 : vector<32x128xf32>
    %226 = arith.mulf %225, %212 : vector<32x128xf32>
    %cst_85 = arith.constant 0.000000e+00 : f32
    %227 = vector.broadcast %cst_85 : f32 to vector<32x128xf32>
    %228 = arith.subf %227, %207 : vector<32x128xf32>
    %229 = arith.mulf %228, %207 : vector<32x128xf32>
    %230 = math.exp %229 : vector<32x128xf32>
    %231 = arith.mulf %226, %230 : vector<32x128xf32>
    %cst_86 = arith.constant 1.000000e+00 : f32
    %232 = vector.broadcast %cst_86 : f32 to vector<32x128xf32>
    %233 = arith.subf %232, %231 : vector<32x128xf32>
    %234 = arith.mulf %206, %233 : vector<32x128xf32>
    %cst_87 = arith.constant 5.000000e-01 : f32
    %235 = vector.broadcast %cst_87 : f32 to vector<32x128xf32>
    %236 = arith.mulf %235, %199 : vector<32x128xf32>
    %cst_88 = arith.constant 1.000000e+00 : f32
    %237 = vector.broadcast %cst_88 : f32 to vector<32x128xf32>
    %238 = arith.addf %237, %234 : vector<32x128xf32>
    %239 = arith.mulf %236, %238 : vector<32x128xf32>
    %240 = arith.truncf %239 : vector<32x128xf32> to vector<32x128xbf16>
    %c0_89 = arith.constant 0 : index
    %c0_90 = arith.constant 0 : index
    %c0_91 = arith.constant 0 : index
    %241 = vector.load %arg12[%c0_89, %c0_90, %c0_91] : memref<2x128x32xbf16, #tpu.memory_space<vmem>>, vector<1x128x32xbf16>
    %242 = vector.shape_cast %241 : vector<1x128x32xbf16> to vector<128x32xbf16>
    %cst_92 = arith.constant dense<0.000000e+00> : vector<32x32xf32>
    %243 = tpu.matmul %240, %242, %cst_92 {dimension_numbers = #tpu.dot_dimension_numbers<[1], [0], [0], [1], [0, 0, 1, 1], [], []>} : vector<32x128xbf16>, vector<128x32xbf16>, vector<32x32xf32> -> vector<32x32xf32>
    %244 = arith.addf %169, %243 : vector<32x32xf32>
    %c0_93 = arith.constant 0 : index
    %c0_94 = arith.constant 0 : index
    %c0_95 = arith.constant 0 : index
    %245 = vector.load %arg13[%c0_93, %c0_94, %c0_95] : memref<2x1x32xf32, #tpu.memory_space<vmem>>, vector<1x1x32xf32>
    %246 = vector.shape_cast %245 : vector<1x1x32xf32> to vector<1x32xf32>
    %247 = vector.broadcast %246 : vector<1x32xf32> to vector<32x32xf32>
    %248 = arith.addf %244, %247 : vector<32x32xf32>
    %c80 = arith.constant 80 : index
    %c0_96 = arith.constant 0 : index
    %249 = vector.load %arg5[%c80, %c0_96] : memref<88x32xf32, #tpu.memory_space<vmem>>, vector<1x32xf32>
    %c81 = arith.constant 81 : index
    %c0_97 = arith.constant 0 : index
    %250 = vector.load %arg5[%c81, %c0_97] : memref<88x32xf32, #tpu.memory_space<vmem>>, vector<1x32xf32>
    %cst_98 = arith.constant dense<0.000000e+00> : vector<32xf32>
    %251 = vector.multi_reduction <add>, %248, %cst_98 [1] : vector<32x32xf32> to vector<32xf32>
    %252 = vector.shape_cast %251 : vector<32xf32> to vector<32x1xf32>
    %cst_99 = arith.constant 3.200000e+01 : f32
    %253 = vector.broadcast %cst_99 : f32 to vector<32x1xf32>
    %254 = arith.divf %252, %253 : vector<32x1xf32>
    %255 = vector.broadcast %254 : vector<32x1xf32> to vector<32x32xf32>
    %256 = arith.subf %248, %255 : vector<32x32xf32>
    %257 = arith.mulf %256, %256 : vector<32x32xf32>
    %cst_100 = arith.constant dense<0.000000e+00> : vector<32xf32>
    %258 = vector.multi_reduction <add>, %257, %cst_100 [1] : vector<32x32xf32> to vector<32xf32>
    %259 = vector.shape_cast %258 : vector<32xf32> to vector<32x1xf32>
    %cst_101 = arith.constant 3.200000e+01 : f32
    %260 = vector.broadcast %cst_101 : f32 to vector<32x1xf32>
    %261 = arith.divf %259, %260 : vector<32x1xf32>
    %cst_102 = arith.constant 9.99999974E-6 : f32
    %262 = vector.broadcast %cst_102 : f32 to vector<32x1xf32>
    %263 = arith.addf %261, %262 : vector<32x1xf32>
    %264 = math.rsqrt %263 : vector<32x1xf32>
    %265 = vector.broadcast %264 : vector<32x1xf32> to vector<32x32xf32>
    %266 = arith.mulf %256, %265 : vector<32x32xf32>
    %267 = vector.broadcast %249 : vector<1x32xf32> to vector<32x32xf32>
    %268 = arith.mulf %266, %267 : vector<32x32xf32>
    %269 = vector.broadcast %250 : vector<1x32xf32> to vector<32x32xf32>
    %270 = arith.addf %268, %269 : vector<32x32xf32>
    %271 = arith.truncf %270 : vector<32x32xf32> to vector<32x32xbf16>
    %c1 = arith.constant 1 : index
    %c0_103 = arith.constant 0 : index
    %c0_104 = arith.constant 0 : index
    %272 = vector.load %arg6[%c1, %c0_103, %c0_104] : memref<2x32x96xbf16, #tpu.memory_space<vmem>>, vector<1x32x96xbf16>
    %273 = vector.shape_cast %272 : vector<1x32x96xbf16> to vector<32x96xbf16>
    %cst_105 = arith.constant dense<0.000000e+00> : vector<32x96xf32>
    %274 = tpu.matmul %271, %273, %cst_105 {dimension_numbers = #tpu.dot_dimension_numbers<[1], [0], [0], [1], [0, 0, 1, 1], [], []>} : vector<32x32xbf16>, vector<32x96xbf16>, vector<32x96xf32> -> vector<32x96xf32>
    %c1_106 = arith.constant 1 : index
    %c0_107 = arith.constant 0 : index
    %c0_108 = arith.constant 0 : index
    %275 = vector.load %arg7[%c1_106, %c0_107, %c0_108] : memref<2x1x96xf32, #tpu.memory_space<vmem>>, vector<1x1x96xf32>
    %276 = vector.shape_cast %275 : vector<1x1x96xf32> to vector<1x96xf32>
    %277 = vector.broadcast %276 : vector<1x96xf32> to vector<32x96xf32>
    %278 = arith.addf %274, %277 : vector<32x96xf32>
    %c1_109 = arith.constant 1 : index
    %c0_110 = arith.constant 0 : index
    %c0_111 = arith.constant 0 : index
    %279 = vector.load %arg8[%c1_109, %c0_110, %c0_111] : memref<2x32x32xbf16, #tpu.memory_space<vmem>>, vector<1x32x32xbf16>
    %280 = vector.shape_cast %279 : vector<1x32x32xbf16> to vector<32x32xbf16>
    %c1_112 = arith.constant 1 : index
    %c0_113 = arith.constant 0 : index
    %c0_114 = arith.constant 0 : index
    %281 = vector.load %arg9[%c1_112, %c0_113, %c0_114] : memref<2x1x32xf32, #tpu.memory_space<vmem>>, vector<1x1x32xf32>
    %282 = vector.shape_cast %281 : vector<1x1x32xf32> to vector<1x32xf32>
    %283 = vector.extract_strided_slice %278 {offsets = [0, 0], sizes = [32, 8], strides = [1, 1]} : vector<32x96xf32> to vector<32x8xf32>
    %284 = arith.truncf %283 : vector<32x8xf32> to vector<32x8xbf16>
    %285 = vector.extract_strided_slice %278 {offsets = [0, 32], sizes = [32, 8], strides = [1, 1]} : vector<32x96xf32> to vector<32x8xf32>
    %286 = arith.truncf %285 : vector<32x8xf32> to vector<32x8xbf16>
    %287 = vector.extract_strided_slice %278 {offsets = [0, 64], sizes = [32, 8], strides = [1, 1]} : vector<32x96xf32> to vector<32x8xf32>
    %288 = arith.truncf %287 : vector<32x8xf32> to vector<32x8xbf16>
    %cst_115 = arith.constant dense<0.000000e+00> : vector<32x32xf32>
    %289 = tpu.matmul %284, %286, %cst_115 {dimension_numbers = #tpu.dot_dimension_numbers<[1], [1], [0], [0], [0, 0, 1, 0], [], []>} : vector<32x8xbf16>, vector<32x8xbf16>, vector<32x32xf32> -> vector<32x32xf32>
    %290 = arith.addf %289, %11 : vector<32x32xf32>
    %cst_116 = arith.constant dense<0xFF800000> : vector<32xf32>
    %291 = vector.multi_reduction <maximumf>, %290, %cst_116 [1] : vector<32x32xf32> to vector<32xf32>
    %292 = vector.shape_cast %291 : vector<32xf32> to vector<32x1xf32>
    %293 = vector.broadcast %292 : vector<32x1xf32> to vector<32x32xf32>
    %294 = arith.subf %290, %293 : vector<32x32xf32>
    %295 = math.exp %294 : vector<32x32xf32>
    %cst_117 = arith.constant dense<0.000000e+00> : vector<32xf32>
    %296 = vector.multi_reduction <add>, %295, %cst_117 [1] : vector<32x32xf32> to vector<32xf32>
    %297 = vector.shape_cast %296 : vector<32xf32> to vector<32x1xf32>
    %298 = tpu.reciprocal %297 {approx = true} : vector<32x1xf32> -> vector<32x1xf32>
    %299 = vector.broadcast %298 : vector<32x1xf32> to vector<32x32xf32>
    %300 = arith.mulf %295, %299 : vector<32x32xf32>
    %301 = arith.truncf %300 : vector<32x32xf32> to vector<32x32xbf16>
    %cst_118 = arith.constant dense<0.000000e+00> : vector<32x8xf32>
    %302 = tpu.matmul %301, %288, %cst_118 {dimension_numbers = #tpu.dot_dimension_numbers<[1], [0], [0], [1], [0, 0, 1, 1], [], []>} : vector<32x32xbf16>, vector<32x8xbf16>, vector<32x8xf32> -> vector<32x8xf32>
    %303 = arith.truncf %302 : vector<32x8xf32> to vector<32x8xbf16>
    %304 = vector.extract_strided_slice %280 {offsets = [0, 0], sizes = [8, 32], strides = [1, 1]} : vector<32x32xbf16> to vector<8x32xbf16>
    %cst_119 = arith.constant dense<0.000000e+00> : vector<32x32xf32>
    %305 = tpu.matmul %303, %304, %cst_119 {dimension_numbers = #tpu.dot_dimension_numbers<[1], [0], [0], [1], [0, 0, 1, 1], [], []>} : vector<32x8xbf16>, vector<8x32xbf16>, vector<32x32xf32> -> vector<32x32xf32>
    %306 = vector.broadcast %282 : vector<1x32xf32> to vector<32x32xf32>
    %307 = arith.addf %306, %305 : vector<32x32xf32>
    %308 = vector.extract_strided_slice %278 {offsets = [0, 8], sizes = [32, 8], strides = [1, 1]} : vector<32x96xf32> to vector<32x8xf32>
    %309 = arith.truncf %308 : vector<32x8xf32> to vector<32x8xbf16>
    %310 = vector.extract_strided_slice %278 {offsets = [0, 40], sizes = [32, 8], strides = [1, 1]} : vector<32x96xf32> to vector<32x8xf32>
    %311 = arith.truncf %310 : vector<32x8xf32> to vector<32x8xbf16>
    %312 = vector.extract_strided_slice %278 {offsets = [0, 72], sizes = [32, 8], strides = [1, 1]} : vector<32x96xf32> to vector<32x8xf32>
    %313 = arith.truncf %312 : vector<32x8xf32> to vector<32x8xbf16>
    %cst_120 = arith.constant dense<0.000000e+00> : vector<32x32xf32>
    %314 = tpu.matmul %309, %311, %cst_120 {dimension_numbers = #tpu.dot_dimension_numbers<[1], [1], [0], [0], [0, 0, 1, 0], [], []>} : vector<32x8xbf16>, vector<32x8xbf16>, vector<32x32xf32> -> vector<32x32xf32>
    %315 = arith.addf %314, %11 : vector<32x32xf32>
    %cst_121 = arith.constant dense<0xFF800000> : vector<32xf32>
    %316 = vector.multi_reduction <maximumf>, %315, %cst_121 [1] : vector<32x32xf32> to vector<32xf32>
    %317 = vector.shape_cast %316 : vector<32xf32> to vector<32x1xf32>
    %318 = vector.broadcast %317 : vector<32x1xf32> to vector<32x32xf32>
    %319 = arith.subf %315, %318 : vector<32x32xf32>
    %320 = math.exp %319 : vector<32x32xf32>
    %cst_122 = arith.constant dense<0.000000e+00> : vector<32xf32>
    %321 = vector.multi_reduction <add>, %320, %cst_122 [1] : vector<32x32xf32> to vector<32xf32>
    %322 = vector.shape_cast %321 : vector<32xf32> to vector<32x1xf32>
    %323 = tpu.reciprocal %322 {approx = true} : vector<32x1xf32> -> vector<32x1xf32>
    %324 = vector.broadcast %323 : vector<32x1xf32> to vector<32x32xf32>
    %325 = arith.mulf %320, %324 : vector<32x32xf32>
    %326 = arith.truncf %325 : vector<32x32xf32> to vector<32x32xbf16>
    %cst_123 = arith.constant dense<0.000000e+00> : vector<32x8xf32>
    %327 = tpu.matmul %326, %313, %cst_123 {dimension_numbers = #tpu.dot_dimension_numbers<[1], [0], [0], [1], [0, 0, 1, 1], [], []>} : vector<32x32xbf16>, vector<32x8xbf16>, vector<32x8xf32> -> vector<32x8xf32>
    %328 = arith.truncf %327 : vector<32x8xf32> to vector<32x8xbf16>
    %329 = vector.extract_strided_slice %280 {offsets = [8, 0], sizes = [8, 32], strides = [1, 1]} : vector<32x32xbf16> to vector<8x32xbf16>
    %cst_124 = arith.constant dense<0.000000e+00> : vector<32x32xf32>
    %330 = tpu.matmul %328, %329, %cst_124 {dimension_numbers = #tpu.dot_dimension_numbers<[1], [0], [0], [1], [0, 0, 1, 1], [], []>} : vector<32x8xbf16>, vector<8x32xbf16>, vector<32x32xf32> -> vector<32x32xf32>
    %331 = arith.addf %307, %330 : vector<32x32xf32>
    %332 = vector.extract_strided_slice %278 {offsets = [0, 16], sizes = [32, 8], strides = [1, 1]} : vector<32x96xf32> to vector<32x8xf32>
    %333 = arith.truncf %332 : vector<32x8xf32> to vector<32x8xbf16>
    %334 = vector.extract_strided_slice %278 {offsets = [0, 48], sizes = [32, 8], strides = [1, 1]} : vector<32x96xf32> to vector<32x8xf32>
    %335 = arith.truncf %334 : vector<32x8xf32> to vector<32x8xbf16>
    %336 = vector.extract_strided_slice %278 {offsets = [0, 80], sizes = [32, 8], strides = [1, 1]} : vector<32x96xf32> to vector<32x8xf32>
    %337 = arith.truncf %336 : vector<32x8xf32> to vector<32x8xbf16>
    %cst_125 = arith.constant dense<0.000000e+00> : vector<32x32xf32>
    %338 = tpu.matmul %333, %335, %cst_125 {dimension_numbers = #tpu.dot_dimension_numbers<[1], [1], [0], [0], [0, 0, 1, 0], [], []>} : vector<32x8xbf16>, vector<32x8xbf16>, vector<32x32xf32> -> vector<32x32xf32>
    %339 = arith.addf %338, %11 : vector<32x32xf32>
    %cst_126 = arith.constant dense<0xFF800000> : vector<32xf32>
    %340 = vector.multi_reduction <maximumf>, %339, %cst_126 [1] : vector<32x32xf32> to vector<32xf32>
    %341 = vector.shape_cast %340 : vector<32xf32> to vector<32x1xf32>
    %342 = vector.broadcast %341 : vector<32x1xf32> to vector<32x32xf32>
    %343 = arith.subf %339, %342 : vector<32x32xf32>
    %344 = math.exp %343 : vector<32x32xf32>
    %cst_127 = arith.constant dense<0.000000e+00> : vector<32xf32>
    %345 = vector.multi_reduction <add>, %344, %cst_127 [1] : vector<32x32xf32> to vector<32xf32>
    %346 = vector.shape_cast %345 : vector<32xf32> to vector<32x1xf32>
    %347 = tpu.reciprocal %346 {approx = true} : vector<32x1xf32> -> vector<32x1xf32>
    %348 = vector.broadcast %347 : vector<32x1xf32> to vector<32x32xf32>
    %349 = arith.mulf %344, %348 : vector<32x32xf32>
    %350 = arith.truncf %349 : vector<32x32xf32> to vector<32x32xbf16>
    %cst_128 = arith.constant dense<0.000000e+00> : vector<32x8xf32>
    %351 = tpu.matmul %350, %337, %cst_128 {dimension_numbers = #tpu.dot_dimension_numbers<[1], [0], [0], [1], [0, 0, 1, 1], [], []>} : vector<32x32xbf16>, vector<32x8xbf16>, vector<32x8xf32> -> vector<32x8xf32>
    %352 = arith.truncf %351 : vector<32x8xf32> to vector<32x8xbf16>
    %353 = vector.extract_strided_slice %280 {offsets = [16, 0], sizes = [8, 32], strides = [1, 1]} : vector<32x32xbf16> to vector<8x32xbf16>
    %cst_129 = arith.constant dense<0.000000e+00> : vector<32x32xf32>
    %354 = tpu.matmul %352, %353, %cst_129 {dimension_numbers = #tpu.dot_dimension_numbers<[1], [0], [0], [1], [0, 0, 1, 1], [], []>} : vector<32x8xbf16>, vector<8x32xbf16>, vector<32x32xf32> -> vector<32x32xf32>
    %355 = arith.addf %331, %354 : vector<32x32xf32>
    %356 = vector.extract_strided_slice %278 {offsets = [0, 24], sizes = [32, 8], strides = [1, 1]} : vector<32x96xf32> to vector<32x8xf32>
    %357 = arith.truncf %356 : vector<32x8xf32> to vector<32x8xbf16>
    %358 = vector.extract_strided_slice %278 {offsets = [0, 56], sizes = [32, 8], strides = [1, 1]} : vector<32x96xf32> to vector<32x8xf32>
    %359 = arith.truncf %358 : vector<32x8xf32> to vector<32x8xbf16>
    %360 = vector.extract_strided_slice %278 {offsets = [0, 88], sizes = [32, 8], strides = [1, 1]} : vector<32x96xf32> to vector<32x8xf32>
    %361 = arith.truncf %360 : vector<32x8xf32> to vector<32x8xbf16>
    %cst_130 = arith.constant dense<0.000000e+00> : vector<32x32xf32>
    %362 = tpu.matmul %357, %359, %cst_130 {dimension_numbers = #tpu.dot_dimension_numbers<[1], [1], [0], [0], [0, 0, 1, 0], [], []>} : vector<32x8xbf16>, vector<32x8xbf16>, vector<32x32xf32> -> vector<32x32xf32>
    %363 = arith.addf %362, %11 : vector<32x32xf32>
    %cst_131 = arith.constant dense<0xFF800000> : vector<32xf32>
    %364 = vector.multi_reduction <maximumf>, %363, %cst_131 [1] : vector<32x32xf32> to vector<32xf32>
    %365 = vector.shape_cast %364 : vector<32xf32> to vector<32x1xf32>
    %366 = vector.broadcast %365 : vector<32x1xf32> to vector<32x32xf32>
    %367 = arith.subf %363, %366 : vector<32x32xf32>
    %368 = math.exp %367 : vector<32x32xf32>
    %cst_132 = arith.constant dense<0.000000e+00> : vector<32xf32>
    %369 = vector.multi_reduction <add>, %368, %cst_132 [1] : vector<32x32xf32> to vector<32xf32>
    %370 = vector.shape_cast %369 : vector<32xf32> to vector<32x1xf32>
    %371 = tpu.reciprocal %370 {approx = true} : vector<32x1xf32> -> vector<32x1xf32>
    %372 = vector.broadcast %371 : vector<32x1xf32> to vector<32x32xf32>
    %373 = arith.mulf %368, %372 : vector<32x32xf32>
    %374 = arith.truncf %373 : vector<32x32xf32> to vector<32x32xbf16>
    %cst_133 = arith.constant dense<0.000000e+00> : vector<32x8xf32>
    %375 = tpu.matmul %374, %361, %cst_133 {dimension_numbers = #tpu.dot_dimension_numbers<[1], [0], [0], [1], [0, 0, 1, 1], [], []>} : vector<32x32xbf16>, vector<32x8xbf16>, vector<32x8xf32> -> vector<32x8xf32>
    %376 = arith.truncf %375 : vector<32x8xf32> to vector<32x8xbf16>
    %377 = vector.extract_strided_slice %280 {offsets = [24, 0], sizes = [8, 32], strides = [1, 1]} : vector<32x32xbf16> to vector<8x32xbf16>
    %cst_134 = arith.constant dense<0.000000e+00> : vector<32x32xf32>
    %378 = tpu.matmul %376, %377, %cst_134 {dimension_numbers = #tpu.dot_dimension_numbers<[1], [0], [0], [1], [0, 0, 1, 1], [], []>} : vector<32x8xbf16>, vector<8x32xbf16>, vector<32x32xf32> -> vector<32x32xf32>
    %379 = arith.addf %355, %378 : vector<32x32xf32>
    %380 = arith.addf %248, %379 : vector<32x32xf32>
    %c82 = arith.constant 82 : index
    %c0_135 = arith.constant 0 : index
    %381 = vector.load %arg5[%c82, %c0_135] : memref<88x32xf32, #tpu.memory_space<vmem>>, vector<1x32xf32>
    %c83 = arith.constant 83 : index
    %c0_136 = arith.constant 0 : index
    %382 = vector.load %arg5[%c83, %c0_136] : memref<88x32xf32, #tpu.memory_space<vmem>>, vector<1x32xf32>
    %cst_137 = arith.constant dense<0.000000e+00> : vector<32xf32>
    %383 = vector.multi_reduction <add>, %380, %cst_137 [1] : vector<32x32xf32> to vector<32xf32>
    %384 = vector.shape_cast %383 : vector<32xf32> to vector<32x1xf32>
    %cst_138 = arith.constant 3.200000e+01 : f32
    %385 = vector.broadcast %cst_138 : f32 to vector<32x1xf32>
    %386 = arith.divf %384, %385 : vector<32x1xf32>
    %387 = vector.broadcast %386 : vector<32x1xf32> to vector<32x32xf32>
    %388 = arith.subf %380, %387 : vector<32x32xf32>
    %389 = arith.mulf %388, %388 : vector<32x32xf32>
    %cst_139 = arith.constant dense<0.000000e+00> : vector<32xf32>
    %390 = vector.multi_reduction <add>, %389, %cst_139 [1] : vector<32x32xf32> to vector<32xf32>
    %391 = vector.shape_cast %390 : vector<32xf32> to vector<32x1xf32>
    %cst_140 = arith.constant 3.200000e+01 : f32
    %392 = vector.broadcast %cst_140 : f32 to vector<32x1xf32>
    %393 = arith.divf %391, %392 : vector<32x1xf32>
    %cst_141 = arith.constant 9.99999974E-6 : f32
    %394 = vector.broadcast %cst_141 : f32 to vector<32x1xf32>
    %395 = arith.addf %393, %394 : vector<32x1xf32>
    %396 = math.rsqrt %395 : vector<32x1xf32>
    %397 = vector.broadcast %396 : vector<32x1xf32> to vector<32x32xf32>
    %398 = arith.mulf %388, %397 : vector<32x32xf32>
    %399 = vector.broadcast %381 : vector<1x32xf32> to vector<32x32xf32>
    %400 = arith.mulf %398, %399 : vector<32x32xf32>
    %401 = vector.broadcast %382 : vector<1x32xf32> to vector<32x32xf32>
    %402 = arith.addf %400, %401 : vector<32x32xf32>
    %403 = arith.truncf %402 : vector<32x32xf32> to vector<32x32xbf16>
    %c1_142 = arith.constant 1 : index
    %c0_143 = arith.constant 0 : index
    %c0_144 = arith.constant 0 : index
    %404 = vector.load %arg10[%c1_142, %c0_143, %c0_144] : memref<2x32x128xbf16, #tpu.memory_space<vmem>>, vector<1x32x128xbf16>
    %405 = vector.shape_cast %404 : vector<1x32x128xbf16> to vector<32x128xbf16>
    %cst_145 = arith.constant dense<0.000000e+00> : vector<32x128xf32>
    %406 = tpu.matmul %403, %405, %cst_145 {dimension_numbers = #tpu.dot_dimension_numbers<[1], [0], [0], [1], [0, 0, 1, 1], [], []>} : vector<32x32xbf16>, vector<32x128xbf16>, vector<32x128xf32> -> vector<32x128xf32>
    %c1_146 = arith.constant 1 : index
    %c0_147 = arith.constant 0 : index
    %c0_148 = arith.constant 0 : index
    %407 = vector.load %arg11[%c1_146, %c0_147, %c0_148] : memref<2x1x128xf32, #tpu.memory_space<vmem>>, vector<1x1x128xf32>
    %408 = vector.shape_cast %407 : vector<1x1x128xf32> to vector<1x128xf32>
    %409 = vector.broadcast %408 : vector<1x128xf32> to vector<32x128xf32>
    %410 = arith.addf %406, %409 : vector<32x128xf32>
    %cst_149 = arith.constant 0.707106769 : f32
    %411 = vector.broadcast %cst_149 : f32 to vector<32x128xf32>
    %412 = arith.mulf %410, %411 : vector<32x128xf32>
    %cst_150 = arith.constant 0.000000e+00 : f32
    %413 = vector.broadcast %cst_150 : f32 to vector<32x128xf32>
    %414 = arith.cmpf olt, %412, %413 : vector<32x128xf32>
    %cst_151 = arith.constant -1.000000e+00 : f32
    %cst_152 = arith.constant 1.000000e+00 : f32
    %415 = vector.broadcast %cst_151 : f32 to vector<32x128xf32>
    %416 = vector.broadcast %cst_152 : f32 to vector<32x128xf32>
    %417 = arith.select %414, %415, %416 : vector<32x128xi1>, vector<32x128xf32>
    %418 = math.absf %412 : vector<32x128xf32>
    %cst_153 = arith.constant 0.327591091 : f32
    %419 = vector.broadcast %cst_153 : f32 to vector<32x128xf32>
    %420 = arith.mulf %419, %418 : vector<32x128xf32>
    %cst_154 = arith.constant 1.000000e+00 : f32
    %421 = vector.broadcast %cst_154 : f32 to vector<32x128xf32>
    %422 = arith.addf %421, %420 : vector<32x128xf32>
    %423 = tpu.reciprocal %422 {approx = true} : vector<32x128xf32> -> vector<32x128xf32>
    %cst_155 = arith.constant 1.06140542 : f32
    %424 = vector.broadcast %cst_155 : f32 to vector<32x128xf32>
    %425 = arith.mulf %424, %423 : vector<32x128xf32>
    %cst_156 = arith.constant -1.45315206 : f32
    %426 = vector.broadcast %cst_156 : f32 to vector<32x128xf32>
    %427 = arith.addf %425, %426 : vector<32x128xf32>
    %428 = arith.mulf %427, %423 : vector<32x128xf32>
    %cst_157 = arith.constant 1.42141378 : f32
    %429 = vector.broadcast %cst_157 : f32 to vector<32x128xf32>
    %430 = arith.addf %428, %429 : vector<32x128xf32>
    %431 = arith.mulf %430, %423 : vector<32x128xf32>
    %cst_158 = arith.constant -0.284496725 : f32
    %432 = vector.broadcast %cst_158 : f32 to vector<32x128xf32>
    %433 = arith.addf %431, %432 : vector<32x128xf32>
    %434 = arith.mulf %433, %423 : vector<32x128xf32>
    %cst_159 = arith.constant 0.254829586 : f32
    %435 = vector.broadcast %cst_159 : f32 to vector<32x128xf32>
    %436 = arith.addf %434, %435 : vector<32x128xf32>
    %437 = arith.mulf %436, %423 : vector<32x128xf32>
    %cst_160 = arith.constant 0.000000e+00 : f32
    %438 = vector.broadcast %cst_160 : f32 to vector<32x128xf32>
    %439 = arith.subf %438, %418 : vector<32x128xf32>
    %440 = arith.mulf %439, %418 : vector<32x128xf32>
    %441 = math.exp %440 : vector<32x128xf32>
    %442 = arith.mulf %437, %441 : vector<32x128xf32>
    %cst_161 = arith.constant 1.000000e+00 : f32
    %443 = vector.broadcast %cst_161 : f32 to vector<32x128xf32>
    %444 = arith.subf %443, %442 : vector<32x128xf32>
    %445 = arith.mulf %417, %444 : vector<32x128xf32>
    %cst_162 = arith.constant 5.000000e-01 : f32
    %446 = vector.broadcast %cst_162 : f32 to vector<32x128xf32>
    %447 = arith.mulf %446, %410 : vector<32x128xf32>
    %cst_163 = arith.constant 1.000000e+00 : f32
    %448 = vector.broadcast %cst_163 : f32 to vector<32x128xf32>
    %449 = arith.addf %448, %445 : vector<32x128xf32>
    %450 = arith.mulf %447, %449 : vector<32x128xf32>
    %451 = arith.truncf %450 : vector<32x128xf32> to vector<32x128xbf16>
    %c1_164 = arith.constant 1 : index
    %c0_165 = arith.constant 0 : index
    %c0_166 = arith.constant 0 : index
    %452 = vector.load %arg12[%c1_164, %c0_165, %c0_166] : memref<2x128x32xbf16, #tpu.memory_space<vmem>>, vector<1x128x32xbf16>
    %453 = vector.shape_cast %452 : vector<1x128x32xbf16> to vector<128x32xbf16>
    %cst_167 = arith.constant dense<0.000000e+00> : vector<32x32xf32>
    %454 = tpu.matmul %451, %453, %cst_167 {dimension_numbers = #tpu.dot_dimension_numbers<[1], [0], [0], [1], [0, 0, 1, 1], [], []>} : vector<32x128xbf16>, vector<128x32xbf16>, vector<32x32xf32> -> vector<32x32xf32>
    %455 = arith.addf %380, %454 : vector<32x32xf32>
    %c1_168 = arith.constant 1 : index
    %c0_169 = arith.constant 0 : index
    %c0_170 = arith.constant 0 : index
    %456 = vector.load %arg13[%c1_168, %c0_169, %c0_170] : memref<2x1x32xf32, #tpu.memory_space<vmem>>, vector<1x1x32xf32>
    %457 = vector.shape_cast %456 : vector<1x1x32xf32> to vector<1x32xf32>
    %458 = vector.broadcast %457 : vector<1x32xf32> to vector<32x32xf32>
    %459 = arith.addf %455, %458 : vector<32x32xf32>
    %c66 = arith.constant 66 : index
    %c0_171 = arith.constant 0 : index
    %460 = vector.load %arg5[%c66, %c0_171] : memref<88x32xf32, #tpu.memory_space<vmem>>, vector<1x32xf32>
    %c67 = arith.constant 67 : index
    %c0_172 = arith.constant 0 : index
    %461 = vector.load %arg5[%c67, %c0_172] : memref<88x32xf32, #tpu.memory_space<vmem>>, vector<1x32xf32>
    %cst_173 = arith.constant dense<0.000000e+00> : vector<32xf32>
    %462 = vector.multi_reduction <add>, %459, %cst_173 [1] : vector<32x32xf32> to vector<32xf32>
    %463 = vector.shape_cast %462 : vector<32xf32> to vector<32x1xf32>
    %cst_174 = arith.constant 3.200000e+01 : f32
    %464 = vector.broadcast %cst_174 : f32 to vector<32x1xf32>
    %465 = arith.divf %463, %464 : vector<32x1xf32>
    %466 = vector.broadcast %465 : vector<32x1xf32> to vector<32x32xf32>
    %467 = arith.subf %459, %466 : vector<32x32xf32>
    %468 = arith.mulf %467, %467 : vector<32x32xf32>
    %cst_175 = arith.constant dense<0.000000e+00> : vector<32xf32>
    %469 = vector.multi_reduction <add>, %468, %cst_175 [1] : vector<32x32xf32> to vector<32xf32>
    %470 = vector.shape_cast %469 : vector<32xf32> to vector<32x1xf32>
    %cst_176 = arith.constant 3.200000e+01 : f32
    %471 = vector.broadcast %cst_176 : f32 to vector<32x1xf32>
    %472 = arith.divf %470, %471 : vector<32x1xf32>
    %cst_177 = arith.constant 9.99999974E-6 : f32
    %473 = vector.broadcast %cst_177 : f32 to vector<32x1xf32>
    %474 = arith.addf %472, %473 : vector<32x1xf32>
    %475 = math.rsqrt %474 : vector<32x1xf32>
    %476 = vector.broadcast %475 : vector<32x1xf32> to vector<32x32xf32>
    %477 = arith.mulf %467, %476 : vector<32x32xf32>
    %478 = vector.broadcast %460 : vector<1x32xf32> to vector<32x32xf32>
    %479 = arith.mulf %477, %478 : vector<32x32xf32>
    %480 = vector.broadcast %461 : vector<1x32xf32> to vector<32x32xf32>
    %481 = arith.addf %479, %480 : vector<32x32xf32>
    %c0_178 = arith.constant 0 : index
    %c0_179 = arith.constant 0 : index
    %482 = vector.load %arg4[%c0_178, %c0_179] : memref<4x32xf32, #tpu.memory_space<vmem>>, vector<4x32xf32>
    %cst_180 = arith.constant dense<0.000000e+00> : vector<4x32xf32>
    %483 = tpu.matmul %482, %481, %cst_180 {dimension_numbers = #tpu.dot_dimension_numbers<[1], [0], [0], [1], [0, 0, 1, 1], [], []>} : vector<4x32xf32>, vector<32x32xf32>, vector<4x32xf32> -> vector<4x32xf32>
    %c0_181 = arith.constant 0 : index
    %c0_182 = arith.constant 0 : index
    %c0_183 = arith.constant 0 : index
    %484 = vector.load %arg14[%c0_181, %c0_182, %c0_183] : memref<1x4x32xf32, #tpu.memory_space<vmem>>, vector<1x4x32xf32>
    %485 = vector.shape_cast %484 : vector<1x4x32xf32> to vector<4x32xf32>
    %486 = vector.shape_cast %483 : vector<4x32xf32> to vector<1x4x32xf32>
    tpu.vector_store %arg14[%c0_181, %c0_182, %c0_183], %486 {strides = array<i32>} : memref<1x4x32xf32, #tpu.memory_space<vmem>>, vector<1x4x32xf32>,
    return
  }
  func.func @transform_0(%arg0: i32) -> (i32, i32, i32) {
    %c0_i32 = arith.constant 0 : i32
    %c0_i32_0 = arith.constant 0 : i32
    %c0_i32_1 = arith.constant 0 : i32
    return %arg0, %c0_i32, %c0_i32_0 : i32, i32, i32
  }
  func.func @transform_1(%arg0: i32) -> (i32, i32, i32) {
    %c0_i32 = arith.constant 0 : i32
    %c0_i32_0 = arith.constant 0 : i32
    %c0_i32_1 = arith.constant 0 : i32
    return %arg0, %c0_i32, %c0_i32_0 : i32, i32, i32
  }
  func.func @transform_2(%arg0: i32) -> (i32, i32) {
    %c0_i32 = arith.constant 0 : i32
    %c0_i32_0 = arith.constant 0 : i32
    %c0_i32_1 = arith.constant 0 : i32
    return %c0_i32, %c0_i32_0 : i32, i32
  }
  func.func @transform_3(%arg0: i32) -> (i32, i32) {
    %c0_i32 = arith.constant 0 : i32
    %c0_i32_0 = arith.constant 0 : i32
    %c0_i32_1 = arith.constant 0 : i32
    return %c0_i32, %c0_i32_0 : i32, i32
  }
  func.func @transform_4(%arg0: i32) -> (i32, i32) {
    %c0_i32 = arith.constant 0 : i32
    %c0_i32_0 = arith.constant 0 : i32
    %c0_i32_1 = arith.constant 0 : i32
    return %c0_i32, %c0_i32_0 : i32, i32
  }
  func.func @transform_5(%arg0: i32) -> (i32, i32, i32) {
    %c0_i32 = arith.constant 0 : i32
    %c0_i32_0 = arith.constant 0 : i32
    %c0_i32_1 = arith.constant 0 : i32
    %c0_i32_2 = arith.constant 0 : i32
    return %c0_i32, %c0_i32_0, %c0_i32_1 : i32, i32, i32
  }
  func.func @transform_6(%arg0: i32) -> (i32, i32, i32) {
    %c0_i32 = arith.constant 0 : i32
    %c0_i32_0 = arith.constant 0 : i32
    %c0_i32_1 = arith.constant 0 : i32
    %c0_i32_2 = arith.constant 0 : i32
    return %c0_i32, %c0_i32_0, %c0_i32_1 : i32, i32, i32
  }
  func.func @transform_7(%arg0: i32) -> (i32, i32, i32) {
    %c0_i32 = arith.constant 0 : i32
    %c0_i32_0 = arith.constant 0 : i32
    %c0_i32_1 = arith.constant 0 : i32
    %c0_i32_2 = arith.constant 0 : i32
    return %c0_i32, %c0_i32_0, %c0_i32_1 : i32, i32, i32
  }
  func.func @transform_8(%arg0: i32) -> (i32, i32, i32) {
    %c0_i32 = arith.constant 0 : i32
    %c0_i32_0 = arith.constant 0 : i32
    %c0_i32_1 = arith.constant 0 : i32
    %c0_i32_2 = arith.constant 0 : i32
    return %c0_i32, %c0_i32_0, %c0_i32_1 : i32, i32, i32
  }
  func.func @transform_9(%arg0: i32) -> (i32, i32, i32) {
    %c0_i32 = arith.constant 0 : i32
    %c0_i32_0 = arith.constant 0 : i32
    %c0_i32_1 = arith.constant 0 : i32
    %c0_i32_2 = arith.constant 0 : i32
    return %c0_i32, %c0_i32_0, %c0_i32_1 : i32, i32, i32
  }
  func.func @transform_10(%arg0: i32) -> (i32, i32, i32) {
    %c0_i32 = arith.constant 0 : i32
    %c0_i32_0 = arith.constant 0 : i32
    %c0_i32_1 = arith.constant 0 : i32
    %c0_i32_2 = arith.constant 0 : i32
    return %c0_i32, %c0_i32_0, %c0_i32_1 : i32, i32, i32
  }
  func.func @transform_11(%arg0: i32) -> (i32, i32, i32) {
    %c0_i32 = arith.constant 0 : i32
    %c0_i32_0 = arith.constant 0 : i32
    %c0_i32_1 = arith.constant 0 : i32
    %c0_i32_2 = arith.constant 0 : i32
    return %c0_i32, %c0_i32_0, %c0_i32_1 : i32, i32, i32
  }
  func.func @transform_12(%arg0: i32) -> (i32, i32, i32) {
    %c0_i32 = arith.constant 0 : i32
    %c0_i32_0 = arith.constant 0 : i32
    %c0_i32_1 = arith.constant 0 : i32
    %c0_i32_2 = arith.constant 0 : i32
    return %c0_i32, %c0_i32_0, %c0_i32_1 : i32, i32, i32
  }
  func.func @transform_13(%arg0: i32) -> (i32, i32, i32) {
    %c0_i32 = arith.constant 0 : i32
    %c0_i32_0 = arith.constant 0 : i32
    %c0_i32_1 = arith.constant 0 : i32
    return %arg0, %c0_i32, %c0_i32_0 : i32, i32, i32
  }
}

</mosaic_0001>

<bundles_post_ra>
// kernel: tpu_custom_call.1
= control target key start
LH: loop header
LB: loop body
LE: loop exit
PB: predicated region body
PF: predicated region fallthrough
CT: control target
= control target key end

     0   :  { %vm77_vm0 = vcmask 261120   ;;  %s5159_s0 = inlined_call_operand.vmem [shape: f32[1,32,32], index: 0, kind: input, shape index: {}]   ;;  %s5160_s1 = inlined_call_operand.vmem [shape: f32[1,1,32], index: 1, kind: input, shape index: {}]   ;;  %s5161_s2 = inlined_call_operand.vmem [shape: f32[32,32], index: 2, kind: input, shape index: {}]   ;;  %s5162_s3 = inlined_call_operand.vmem [shape: f32[4,32], index: 3, kind: input, shape index: {}]   ;;  %s5163_s4 = inlined_call_operand.vmem [shape: f32[88,32], index: 4, kind: input, shape index: {}]   ;;  %s5164_s5 = inlined_call_operand.vmem [shape: bf16[2,32,96], index: 5, kind: input, shape index: {}]   ;;  %s5165_s6 = inlined_call_operand.vmem [shape: f32[2,1,96], index: 6, kind: input, shape index: {}]   ;;  %s5166_s7 = inlined_call_operand.vmem [shape: bf16[2,32,32], index: 7, kind: input, shape index: {}]   ;;  %s5167_s8 = inlined_call_operand.vmem [shape: f32[2,1,32], index: 8, kind: input, shape index: {}]   ;;  %s5168_s9 = inlined_call_operand.vmem [shape: bf16[2,32,128], index: 9, kind: input, shape index: {}]   ;;  %s5169_s10 = inlined_call_operand.vmem [shape: f32[2,1,128], index: 10, kind: input, shape index: {}]   ;;  %s5170_s11 = inlined_call_operand.vmem [shape: bf16[2,128,32], index: 11, kind: input, shape index: {}]   ;;  %s5171_s12 = inlined_call_operand.vmem [shape: f32[2,1,32], index: 12, kind: input, shape index: {}]   ;;  %s5172_s13 = inlined_call_operand.hbm [shape: f32[1,4,32], index: 13, kind: output, shape index: {}]  }
   0x1   :  { %v73_v0 = vld [vmem:[%s5163_s4] sm:$0xff]  ;;  %v74_v1 = vld [vmem:[%s5163_s4 + $0x8] sm:$0xff]  ;;  %v75_v2 = vld [vmem:[%s5163_s4 + $0x10] sm:$0xff] }
   0x2   :  { %v3990_v3 = vpack.c.bf16 %v74_v1, %v73_v0  ;;  %v76_v4 = vld [vmem:[%s5163_s4 + $0x18] sm:$0xff]  ;;  %v46_v5 = vld [vmem:[%s5159_s0] sm:$0xff]  ;;  %v47_v7 = vld [vmem:[%s5159_s0 + $0x8] sm:$0xff] }
   0x3   :  { %v3994_v6 = vpack.c.bf16 %v76_v4, %v75_v2  ;;  %3725 = vmatprep.mubr.msk.f32.mxu0 %vm77_vm0, %v46_v5  ;;  %v48_v8 = vld [vmem:[%s5159_s0 + $0x10] sm:$0xff]  ;;  %v49_v9 = vld [vmem:[%s5159_s0 + $0x18] sm:$0xff] }
   0x4   :  { %3991 = vmatprep.subr.bf16.mxu0 %v3990_v3 }
   0x5   :  { %3993 = vmatpush3.bf16.msra.mxu0 %v3990_v3 }
   0x6   :  { %3995 = vmatprep.subr.bf16.mxu0 %v3994_v6 }
   0x9   :  { %3997 = vmatpush3.bf16.msra.mxu0 %v3994_v6 }
   0xc   :  { %3726 = vmatmul.mubr.msk.f32.vlgmr.msra.gmra.mrb[0].mxu0 %vm77_vm0, %v47_v7 }
   0xd   :  { %3728 = vmatprep.mubr.msk.f32.mxu0 %vm77_vm0, %v48_v8 }
  0x10   :  { %3729 = vmatmul.mubr.msk.f32.gmra.mrb[2].mxu0 %vm77_vm0, %v49_v9 }
  0x11   :  { %18 = vsyncpa [#allocation3], 0  ;;  %v3447_v51 = vld [vmem:[%s5163_s4 + $0x40] ss:$0 sm:$0xff]  ;;  %v3448_v53 = vld [vmem:[%s5163_s4 + $0x41] ss:$0 sm:$0xff] }
  0x12   :  { %v246_v56 = vld [vmem:[%s5163_s4 + $0x20] sm:$0xff]  ;;  %v248_v0 = vld [vmem:[%s5163_s4 + $0x30] sm:$0xff]  ;;  %v247_v4 = vld [vmem:[%s5163_s4 + $0x28] sm:$0xff]  ;;  %vm417_vm1 = vcmask 64512   ;;  %s4333_s27 = smov 96   ;;  %s4334_s28 = smov 88  }
  0x13   :  { %s4335_s29 = smov 120   ;;  %s4339_s23 = smov 112   ;;  %vm594_vm6 = vcmask 1043456   ;;  %vm4347_vm15 = vmmov 0  }
  0x14   :  { %s4340_s25 = smov 56   ;;  %s4341_s26 = smov 72  }
  0x15   :  { %s4342_s30 = smov 104   ;;  %s4343_s16 = smov 48  }
  0x16   :  { %s4344_s17 = smov 40  }
  0xdf   :  { %v3727_v10 = vpop.f32.mrb[0].mxu0 }
  0xe0   :  { %v156_v11 = vpop.f32.mrb[1].mxu0  ;;  %v180_v15 = vsel %vm77_vm0, %v3727_v10, 0.0 }
  0xe1   :  { %v177_v12 = vsel %vm77_vm0, %v156_v11, 0.0 }
  0xe2   :  { %178 = vadd.xlane.f32.xlu0 %v177_v12 }
  0xe3   :  { %v3730_v13 = vpop.f32.mrb[2].mxu0 }
  0xe4   :  { %v166_v14 = vpop.f32.mrb[3].mxu0  ;;  %v186_v17 = vsel %vm77_vm0, %v3730_v13, 0.0 }
  0xe5   :  { %v183_v16 = vsel %vm77_vm0, %v166_v14, 0.0 }
  0xe6   :  { %181 = vadd.xlane.f32.xlu0 %v180_v15  ;;  %184 = vadd.xlane.f32.xlu1 %v183_v16 }
  0xea   :  { %187 = vadd.xlane.f32.xlu1 %v186_v17 }
 0x16f   :  { %v179_v18 = vpop.xlane.xlu0 %178 }
 0x170   :  { %v190_v19 = vmul.f32 0.03125, %v179_v18 }
 0x172   :  { %v194_v20 = vsub.f32 %v156_v11, %v190_v19 }
 0x173   :  { %v182_v21 = vpop.xlane.xlu0 %181  ;;  %v185_v22 = vpop.xlane.xlu1 %184 }
 0x174   :  { %v191_v23 = vmul.f32 0.03125, %v182_v21  ;;  %v192_v24 = vmul.f32 0.03125, %v185_v22  ;;  %v198_v25 = vmul.f32 %v194_v20, %v194_v20 }
 0x176   :  { %v195_v26 = vsub.f32 %v3727_v10, %v191_v23  ;;  %v196_v27 = vsub.f32 %v166_v14, %v192_v24  ;;  %v202_v28 = vsel %vm77_vm0, %v198_v25, 0.0  ;;  %v249_v10 = vld [vmem:[%s5163_s4 + $0x38] sm:$0xff] }
 0x177   :  { %203 = vadd.xlane.f32.xlu0 %v202_v28  ;;  %v188_v29 = vpop.xlane.xlu1 %187 }
 0x178   :  { %v193_v30 = vmul.f32 0.03125, %v188_v29  ;;  %v199_v31 = vmul.f32 %v195_v26, %v195_v26  ;;  %v200_v32 = vmul.f32 %v196_v27, %v196_v27 }
 0x17a   :  { %v197_v33 = vsub.f32 %v3730_v13, %v193_v30  ;;  %v205_v34 = vsel %vm77_vm0, %v199_v31, 0.0  ;;  %v208_v35 = vsel %vm77_vm0, %v200_v32, 0.0 }
 0x17b   :  { %206 = vadd.xlane.f32.xlu1 %v205_v34  ;;  %209 = vadd.xlane.f32.xlu0 %v208_v35 }
 0x17c   :  { %v201_v36 = vmul.f32 %v197_v33, %v197_v33 }
 0x17e   :  { %v211_v37 = vsel %vm77_vm0, %v201_v36, 0.0  ;;  %v4077_v36 = vld [vmem:[%s5164_s5] sm:$0xff]  }
 0x17f   :  { %212 = vadd.xlane.f32.xlu1 %v211_v37  ;;  %3731 = vmatprep.subr.bf16.mxu0 %v4077_v36  ;;  %v4078_v37 = vld [vmem:[%s5164_s5 + $0x8] sm:$0xff]  }
 0x180   :  { %3732 = vmatpush3.bf16.msra.mxu0 %v4077_v36 }
 0x181   :  { %3733 = vmatprep.subr.bf16.mxu0 %v4078_v37 }
 0x184   :  { %3734 = vmatpush3.bf16.msra.mxu0 %v4078_v37 }
 0x204   :  { %v204_v38 = vpop.xlane.xlu0 %203 }
 0x205   :  { %v214_v39 = vmul.f32 0.03125, %v204_v38 }
 0x207   :  { %v218_v40 = vadd.f32 1e-05, %v214_v39 }
 0x208   :  { %v210_v41 = vpop.xlane.xlu0 %209  ;;  %v207_v42 = vpop.xlane.xlu1 %206 }
 0x209   :  { %4101 = vrsqrt.f32 %v218_v40  ;;  %v216_v43 = vmul.f32 0.03125, %v210_v41  ;;  %v215_v44 = vmul.f32 0.03125, %v207_v42 }
 0x20b   :  { %v220_v45 = vadd.f32 1e-05, %v216_v43  ;;  %v219_v46 = vadd.f32 1e-05, %v215_v44 }
 0x20c   :  { %v213_v47 = vpop.xlane.xlu1 %212 }
 0x20d   :  { %4103 = vrsqrt.f32 %v220_v45  ;;  %v217_v48 = vmul.f32 0.03125, %v213_v47 }
 0x20e   :  { %4105 = vrsqrt.f32 %v219_v46 }
 0x20f   :  { %v221_v49 = vadd.f32 1e-05, %v217_v48 }
 0x211   :  { %4107 = vrsqrt.f32 %v221_v49 }
 0x213   :  { %v4102_v50 = vpop.eup %4101 }
 0x214   :  { %v226_v52 = vmul.f32 %v4102_v50, %v194_v20 }
 0x216   :  { %v234_v54 = vmul.f32 %v3447_v51, %v226_v52  ;;  %v3449_v52 = vld [vmem:[%s5163_s4 + $0x48] ss:$0 sm:$0xff] }
 0x217   :  { %v4104_v55 = vpop.eup %4103 }
 0x218   :  { %v4106_v57 = vpop.eup %4105  ;;  %v242_v58 = vadd.f32 %v3448_v53, %v234_v54  ;;  %v228_v59 = vmul.f32 %v4104_v55, %v196_v27 }
 0x219   :  { %v227_v60 = vmul.f32 %v4106_v57, %v195_v26 }
 0x21a   :  { %v4465_v61 = vadd.f32 %v246_v56, %v242_v58  ;;  %v236_v62 = vmul.f32 %v3447_v51, %v228_v59  ;;  %v3450_v58 = vld [vmem:[%s5163_s4 + $0x49] ss:$0 sm:$0xff] }
 0x21b   :  { %v4108_v63 = vpop.eup %4107  ;;  %v235_v1 = vmul.f32 %v3447_v51, %v227_v60 }
 0x21c   :  { %v256_v2 = vsel %vm77_vm0, %v4465_v61, 0.0  ;;  %v244_v3 = vadd.f32 %v3448_v53, %v236_v62  ;;  %v229_v5 = vmul.f32 %v4108_v63, %v197_v33 }
 0x21d   :  { %257 = vadd.xlane.f32.xlu0 %v256_v2  ;;  %v243_v6 = vadd.f32 %v3448_v53, %v235_v1 }
 0x21e   :  { %v4475_v7 = vadd.f32 %v248_v0, %v244_v3  ;;  %v237_v8 = vmul.f32 %v3447_v51, %v229_v5 }
 0x21f   :  { %v4477_v9 = vadd.f32 %v247_v4, %v243_v6 }
 0x220   :  { %v262_v11 = vsel %vm77_vm0, %v4475_v7, 0.0  ;;  %v245_v12 = vadd.f32 %v3448_v53, %v237_v8 }
 0x221   :  { %263 = vadd.xlane.f32.xlu0 %v262_v11  ;;  %v259_v13 = vsel %vm77_vm0, %v4477_v9, 0.0 }
 0x222   :  { %260 = vadd.xlane.f32.xlu1 %v259_v13  ;;  %v4486_v14 = vadd.f32 %v249_v10, %v245_v12  ;;  %v3451_v10 = vld [vmem:[%s5165_s6] ss:$0 sm:$0xff] }
 0x224   :  { %v265_v15 = vsel %vm77_vm0, %v4486_v14, 0.0 }
 0x226   :  { %266 = vadd.xlane.f32.xlu1 %v265_v15 }
 0x2aa   :  { %v258_v16 = vpop.xlane.xlu0 %257 }
 0x2ab   :  { %v268_v17 = vmul.f32 0.03125, %v258_v16 }
 0x2ad   :  { %v272_v18 = vsub.f32 %v4465_v61, %v268_v17 }
 0x2ae   :  { %v264_v19 = vpop.xlane.xlu0 %263 }
 0x2af   :  { %v270_v20 = vmul.f32 0.03125, %v264_v19  ;;  %v261_v21 = vpop.xlane.xlu1 %260  ;;  %v276_v22 = vmul.f32 %v272_v18, %v272_v18 }
 0x2b0   :  { %v269_v23 = vmul.f32 0.03125, %v261_v21 }
 0x2b1   :  { %v274_v24 = vsub.f32 %v4475_v7, %v270_v20  ;;  %v280_v25 = vsel %vm77_vm0, %v276_v22, 0.0 }
 0x2b2   :  { %v273_v26 = vsub.f32 %v4477_v9, %v269_v23  ;;  %281 = vadd.xlane.f32.xlu0 %v280_v25 }
 0x2b3   :  { %v267_v27 = vpop.xlane.xlu1 %266  ;;  %v278_v28 = vmul.f32 %v274_v24, %v274_v24 }
 0x2b4   :  { %v271_v29 = vmul.f32 0.03125, %v267_v27  ;;  %v277_v30 = vmul.f32 %v273_v26, %v273_v26 }
 0x2b5   :  { %v286_v31 = vsel %vm77_vm0, %v278_v28, 0.0 }
 0x2b6   :  { %v275_v32 = vsub.f32 %v4486_v14, %v271_v29  ;;  %287 = vadd.xlane.f32.xlu0 %v286_v31  ;;  %v283_v33 = vsel %vm77_vm0, %v277_v30, 0.0  ;;  %v3442_v31 = vld [vmem:[%s5160_s1] ss:$0 sm:$0xff]  ;;  %s4337_s1 = smov 64  }
 0x2b7   :  { %284 = vadd.xlane.f32.xlu1 %v283_v33  ;;  %v53_v33 = vld [vmem:[%s5161_s2 + $0x10] sm:$0xff] }
 0x2b8   :  { %v279_v34 = vmul.f32 %v275_v32, %v275_v32  ;;  %v63_v36 = vmul.f32 %v3442_v31, %v53_v33 }
 0x2ba   :  { %v289_v35 = vsel %vm77_vm0, %v279_v34, 0.0  ;;  %v52_v34 = vld [vmem:[%s5161_s2 + $0x8] sm:$0xff]  ;;  %vm67_vm3 = vcmp.gt.f32.partialorder %v63_v36, 0.5 }
 0x2bb   :  { %290 = vadd.xlane.f32.xlu1 %v289_v35  ;;  %v62_v37 = vmul.f32 %v3442_v31, %v52_v34 }
 0x2bd   :  { %vm66_vm4 = vcmp.gt.f32.partialorder %v62_v37, 0.5 }
 0x33f   :  { %v282_v38 = vpop.xlane.xlu0 %281 }
 0x340   :  { %v292_v39 = vmul.f32 0.03125, %v282_v38  ;;  %v54_v38 = vld [vmem:[%s5161_s2 + $0x18] sm:$0xff] }
 0x342   :  { %v296_v40 = vadd.f32 1e-05, %v292_v39  ;;  %v64_v39 = vmul.f32 %v3442_v31, %v54_v38 }
 0x343   :  { %v288_v41 = vpop.xlane.xlu0 %287 }
 0x344   :  { %4109 = vrsqrt.f32 %v296_v40  ;;  %v294_v42 = vmul.f32 0.03125, %v288_v41  ;;  %v285_v43 = vpop.xlane.xlu1 %284  ;;  %v4336_v40 = vmov -1e+30   ;;  %vm68_vm5 = vcmp.gt.f32.partialorder %v64_v39, 0.5 }
 0x345   :  { %v293_v44 = vmul.f32 0.03125, %v285_v43  ;;  %v4562_v43 = vsel %vm67_vm3, 0.0, %v4336_v40 }
 0x346   :  { %v298_v45 = vadd.f32 1e-05, %v294_v42 }
 0x347   :  { %v297_v46 = vadd.f32 1e-05, %v293_v44 }
 0x348   :  { %4111 = vrsqrt.f32 %v298_v45  ;;  %v291_v47 = vpop.xlane.xlu1 %290  ;;  %v4564_v45 = vsel %vm66_vm4, 0.0, %v4336_v40 }
 0x349   :  { %4113 = vrsqrt.f32 %v297_v46  ;;  %v295_v48 = vmul.f32 0.03125, %v291_v47 }
 0x34b   :  { %v299_v49 = vadd.f32 1e-05, %v295_v48 }
 0x34d   :  { %4115 = vrsqrt.f32 %v299_v49 }
 0x34e   :  { %v4110_v50 = vpop.eup %4109 }
 0x34f   :  { %v304_v51 = vmul.f32 %v4110_v50, %v272_v18 }
 0x351   :  { %v312_v57 = vmul.f32 %v3449_v52, %v304_v51 }
 0x352   :  { %v4112_v53 = vpop.eup %4111 }
 0x353   :  { %v4114_v54 = vpop.eup %4113  ;;  %v306_v55 = vmul.f32 %v4112_v53, %v274_v24  ;;  %v320_v0 = vadd.f32 %v3450_v58, %v312_v57 }
 0x354   :  { %v305_v56 = vmul.f32 %v4114_v54, %v273_v26 }
 0x355   :  { %v314_v63 = vmul.f32 %v3449_v52, %v306_v55 }
 0x356   :  { %v313_v59 = vmul.f32 %v3449_v52, %v305_v56 }
 0x357   :  { %v4116_v60 = vpop.eup %4115  ;;  %v322_v4 = vadd.f32 %v3450_v58, %v314_v63 }
 0x358   :  { %v307_v62 = vmul.f32 %v4116_v60, %v275_v32  ;;  %v321_v1 = vadd.f32 %v3450_v58, %v313_v59  ;;  %v51_v32 = vld [vmem:[%s5161_s2] sm:$0xff]  ;;  %s4338_s2 = smov 80  }
 0x359   :  { %v61_v35 = vmul.f32 %v3442_v31, %v51_v32 }
 0x35a   :  { %v315_v2 = vmul.f32 %v3449_v52, %v307_v62  ;;  %v324_v3 = vpack.c.bf16 %v321_v1, %v320_v0  ;;  %v4570_v52 = vsel %vm68_vm5, 0.0, %v4336_v40 }
 0x35b   :  { %vm65_vm2 = vcmp.gt.f32.partialorder %v61_v35, 0.5 }
 0x35c   :  { %v323_v5 = vadd.f32 %v3450_v58, %v315_v2  ;;  %3735 = vmatprep.mubr.msk.bf16.mxu0 %vm77_vm0, %v324_v3  ;;  %v4560_v41 = vsel %vm65_vm2, 0.0, %v4336_v40 }
 0x35e   :  { %v325_v6 = vpack.c.bf16 %v323_v5, %v322_v4 }
 0x360   :  { %3736 = vmatmul.mubr.msk.bf16.vlgmr.msra.gmra.mrb[4].mxu0 %vm77_vm0, %v325_v6 }
 0x433   :  { %v3737_v8 = vpop.f32.mrb[4].mxu0 }
 0x434   :  { %v389_v11 = vpop.f32.mrb[5].mxu0  ;;  %v398_v13 = vadd.f32 %v3737_v8, %v3451_v10 }
 0x435   :  { %v3738_v12 = vpop.f32.mrb[6].mxu0  ;;  %v390_v17 = vadd.f32 %v3451_v10, %v389_v11 }
 0x436   :  { %v401_v15 = vadd.f32 %v3738_v12, %v3451_v10  ;;  %v392_v16 = vpop.f32.mrb[7].mxu0 }
 0x437   :  { %v393_v18 = vadd.f32 %v3451_v10, %v392_v16 }
 0x438   :  { %v4515_v19 = vpack.c.bf16 %v401_v15, %v398_v13 }
 0x439   :  { %v4517_v20 = vpack.c.bf16 %v393_v18, %v390_v17 }
 0x43a   :  { %415 = vrot.lane.b32.xlu1 %v4515_v19, %s4333_s27 }
 0x43b   :  { %413 = vrot.lane.b32.xlu0 %v4517_v20, %s4333_s27  ;;  %3743 = vmatprep.mubr.msk.bf16.mxu0 %vm417_vm1, %v4517_v20 }
 0x43e   :  { %661 = vrot.lane.b32.xlu1 %v4517_v20, %s4334_s28 }
 0x43f   :  { %657 = vrot.lane.b32.xlu0 %v4517_v20, %s4335_s29 }
 0x442   :  { %663 = vrot.lane.b32.xlu1 %v4515_v19, %s4334_s28 }
 0x446   :  { %659 = vrot.lane.b32.xlu1 %v4515_v19, %s4335_s29 }
 0x4ac   :  { %v416_v23 = vpop.permute.xlu1 %415 }
 0x4ad   :  { %v414_v21 = vpop.permute.xlu0 %413  ;;  %v428_v24 = vsel %vm417_vm1, %v416_v23, 0 }
 0x4ae   :  { %4036 = vmatprep.subr.msk.bf16.mxu0 %vm417_vm1, %v414_v21  ;;  %v425_v22 = vsel %vm417_vm1, %v414_v21, 0 }
 0x4af   :  { %3740 = vmatpush3.bf16.xpose.msra.mxu0 %v425_v22 }
 0x4b0   :  { %4037 = vmatprep.subr.msk.bf16.mxu0 %vm417_vm1, %v416_v23  ;;  %v662_v25 = vpop.permute.xlu1 %661 }
 0x4b1   :  { %v658_v26 = vpop.permute.xlu0 %657  ;;  %v672_v27 = vsel %vm417_vm1, %v662_v25, 0 }
 0x4b4   :  { %v664_v28 = vpop.permute.xlu1 %663 }
 0x4b5   :  { %v675_v29 = vsel %vm417_vm1, %v664_v28, 0 }
 0x4b7   :  { %3742 = vmatpush3.bf16.xpose.msra.mxu0 %v428_v24 }
 0x4b8   :  { %4039 = vmatprep.subr.msk.bf16.mxu0 %vm417_vm1, %v662_v25  ;;  %v660_v30 = vpop.permute.xlu1 %659 }
 0x4be   :  { %3744 = vmatmul.mubr.msk.bf16.vlgmr.msra.gmra.mrb[8].mxu0 %vm417_vm1, %v4515_v19 }
 0x4bf   :  { %3762 = vmatpush3.bf16.xpose.msra.mxu0 %v672_v27  ;;  %3765 = vmatprep.mubr.msk.bf16.mxu0 %vm417_vm1, %v658_v26 }
 0x4c0   :  { %4040 = vmatprep.subr.msk.bf16.mxu0 %vm417_vm1, %v664_v28 }
 0x4c7   :  { %3764 = vmatpush3.bf16.xpose.msra.mxu0 %v675_v29 }
 0x4ce   :  { %3766 = vmatmul.mubr.msk.bf16.vlgmr.msra.gmra.mrb[12].mxu0 %vm417_vm1, %v660_v30 }
 0x591   :  { %v3745_v42 = vpop.f32.mrb[8].mxu0 }
 0x592   :  { %v464_v44 = vpop.f32.mrb[9].mxu0  ;;  %v473_v49 = vadd.f32 %v3745_v42, %v4562_v43 }
 0x593   :  { %v465_v46 = vadd.f32 %v464_v44, %v4560_v41  ;;  %v3746_v47 = vpop.f32.mrb[10].mxu0 }
 0x594   :  { %v467_v48 = vpop.f32.mrb[11].mxu0  ;;  %v476_v54 = vadd.f32 %v3746_v47, %v4570_v52  ;;  %v485_v55 = vsel %vm77_vm0, %v473_v49, -inf }
 0x595   :  { %v468_v50 = vadd.f32 %v467_v48, %v4564_v45  ;;  %v479_v51 = vsel %vm77_vm0, %v465_v46, -inf }
 0x596   :  { %480 = vmax.xlane.f32.xlu0 %v479_v51  ;;  %v488_v56 = vsel %vm77_vm0, %v476_v54, -inf }
 0x597   :  { %v482_v53 = vsel %vm77_vm0, %v468_v50, -inf }
 0x598   :  { %483 = vmax.xlane.f32.xlu1 %v482_v53 }
 0x59a   :  { %486 = vmax.xlane.f32.xlu0 %v485_v55 }
 0x59e   :  { %489 = vmax.xlane.f32.xlu0 %v488_v56 }
 0x5a1   :  { %v3767_v57 = vpop.f32.mrb[12].mxu0 }
 0x5a2   :  { %v711_v58 = vpop.f32.mrb[13].mxu0  ;;  %v720_v24 = vadd.f32 %v3767_v57, %v4562_v43 }
 0x5a3   :  { %v3768_v59 = vpop.f32.mrb[14].mxu0  ;;  %v712_v23 = vadd.f32 %v711_v58, %v4560_v41 }
 0x5a4   :  { %v714_v60 = vpop.f32.mrb[15].mxu0  ;;  %v723_v26 = vadd.f32 %v3768_v59, %v4570_v52  ;;  %v732_v27 = vsel %vm77_vm0, %v720_v24, -inf }
 0x5a5   :  { %v726_v25 = vsel %vm77_vm0, %v712_v23, -inf  ;;  %v715_v28 = vadd.f32 %v714_v60, %v4564_v45 }
 0x5a6   :  { %v735_v29 = vsel %vm77_vm0, %v723_v26, -inf }
 0x5a7   :  { %v729_v30 = vsel %vm77_vm0, %v715_v28, -inf }
 0x623   :  { %v481_v62 = vpop.xlane.xlu0 %480 }
 0x624   :  { %v491_v63 = vsub.f32 %v465_v46, %v481_v62 }
 0x625   :  { %v484_v0 = vpop.xlane.xlu1 %483 }
 0x626   :  { %v495_v3 = vmul.f32 1.442695, %v491_v63  ;;  %v492_v4 = vsub.f32 %v468_v50, %v484_v0 }
 0x627   :  { %v487_v1 = vpop.xlane.xlu0 %486 }
 0x628   :  { %v493_v2 = vsub.f32 %v473_v49, %v487_v1  ;;  %v497_v10 = vmul.f32 1.442695, %v492_v4 }
 0x62a   :  { %v499_v5 = vmul.f32 1.442695, %v493_v2 }
 0x62b   :  { %v490_v6 = vpop.xlane.xlu0 %489 }
 0x62c   :  { %4117 = vpow2.f32 %v499_v5  ;;  %v494_v8 = vsub.f32 %v476_v54, %v490_v6 }
 0x62d   :  { %4119 = vpow2.f32 %v495_v3 }
 0x62e   :  { %v501_v11 = vmul.f32 1.442695, %v494_v8 }
 0x630   :  { %4121 = vpow2.f32 %v501_v11 }
 0x631   :  { %4123 = vpow2.f32 %v497_v10 }
 0x636   :  { %v4118_v12 = vpop.eup %4117 }
 0x637   :  { %v509_v13 = vsel %vm77_vm0, %v4118_v12, 0.0  ;;  %v4120_v15 = vpop.eup %4119 }
 0x638   :  { %510 = vadd.xlane.f32.xlu0 %v509_v13  ;;  %v503_v17 = vsel %vm77_vm0, %v4120_v15, 0.0 }
 0x63a   :  { %v4122_v16 = vpop.eup %4121 }
 0x63b   :  { %v512_v18 = vsel %vm77_vm0, %v4122_v16, 0.0  ;;  %v4124_v21 = vpop.eup %4123 }
 0x63c   :  { %504 = vadd.xlane.f32.xlu0 %v503_v17  ;;  %513 = vadd.xlane.f32.xlu1 %v512_v18  ;;  %v506_v22 = vsel %vm77_vm0, %v4124_v21, 0.0  ;;  %v404_v17 = vld [vmem:[%s5166_s7] sm:$0xf] }
 0x63d   :  { %v596_v18 = vsel %vm594_vm6, %v404_v17, 0 }
 0x640   :  { %507 = vadd.xlane.f32.xlu1 %v506_v22 }
 0x651   :  { %527 = vrot.lane.b32.xlu1 %v4515_v19, %s4337_s1 }
 0x652   :  { %525 = vrot.lane.b32.xlu0 %v4517_v20, %s4337_s1 }
 0x655   :  { %901 = vrot.lane.b32.xlu1 %v4517_v20, %s4338_s2 }
 0x656   :  { %897 = vrot.lane.b32.xlu0 %v4517_v20, %s4339_s23 }
 0x659   :  { %903 = vrot.lane.b32.xlu1 %v4515_v19, %s4338_s2 }
 0x65d   :  { %899 = vrot.lane.b32.xlu1 %v4515_v19, %s4339_s23 }
 0x675   :  { %727 = vmax.xlane.f32.xlu0 %v726_v25 }
 0x679   :  { %733 = vmax.xlane.f32.xlu0 %v732_v27 }
 0x67d   :  { %736 = vmax.xlane.f32.xlu0 %v735_v29 }
 0x681   :  { %730 = vmax.xlane.f32.xlu1 %v729_v30 }
 0x6c5   :  { %v511_v31 = vpop.xlane.xlu0 %510 }
 0x6c9   :  { %v514_v32 = vpop.xlane.xlu1 %513  ;;  %v505_v33 = vpop.xlane.xlu0 %504 }
 0x6ca   :  { %4125 = vrcp.f32 %v514_v32 }
 0x6cb   :  { %4127 = vrcp.f32 %v505_v33 }
 0x6cc   :  { %4129 = vrcp.f32 %v511_v31 }
 0x6cd   :  { %v508_v34 = vpop.xlane.xlu1 %507  ;;  %v526_v35 = vpop.permute.xlu0 %525 }
 0x6ce   :  { %4131 = vrcp.f32 %v508_v34  ;;  %3747 = vmatprep.subr.bf16.mxu1 %v526_v35 }
 0x6cf   :  { %3748 = vmatpush3.bf16.msra.mxu1 %v526_v35 }
 0x6d1   :  { %v528_v36 = vpop.permute.xlu1 %527  ;;  %v898_v37 = vpop.permute.xlu0 %897 }
 0x6d2   :  { %3749 = vmatprep.subr.bf16.mxu1 %v528_v36  ;;  %3787 = vmatprep.mubr.msk.bf16.mxu0 %vm417_vm1, %v898_v37 }
 0x6d3   :  { %3750 = vmatpush3.bf16.msra.mxu1 %v528_v36 }
 0x6d4   :  { %v4126_v38 = vpop.eup %4125  ;;  %4038 = vmatprep.subr.msk.bf16.mxu1 %vm594_vm6, %v404_v17 }
 0x6d5   :  { %v902_v39 = vpop.permute.xlu1 %901  ;;  %v4128_v40 = vpop.eup %4127  ;;  %v522_v47 = vmul.f32 %v4126_v38, %v4122_v16 }
 0x6d6   :  { %4042 = vmatprep.subr.msk.bf16.mxu0 %vm417_vm1, %v902_v39  ;;  %v912_v42 = vsel %vm417_vm1, %v902_v39, 0  ;;  %v4130_v44 = vpop.eup %4129  ;;  %v519_v49 = vmul.f32 %v4128_v40, %v4120_v15 }
 0x6d7   :  { %3784 = vmatpush3.bf16.xpose.msra.mxu0 %v912_v42  ;;  %v521_v51 = vmul.f32 %v4130_v44, %v4118_v12 }
 0x6d8   :  { %v4132_v46 = vpop.eup %4131 }
 0x6d9   :  { %v904_v48 = vpop.permute.xlu1 %903  ;;  %v520_v50 = vmul.f32 %v4132_v46, %v4124_v21  ;;  %v524_v54 = vpack.c.bf16 %v522_v47, %v521_v51 }
 0x6da   :  { %4043 = vmatprep.subr.msk.bf16.mxu0 %vm417_vm1, %v904_v48  ;;  %v915_v55 = vsel %vm417_vm1, %v904_v48, 0 }
 0x6db   :  { %v523_v53 = vpack.c.bf16 %v520_v50, %v519_v49 }
 0x6dd   :  { %3751 = vmatprep.mubr.msk.bf16.mxu1 %vm77_vm0, %v523_v53  ;;  %v900_v56 = vpop.permute.xlu1 %899 }
 0x6de   :  { %3752 = vmatmul.mubr.msk.bf16.vlgmr.msra.gmra.mrb[0].mxu1 %vm77_vm0, %v524_v54 }
 0x6df   :  { %3786 = vmatpush3.bf16.xpose.msra.mxu0 %v915_v55  ;;  %3756 = vmatpush3.bf16.msra.mxu1 %v596_v18 }
 0x6e6   :  { %3788 = vmatmul.mubr.msk.bf16.vlgmr.msra.gmra.mrb[16].mxu0 %vm417_vm1, %v900_v56 }
 0x702   :  { %v728_v57 = vpop.xlane.xlu0 %727 }
 0x703   :  { %v738_v58 = vsub.f32 %v712_v23, %v728_v57 }
 0x705   :  { %v742_v62 = vmul.f32 1.442695, %v738_v58 }
 0x706   :  { %v734_v59 = vpop.xlane.xlu0 %733 }
 0x707   :  { %v740_v60 = vsub.f32 %v720_v24, %v734_v59 }
 0x709   :  { %v746_v63 = vmul.f32 1.442695, %v740_v60 }
 0x70a   :  { %v737_v0 = vpop.xlane.xlu0 %736 }
 0x70b   :  { %4133 = vpow2.f32 %v746_v63  ;;  %v741_v1 = vsub.f32 %v723_v26, %v737_v0 }
 0x70c   :  { %4135 = vpow2.f32 %v742_v62 }
 0x70d   :  { %v748_v2 = vmul.f32 1.442695, %v741_v1 }
 0x70e   :  { %v731_v3 = vpop.xlane.xlu1 %730 }
 0x70f   :  { %4137 = vpow2.f32 %v748_v2  ;;  %v739_v4 = vsub.f32 %v715_v28, %v731_v3  ;;  %v405_v2 = vld [vmem:[%s5166_s7 + $0x4] sm:$0xf] }
 0x710   :  { %v842_v3 = vsel %vm594_vm6, %v405_v2, 0 }
 0x711   :  { %v744_v5 = vmul.f32 1.442695, %v739_v4 }
 0x713   :  { %4139 = vpow2.f32 %v744_v5 }
 0x715   :  { %v4608_v6 = vpop.eup %4133 }
 0x716   :  { %v756_v8 = vsel %vm77_vm0, %v4608_v6, 0.0  ;;  %v4136_v10 = vpop.eup %4135 }
 0x717   :  { %757 = vadd.xlane.f32.xlu0 %v756_v8  ;;  %v750_v12 = vsel %vm77_vm0, %v4136_v10, 0.0 }
 0x719   :  { %v4138_v11 = vpop.eup %4137 }
 0x71a   :  { %v759_v13 = vsel %vm77_vm0, %v4138_v11, 0.0 }
 0x71b   :  { %751 = vadd.xlane.f32.xlu0 %v750_v12  ;;  %760 = vadd.xlane.f32.xlu1 %v759_v13 }
 0x71d   :  { %v4140_v15 = vpop.eup %4139 }
 0x71e   :  { %v753_v16 = vsel %vm77_vm0, %v4140_v15, 0.0 }
 0x71f   :  { %754 = vadd.xlane.f32.xlu1 %v753_v16 }
 0x730   :  { %774 = vrot.lane.b32.xlu1 %v4515_v19, %s4340_s25 }
 0x731   :  { %772 = vrot.lane.b32.xlu0 %v4517_v20, %s4340_s25 }
 0x734   :  { %1141 = vrot.lane.b32.xlu1 %v4517_v20, %s4341_s26 }
 0x735   :  { %1137 = vrot.lane.b32.xlu0 %v4517_v20, %s4342_s30 }
 0x738   :  { %1143 = vrot.lane.b32.xlu1 %v4515_v19, %s4341_s26 }
 0x73c   :  { %1139 = vrot.lane.b32.xlu1 %v4515_v19, %s4342_s30 }
 0x7a4   :  { %v758_v21 = vpop.xlane.xlu0 %757 }
 0x7a8   :  { %v761_v22 = vpop.xlane.xlu1 %760  ;;  %v752_v23 = vpop.xlane.xlu0 %751 }
 0x7a9   :  { %4141 = vrcp.f32 %v752_v23 }
 0x7aa   :  { %4143 = vrcp.f32 %v761_v22 }
 0x7ac   :  { %v755_v24 = vpop.xlane.xlu1 %754  ;;  %v773_v25 = vpop.permute.xlu0 %772 }
 0x7ad   :  { %4145 = vrcp.f32 %v755_v24  ;;  %3769 = vmatprep.subr.bf16.mxu1 %v773_v25 }
 0x7ae   :  { %4147 = vrcp.f32 %v758_v21 }
 0x7b0   :  { %v775_v26 = vpop.permute.xlu1 %774  ;;  %v1138_v27 = vpop.permute.xlu0 %1137 }
 0x7b1   :  { %v3753_v28 = vpop.f32.mrb[0].mxu1  ;;  %3809 = vmatprep.mubr.msk.bf16.mxu0 %vm417_vm1, %v1138_v27 }
 0x7b2   :  { %v571_v29 = vpop.f32.mrb[1].mxu1 }
 0x7b3   :  { %v3754_v30 = vpop.f32.mrb[2].mxu1  ;;  %v4142_v34 = vpop.eup %4141 }
 0x7b4   :  { %v587_v31 = vpack.c.bf16 %v3754_v30, %v3753_v28  ;;  %v574_v32 = vpop.f32.mrb[3].mxu1  ;;  %v1142_v33 = vpop.permute.xlu1 %1141  ;;  %v766_v40 = vmul.f32 %v4142_v34, %v4136_v10 }
 0x7b5   :  { %v586_v35 = vpack.c.bf16 %v574_v32, %v571_v29  ;;  %4045 = vmatprep.subr.msk.bf16.mxu0 %vm417_vm1, %v1142_v33  ;;  %v1152_v36 = vsel %vm417_vm1, %v1142_v33, 0  ;;  %v4144_v37 = vpop.eup %4143 }
 0x7b6   :  { %3806 = vmatpush3.bf16.xpose.msra.mxu0 %v1152_v36  ;;  %v769_v47 = vmul.f32 %v4144_v37, %v4138_v11 }
 0x7b7   :  { %v4146_v38 = vpop.eup %4145  ;;  %3757 = vmatprep.mubr.msk.bf16.mxu1 %vm417_vm1, %v586_v35 }
 0x7b8   :  { %3758 = vmatmul.mubr.msk.bf16.vlgmr.msra.gmra.mrb[4].mxu1 %vm417_vm1, %v587_v31  ;;  %v1144_v39 = vpop.permute.xlu1 %1143  ;;  %v767_v42 = vmul.f32 %v4146_v38, %v4140_v15  ;;  %v4148_v44 = vpop.eup %4147 }
 0x7b9   :  { %3770 = vmatpush3.bf16.msra.mxu1 %v773_v25  ;;  %v3789_v46 = vpop.f32.mrb[16].mxu0  ;;  %4046 = vmatprep.subr.msk.bf16.mxu0 %vm417_vm1, %v1144_v39  ;;  %v768_v53 = vmul.f32 %v4148_v44, %v4608_v6  ;;  %v1155_v58 = vsel %vm417_vm1, %v1144_v39, 0 }
 0x7ba   :  { %3771 = vmatprep.subr.bf16.mxu1 %v775_v26  ;;  %v951_v48 = vpop.f32.mrb[17].mxu0  ;;  %v770_v49 = vpack.c.bf16 %v767_v42, %v766_v40  ;;  %v960_v55 = vadd.f32 %v3789_v46, %v4562_v43 }
 0x7bb   :  { %v952_v50 = vadd.f32 %v951_v48, %v4560_v41  ;;  %v3790_v51 = vpop.f32.mrb[18].mxu0  ;;  %v771_v59 = vpack.c.bf16 %v769_v47, %v768_v53 }
 0x7bc   :  { %v954_v54 = vpop.f32.mrb[19].mxu0  ;;  %3773 = vmatprep.mubr.msk.bf16.mxu1 %vm77_vm0, %v770_v49  ;;  %v963_v62 = vadd.f32 %v3790_v51, %v4570_v52  ;;  %v972_v63 = vsel %vm77_vm0, %v960_v55, -inf  ;;  %v1140_v0 = vpop.permute.xlu1 %1139 }
 0x7bd   :  { %v955_v56 = vadd.f32 %v954_v54, %v4564_v45  ;;  %3772 = vmatpush3.bf16.msra.mxu1 %v775_v26  ;;  %v966_v57 = vsel %vm77_vm0, %v952_v50, -inf }
 0x7be   :  { %967 = vmax.xlane.f32.xlu0 %v966_v57  ;;  %3808 = vmatpush3.bf16.xpose.msra.mxu0 %v1155_v58  ;;  %v975_v1 = vsel %vm77_vm0, %v963_v62, -inf }
 0x7bf   :  { %v969_v60 = vsel %vm77_vm0, %v955_v56, -inf  ;;  %4041 = vmatprep.subr.msk.bf16.mxu1 %vm594_vm6, %v405_v2 }
 0x7c0   :  { %970 = vmax.xlane.f32.xlu1 %v969_v60  ;;  %3774 = vmatmul.mubr.msk.bf16.vlgmr.msra.gmra.mrb[8].mxu1 %vm77_vm0, %v771_v59 }
 0x7c1   :  { %3778 = vmatpush3.bf16.msra.mxu1 %v842_v3 }
 0x7c2   :  { %973 = vmax.xlane.f32.xlu0 %v972_v63 }
 0x7c5   :  { %3810 = vmatmul.mubr.msk.bf16.vlgmr.msra.gmra.mrb[20].mxu0 %vm417_vm1, %v1140_v0 }
 0x7c6   :  { %976 = vmax.xlane.f32.xlu0 %v975_v1 }
 0x84b   :  { %v968_v4 = vpop.xlane.xlu0 %967 }
 0x84c   :  { %v978_v5 = vsub.f32 %v952_v50, %v968_v4 }
 0x84d   :  { %v971_v6 = vpop.xlane.xlu1 %970 }
 0x84e   :  { %v982_v11 = vmul.f32 1.442695, %v978_v5  ;;  %v979_v12 = vsub.f32 %v955_v56, %v971_v6 }
 0x84f   :  { %v974_v8 = vpop.xlane.xlu0 %973 }
 0x850   :  { %v980_v10 = vsub.f32 %v960_v55, %v974_v8  ;;  %v984_v17 = vmul.f32 1.442695, %v979_v12 }
 0x852   :  { %v986_v13 = vmul.f32 1.442695, %v980_v10 }
 0x853   :  { %v977_v15 = vpop.xlane.xlu0 %976 }
 0x854   :  { %4149 = vpow2.f32 %v986_v13  ;;  %v981_v16 = vsub.f32 %v963_v62, %v977_v15 }
 0x855   :  { %4151 = vpow2.f32 %v982_v11 }
 0x856   :  { %v988_v18 = vmul.f32 1.442695, %v981_v16 }
 0x858   :  { %4153 = vpow2.f32 %v988_v18 }
 0x859   :  { %4155 = vpow2.f32 %v984_v17 }
 0x85e   :  { %v4150_v21 = vpop.eup %4149 }
 0x85f   :  { %v996_v22 = vsel %vm77_vm0, %v4150_v21, 0.0  ;;  %v4152_v23 = vpop.eup %4151 }
 0x860   :  { %997 = vadd.xlane.f32.xlu0 %v996_v22  ;;  %v990_v25 = vsel %vm77_vm0, %v4152_v23, 0.0 }
 0x862   :  { %v4154_v24 = vpop.eup %4153 }
 0x863   :  { %v999_v26 = vsel %vm77_vm0, %v4154_v24, 0.0  ;;  %v4156_v27 = vpop.eup %4155 }
 0x864   :  { %991 = vadd.xlane.f32.xlu0 %v990_v25  ;;  %1000 = vadd.xlane.f32.xlu1 %v999_v26  ;;  %v993_v28 = vsel %vm77_vm0, %v4156_v27, 0.0 }
 0x868   :  { %994 = vadd.xlane.f32.xlu1 %v993_v28 }
 0x879   :  { %1014 = vrot.lane.b32.xlu1 %v4515_v19, %s4343_s16 }
 0x87a   :  { %1012 = vrot.lane.b32.xlu0 %v4517_v20, %s4343_s16 }
 0x893   :  { %v3775_v29 = vpop.f32.mrb[8].mxu1 }
 0x894   :  { %v818_v30 = vpop.f32.mrb[9].mxu1 }
 0x895   :  { %v3776_v31 = vpop.f32.mrb[10].mxu1 }
 0x896   :  { %v834_v32 = vpack.c.bf16 %v3776_v31, %v3775_v29  ;;  %v821_v33 = vpop.f32.mrb[11].mxu1  ;;  %v406_v29 = vld [vmem:[%s5166_s7 + $0x8] sm:$0xf] }
 0x897   :  { %v833_v34 = vpack.c.bf16 %v821_v33, %v818_v30  ;;  %v1082_v30 = vsel %vm594_vm6, %v406_v29, 0 }
 0x898   :  { %v3811_v35 = vpop.f32.mrb[20].mxu0 }
 0x899   :  { %3779 = vmatprep.mubr.msk.bf16.mxu1 %vm417_vm1, %v833_v34  ;;  %v1191_v36 = vpop.f32.mrb[21].mxu0  ;;  %v1200_v46 = vadd.f32 %v3811_v35, %v4562_v43 }
 0x89a   :  { %v1192_v37 = vadd.f32 %v1191_v36, %v4560_v41  ;;  %3780 = vmatmul.mubr.msk.bf16.vlgmr.msra.gmra.mrb[4].mxu1 %vm417_vm1, %v834_v32  ;;  %v3812_v38 = vpop.f32.mrb[22].mxu0 }
 0x89b   :  { %v1194_v39 = vpop.f32.mrb[23].mxu0  ;;  %v1203_v40 = vadd.f32 %v3812_v38, %v4570_v52  ;;  %v1212_v49 = vsel %vm77_vm0, %v1200_v46, -inf }
 0x89c   :  { %v1195_v42 = vadd.f32 %v1194_v39, %v4564_v45  ;;  %v1206_v44 = vsel %vm77_vm0, %v1192_v37, -inf }
 0x89d   :  { %1207 = vmax.xlane.f32.xlu1 %v1206_v44  ;;  %v1215_v48 = vsel %vm77_vm0, %v1203_v40, -inf }
 0x89e   :  { %v1209_v47 = vsel %vm77_vm0, %v1195_v42, -inf }
 0x89f   :  { %1210 = vmax.xlane.f32.xlu0 %v1209_v47 }
 0x8a1   :  { %1216 = vmax.xlane.f32.xlu1 %v1215_v48 }
 0x8a3   :  { %1213 = vmax.xlane.f32.xlu0 %v1212_v49 }
 0x8ed   :  { %v998_v50 = vpop.xlane.xlu0 %997 }
 0x8f1   :  { %v1001_v51 = vpop.xlane.xlu1 %1000  ;;  %v992_v53 = vpop.xlane.xlu0 %991 }
 0x8f2   :  { %4157 = vrcp.f32 %v1001_v51 }
 0x8f3   :  { %4159 = vrcp.f32 %v992_v53  ;;  %v407_v53 = vld [vmem:[%s5166_s7 + $0xc] sm:$0xf] }
 0x8f4   :  { %4161 = vrcp.f32 %v998_v50 }
 0x8f5   :  { %v995_v54 = vpop.xlane.xlu1 %994  ;;  %v1013_v55 = vpop.permute.xlu0 %1012 }
 0x8f6   :  { %4163 = vrcp.f32 %v995_v54  ;;  %3791 = vmatprep.subr.bf16.mxu1 %v1013_v55 }
 0x8f7   :  { %3792 = vmatpush3.bf16.msra.mxu1 %v1013_v55 }
 0x8f9   :  { %v1015_v56 = vpop.permute.xlu1 %1014 }
 0x8fa   :  { %3793 = vmatprep.subr.bf16.mxu1 %v1015_v56 }
 0x8fb   :  { %3794 = vmatpush3.bf16.msra.mxu1 %v1015_v56  ;;  %v1322_v56 = vsel %vm594_vm6, %v407_v53, 0 }
 0x8fc   :  { %v4158_v57 = vpop.eup %4157  ;;  %4044 = vmatprep.subr.msk.bf16.mxu1 %vm594_vm6, %v406_v29 }
 0x8fd   :  { %v4160_v58 = vpop.eup %4159  ;;  %v1009_v62 = vmul.f32 %v4158_v57, %v4154_v24 }
 0x8fe   :  { %v4162_v59 = vpop.eup %4161  ;;  %v1006_v63 = vmul.f32 %v4160_v58, %v4152_v23 }
 0x8ff   :  { %v1008_v1 = vmul.f32 %v4162_v59, %v4150_v21 }
 0x900   :  { %v4164_v60 = vpop.eup %4163 }
 0x901   :  { %v1007_v0 = vmul.f32 %v4164_v60, %v4156_v27  ;;  %v1011_v3 = vpack.c.bf16 %v1009_v62, %v1008_v1 }
 0x903   :  { %v1010_v2 = vpack.c.bf16 %v1007_v0, %v1006_v63  ;;  %v3462_v0 = vld [vmem:[%s5167_s8] ss:$0 sm:$0xff] }
 0x905   :  { %3795 = vmatprep.mubr.msk.bf16.mxu1 %vm77_vm0, %v1010_v2 }
 0x906   :  { %3796 = vmatmul.mubr.msk.bf16.vlgmr.msra.gmra.mrb[12].mxu1 %vm77_vm0, %v1011_v3 }
 0x907   :  { %3800 = vmatpush3.bf16.msra.mxu1 %v1082_v30 }
 0x92a   :  { %v1208_v4 = vpop.xlane.xlu1 %1207 }
 0x92b   :  { %v1218_v10 = vsub.f32 %v1192_v37, %v1208_v4 }
 0x92c   :  { %v1211_v5 = vpop.xlane.xlu0 %1210 }
 0x92d   :  { %v1219_v6 = vsub.f32 %v1195_v42, %v1211_v5  ;;  %v1222_v17 = vmul.f32 1.442695, %v1218_v10 }
 0x92e   :  { %v1217_v8 = vpop.xlane.xlu1 %1216 }
 0x92f   :  { %v1221_v11 = vsub.f32 %v1203_v40, %v1217_v8  ;;  %v1224_v12 = vmul.f32 1.442695, %v1219_v6 }
 0x930   :  { %v1214_v13 = vpop.xlane.xlu0 %1213 }
 0x931   :  { %v1228_v15 = vmul.f32 1.442695, %v1221_v11  ;;  %v1220_v16 = vsub.f32 %v1200_v46, %v1214_v13 }
 0x933   :  { %4165 = vpow2.f32 %v1228_v15  ;;  %v1226_v18 = vmul.f32 1.442695, %v1220_v16 }
 0x934   :  { %4167 = vpow2.f32 %v1224_v12 }
 0x935   :  { %4169 = vpow2.f32 %v1226_v18 }
 0x936   :  { %4171 = vpow2.f32 %v1222_v17 }
 0x93d   :  { %v4166_v21 = vpop.eup %4165 }
 0x93e   :  { %v4168_v22 = vpop.eup %4167  ;;  %v1239_v23 = vsel %vm77_vm0, %v4166_v21, 0.0 }
 0x93f   :  { %v4170_v24 = vpop.eup %4169  ;;  %1240 = vadd.xlane.f32.xlu1 %v1239_v23  ;;  %v1233_v27 = vsel %vm77_vm0, %v4168_v22, 0.0 }
 0x940   :  { %v1236_v25 = vsel %vm77_vm0, %v4170_v24, 0.0  ;;  %v4172_v26 = vpop.eup %4171 }
 0x941   :  { %1237 = vadd.xlane.f32.xlu0 %v1236_v25  ;;  %v1230_v28 = vsel %vm77_vm0, %v4172_v26, 0.0 }
 0x943   :  { %1234 = vadd.xlane.f32.xlu1 %v1233_v27 }
 0x945   :  { %1231 = vadd.xlane.f32.xlu0 %v1230_v28 }
 0x954   :  { %1254 = vrot.lane.b32.xlu1 %v4515_v19, %s4344_s17 }
 0x95b   :  { %1252 = vrot.lane.b32.xlu0 %v4517_v20, %s4344_s17 }
 0x9cc   :  { %v1241_v31 = vpop.xlane.xlu1 %1240 }
 0x9ce   :  { %v1238_v32 = vpop.xlane.xlu0 %1237 }
 0x9d0   :  { %v1235_v33 = vpop.xlane.xlu1 %1234 }
 0x9d1   :  { %4173 = vrcp.f32 %v1235_v33 }
 0x9d2   :  { %v1232_v34 = vpop.xlane.xlu0 %1231 }
 0x9d3   :  { %4175 = vrcp.f32 %v1232_v34 }
 0x9d4   :  { %4177 = vrcp.f32 %v1238_v32  ;;  %v1255_v50 = vpop.permute.xlu1 %1254 }
 0x9d5   :  { %4179 = vrcp.f32 %v1241_v31 }
 0x9d6   :  { %v1253_v19 = vpop.permute.xlu0 %1252 }
 0x9d7   :  { %3813 = vmatprep.subr.bf16.mxu1 %v1253_v19 }
 0x9d9   :  { %v3797_v35 = vpop.f32.mrb[12].mxu1 }
 0x9da   :  { %v1058_v36 = vpop.f32.mrb[13].mxu1 }
 0x9db   :  { %v4174_v37 = vpop.eup %4173  ;;  %v3798_v38 = vpop.f32.mrb[14].mxu1 }
 0x9dc   :  { %v1074_v39 = vpack.c.bf16 %v3798_v38, %v3797_v35  ;;  %v1061_v40 = vpop.f32.mrb[15].mxu1  ;;  %v1247_v20 = vmul.f32 %v4174_v37, %v4168_v22  ;;  %v4079_v37 = vld [vmem:[%s5168_s9] sm:$0xff]   ;;  %v4080_v38 = vld [vmem:[%s5168_s9 + $0x8] sm:$0xff]  }
 0x9dd   :  { %v4176_v42 = vpop.eup %4175  ;;  %v1073_v44 = vpack.c.bf16 %v1061_v40, %v1058_v36  ;;  %3827 = vmatprep.subr.bf16.mxu0 %v4079_v37 }
 0x9de   :  { %v1246_v46 = vmul.f32 %v4176_v42, %v4172_v26  ;;  %v4178_v47 = vpop.eup %4177  ;;  %3828 = vmatpush3.bf16.msra.mxu0 %v4079_v37 }
 0x9df   :  { %3801 = vmatprep.mubr.msk.bf16.mxu1 %vm417_vm1, %v1073_v44  ;;  %v4180_v49 = vpop.eup %4179  ;;  %v1248_v51 = vmul.f32 %v4178_v47, %v4170_v24  ;;  %3829 = vmatprep.subr.bf16.mxu0 %v4080_v38 }
 0x9e0   :  { %3802 = vmatmul.mubr.msk.bf16.vlgmr.msra.gmra.mrb[4].mxu1 %vm417_vm1, %v1074_v39  ;;  %v1250_v48 = vpack.c.bf16 %v1247_v20, %v1246_v46  ;;  %v1249_v54 = vmul.f32 %v4180_v49, %v4166_v21 }
 0x9e1   :  { %3814 = vmatpush3.bf16.msra.mxu1 %v1253_v19 }
 0x9e2   :  { %3815 = vmatprep.subr.bf16.mxu1 %v1255_v50  ;;  %3817 = vmatprep.mubr.msk.bf16.mxu1 %vm77_vm0, %v1250_v48  ;;  %v1251_v55 = vpack.c.bf16 %v1249_v54, %v1248_v51 }
 0x9e3   :  { %3830 = vmatpush3.bf16.msra.mxu0 %v4080_v38 }
 0x9e5   :  { %3816 = vmatpush3.bf16.msra.mxu1 %v1255_v50 }
 0x9e6   :  { %4047 = vmatprep.subr.msk.bf16.mxu1 %vm594_vm6, %v407_v53 }
 0x9e8   :  { %3818 = vmatmul.mubr.msk.bf16.vlgmr.msra.gmra.mrb[16].mxu1 %vm77_vm0, %v1251_v55  ;;  %v3481_v55 = vld [vmem:[%s5163_s4 + $0x4a] ss:$0 sm:$0xff] }
 0x9e9   :  { %3822 = vmatpush3.bf16.msra.mxu1 %v1322_v56 }
 0xabb   :  { %v3819_v57 = vpop.f32.mrb[16].mxu1 }
 0xabc   :  { %v1298_v58 = vpop.f32.mrb[17].mxu1 }
 0xabd   :  { %v3820_v59 = vpop.f32.mrb[18].mxu1 }
 0xabe   :  { %v1314_v60 = vpack.c.bf16 %v3820_v59, %v3819_v57  ;;  %v1301_v62 = vpop.f32.mrb[19].mxu1 }
 0xabf   :  { %v1313_v63 = vpack.c.bf16 %v1301_v62, %v1298_v58 }
 0xac1   :  { %3823 = vmatprep.mubr.msk.bf16.mxu1 %vm417_vm1, %v1313_v63 }
 0xac2   :  { %3824 = vmatmul.mubr.msk.bf16.vlgmr.msra.gmra.mrb[4].mxu1 %vm417_vm1, %v1314_v60  ;;  %v3482_v60 = vld [vmem:[%s5163_s4 + $0x4b] ss:$0 sm:$0xff] }
 0xb95   :  { %v3825_v1 = vpop.f32.mrb[4].mxu1 }
 0xb96   :  { %v1358_v2 = vpop.f32.mrb[5].mxu1  ;;  %v4004_v8 = vadd.f32 %v3825_v1, %v3462_v0 }
 0xb97   :  { %v4005_v3 = vadd.f32 %v3462_v0, %v1358_v2  ;;  %v3826_v4 = vpop.f32.mrb[6].mxu1 }
 0xb98   :  { %v4006_v5 = vadd.f32 %v3826_v4, %v3462_v0  ;;  %v1361_v6 = vpop.f32.mrb[7].mxu1  ;;  %v4715_v16 = vadd.f32 %v4004_v8, %v4475_v7 }
 0xb99   :  { %v4704_v10 = vadd.f32 %v4005_v3, %v4465_v61  ;;  %v4007_v11 = vadd.f32 %v3462_v0, %v1361_v6 }
 0xb9a   :  { %v4707_v12 = vadd.f32 %v4006_v5, %v4486_v14  ;;  %v1389_v14 = vsel %vm77_vm0, %v4715_v16, 0.0 }
 0xb9b   :  { %v4710_v13 = vadd.f32 %v4007_v11, %v4477_v9  ;;  %v1383_v15 = vsel %vm77_vm0, %v4704_v10, 0.0 }
 0xb9c   :  { %1384 = vadd.xlane.f32.xlu1 %v1383_v15  ;;  %v1392_v61 = vsel %vm77_vm0, %v4707_v12, 0.0 }
 0xb9d   :  { %v1386_v17 = vsel %vm77_vm0, %v4710_v13, 0.0 }
 0xb9e   :  { %1387 = vadd.xlane.f32.xlu0 %v1386_v17 }
 0xba0   :  { %1393 = vadd.xlane.f32.xlu1 %v1392_v61  ;;  %v4081_v61 = vld [vmem:[%s5170_s11] sm:$0xff]  }
 0xba1   :  { %3835 = vmatprep.subr.bf16.mxu1 %v4081_v61 }
 0xba2   :  { %1390 = vadd.xlane.f32.xlu0 %v1389_v14  ;;  %3836 = vmatpush3.bf16.msra.mxu1 %v4081_v61  ;;  %v4082_v14 = vld [vmem:[%s5170_s11 + $0x8] sm:$0xff]  }
 0xba3   :  { %3837 = vmatprep.subr.bf16.mxu1 %v4082_v14 }
 0xba6   :  { %3838 = vmatpush3.bf16.msra.mxu1 %v4082_v14 }
 0xc29   :  { %v1385_v9 = vpop.xlane.xlu1 %1384 }
 0xc2a   :  { %v1395_v18 = vmul.f32 0.03125, %v1385_v9  ;;  %v4083_v9 = vld [vmem:[%s5170_s11 + $0x10] sm:$0xff]  }
 0xc2b   :  { %v1388_v21 = vpop.xlane.xlu0 %1387  ;;  %3839 = vmatprep.subr.bf16.mxu1 %v4083_v9 }
 0xc2c   :  { %v1399_v22 = vsub.f32 %v4704_v10, %v1395_v18  ;;  %v1396_v23 = vmul.f32 0.03125, %v1388_v21  ;;  %3840 = vmatpush3.bf16.msra.mxu1 %v4083_v9  ;;  %v4084_v18 = vld [vmem:[%s5170_s11 + $0x18] sm:$0xff]   ;;  %v4085_v21 = vld [vmem:[%s5170_s11 + $0x20] sm:$0xff]  }
 0xc2d   :  { %v1394_v7 = vpop.xlane.xlu1 %1393  ;;  %3841 = vmatprep.subr.bf16.mxu1 %v4084_v18 }
 0xc2e   :  { %v1400_v24 = vsub.f32 %v4710_v13, %v1396_v23  ;;  %v1398_v25 = vmul.f32 0.03125, %v1394_v7  ;;  %v1403_v26 = vmul.f32 %v1399_v22, %v1399_v22  ;;  %v4087_v23 = vld [vmem:[%s5170_s11 + $0x30] sm:$0xff]   ;;  %v4088_v7 = vld [vmem:[%s5170_s11 + $0x38] sm:$0xff]  }
 0xc2f   :  { %v1391_v27 = vpop.xlane.xlu0 %1390 }
 0xc30   :  { %v1402_v28 = vsub.f32 %v4707_v12, %v1398_v25  ;;  %v1397_v29 = vmul.f32 0.03125, %v1391_v27  ;;  %v1407_v30 = vsel %vm77_vm0, %v1403_v26, 0.0  ;;  %v1404_v31 = vmul.f32 %v1400_v24, %v1400_v24  ;;  %3842 = vmatpush3.bf16.msra.mxu1 %v4084_v18 }
 0xc31   :  { %1408 = vadd.xlane.f32.xlu0 %v1407_v30  ;;  %3843 = vmatprep.subr.bf16.mxu1 %v4085_v21 }
 0xc32   :  { %v1401_v32 = vsub.f32 %v4715_v16, %v1397_v29  ;;  %v1410_v33 = vsel %vm77_vm0, %v1404_v31, 0.0  ;;  %v1406_v34 = vmul.f32 %v1402_v28, %v1402_v28 }
 0xc33   :  { %1411 = vadd.xlane.f32.xlu1 %v1410_v33 }
 0xc34   :  { %v1405_v19 = vmul.f32 %v1401_v32, %v1401_v32  ;;  %v1416_v35 = vsel %vm77_vm0, %v1406_v34, 0.0  ;;  %3844 = vmatpush3.bf16.msra.mxu1 %v4085_v21 }
 0xc36   :  { %v1413_v36 = vsel %vm77_vm0, %v1405_v19, 0.0 }
 0xc37   :  { %1417 = vadd.xlane.f32.xlu1 %v1416_v35  ;;  %1414 = vadd.xlane.f32.xlu0 %v1413_v36 }
 0xcbe   :  { %v1409_v39 = vpop.xlane.xlu0 %1408 }
 0xcbf   :  { %v1419_v40 = vmul.f32 0.03125, %v1409_v39 }
 0xcc0   :  { %v1412_v42 = vpop.xlane.xlu1 %1411 }
 0xcc1   :  { %v1423_v44 = vadd.f32 1e-05, %v1419_v40  ;;  %v1420_v46 = vmul.f32 0.03125, %v1412_v42 }
 0xcc3   :  { %4181 = vrsqrt.f32 %v1423_v44  ;;  %v1424_v20 = vadd.f32 1e-05, %v1420_v46 }
 0xcc4   :  { %v1418_v47 = vpop.xlane.xlu1 %1417  ;;  %v1415_v48 = vpop.xlane.xlu0 %1414 }
 0xcc5   :  { %4183 = vrsqrt.f32 %v1424_v20  ;;  %v1422_v49 = vmul.f32 0.03125, %v1418_v47  ;;  %v1421_v50 = vmul.f32 0.03125, %v1415_v48 }
 0xcc7   :  { %v1426_v51 = vadd.f32 1e-05, %v1422_v49  ;;  %v1425_v53 = vadd.f32 1e-05, %v1421_v50 }
 0xcc9   :  { %4185 = vrsqrt.f32 %v1426_v51 }
 0xcca   :  { %4187 = vrsqrt.f32 %v1425_v53 }
 0xccd   :  { %v4182_v54 = vpop.eup %4181 }
 0xcce   :  { %v1431_v56 = vmul.f32 %v4182_v54, %v1399_v22  ;;  %v4086_v22 = vld [vmem:[%s5170_s11 + $0x28] sm:$0xff]  }
 0xccf   :  { %v4184_v57 = vpop.eup %4183  ;;  %3845 = vmatprep.subr.bf16.mxu1 %v4086_v22 }
 0xcd0   :  { %v1432_v58 = vmul.f32 %v4184_v57, %v1400_v24  ;;  %v1439_v59 = vmul.f32 %v3481_v55, %v1431_v56  ;;  %3846 = vmatpush3.bf16.msra.mxu1 %v4086_v22  ;;  %v3483_v24 = vld [vmem:[%s5169_s10] ss:$0 sm:$0xff] }
 0xcd1   :  { %3847 = vmatprep.subr.bf16.mxu1 %v4087_v23 }
 0xcd2   :  { %v1440_v62 = vmul.f32 %v3481_v55, %v1432_v58  ;;  %v1447_v2 = vadd.f32 %v3482_v60, %v1439_v59 }
 0xcd3   :  { %v4186_v63 = vpop.eup %4185 }
 0xcd4   :  { %v4188_v0 = vpop.eup %4187  ;;  %v1434_v1 = vmul.f32 %v4186_v63, %v1402_v28  ;;  %v1448_v3 = vadd.f32 %v3482_v60, %v1440_v62  ;;  %3848 = vmatpush3.bf16.msra.mxu1 %v4087_v23 }
 0xcd5   :  { %v1433_v4 = vmul.f32 %v4188_v0, %v1401_v32  ;;  %3849 = vmatprep.subr.bf16.mxu1 %v4088_v7 }
 0xcd6   :  { %v1442_v5 = vmul.f32 %v3481_v55, %v1434_v1  ;;  %v1451_v6 = vpack.c.bf16 %v1448_v3, %v1447_v2 }
 0xcd7   :  { %v1441_v8 = vmul.f32 %v3481_v55, %v1433_v4 }
 0xcd8   :  { %3831 = vmatprep.mubr.msk.bf16.mxu0 %vm77_vm0, %v1451_v6  ;;  %v1450_v11 = vadd.f32 %v3482_v60, %v1442_v5  ;;  %3850 = vmatpush3.bf16.msra.mxu1 %v4088_v7 }
 0xcd9   :  { %v1449_v15 = vadd.f32 %v3482_v60, %v1441_v8 }
 0xcdb   :  { %v1452_v17 = vpack.c.bf16 %v1450_v11, %v1449_v15 }
 0xcdd   :  { %3832 = vmatmul.mubr.msk.bf16.vlgmr.msra.gmra.mrb[24].mxu0 %vm77_vm0, %v1452_v17 }
 0xdb0   :  { %v3833_v25 = vpop.f32.mrb[24].mxu0 }
 0xdb1   :  { %v4772_v26 = vadd.f32 %v3833_v25, %v3483_v24  ;;  %v1516_v27 = vpop.f32.mrb[25].mxu0 }
 0xdb2   :  { %v4774_v28 = vadd.f32 %v3483_v24, %v1516_v27  ;;  %v3834_v29 = vpop.f32.mrb[26].mxu0 }
 0xdb3   :  { %v4777_v30 = vmul.f32 0.70710677, %v4772_v26  ;;  %v4779_v31 = vadd.f32 %v3834_v29, %v3483_v24  ;;  %v1519_v32 = vpop.f32.mrb[27].mxu0 }
 0xdb4   :  { %v4782_v33 = vmul.f32 0.70710677, %v4774_v28  ;;  %v4784_v34 = vadd.f32 %v3483_v24, %v1519_v32 }
 0xdb5   :  { %v1545_v19 = vand.u32 2147483647, %v4777_v30  ;;  %v4788_v35 = vmul.f32 0.70710677, %v4779_v31  ;;  %vm1537_vm7 = vcmp.lt.f32.partialorder %v4777_v30, 0.0 }
 0xdb6   :  { %v1543_v36 = vand.u32 2147483647, %v4782_v33  ;;  %v4792_v37 = vmul.f32 0.70710677, %v4784_v34  ;;  %vm1535_vm8 = vcmp.lt.f32.partialorder %v4782_v33, 0.0 }
 0xdb7   :  { %v1549_v38 = vmul.f32 0.3275911, %v1545_v19  ;;  %v1546_v40 = vand.u32 2147483647, %v4788_v35  ;;  %v1597_v50 = vsub.f32 0.0, %v1545_v19  ;;  %vm1538_vm9 = vcmp.lt.f32.partialorder %v4788_v35, 0.0 }
 0xdb8   :  { %v1547_v39 = vmul.f32 0.3275911, %v1543_v36  ;;  %v1544_v44 = vand.u32 2147483647, %v4792_v37  ;;  %v1595_v51 = vsub.f32 0.0, %v1543_v36  ;;  %vm1536_vm10 = vcmp.lt.f32.partialorder %v4792_v37, 0.0 }
 0xdb9   :  { %v1553_v42 = vadd.f32 1.0, %v1549_v38  ;;  %v1550_v20 = vmul.f32 0.3275911, %v1546_v40  ;;  %v1601_v54 = vmul.f32 %v1597_v50, %v1545_v19  ;;  %v1598_v55 = vsub.f32 0.0, %v1546_v40 }
 0xdba   :  { %v1551_v46 = vadd.f32 1.0, %v1547_v39  ;;  %v1548_v47 = vmul.f32 0.3275911, %v1544_v44  ;;  %v1599_v58 = vmul.f32 %v1595_v51, %v1543_v36  ;;  %v1596_v60 = vsub.f32 0.0, %v1544_v44 }
 0xdbb   :  { %4189 = vrcp.f32 %v1553_v42  ;;  %v1554_v48 = vadd.f32 1.0, %v1550_v20  ;;  %v1607_v0 = vmul.f32 1.442695, %v1601_v54  ;;  %v1602_v2 = vmul.f32 %v1598_v55, %v1546_v40 }
 0xdbc   :  { %4191 = vrcp.f32 %v1551_v46  ;;  %v1552_v49 = vadd.f32 1.0, %v1548_v47  ;;  %v1603_v4 = vmul.f32 1.442695, %v1599_v58  ;;  %v1600_v11 = vmul.f32 %v1596_v60, %v1544_v44 }
 0xdbd   :  { %4193 = vrcp.f32 %v1554_v48  ;;  %v1609_v9 = vmul.f32 1.442695, %v1602_v2  ;;  %v1624_v37 = vmul.f32 0.5, %v4784_v34 }
 0xdbe   :  { %4195 = vrcp.f32 %v1552_v49  ;;  %v1605_v7 = vmul.f32 1.442695, %v1600_v11 }
 0xdbf   :  { %4197 = vpow2.f32 %v1607_v0  ;;  %v4345_v0 = vmov 1.0  }
 0xdc0   :  { %4199 = vpow2.f32 %v1603_v4  ;;  %v1539_v4 = vsel %vm1535_vm8, -1.0, %v4345_v0 }
 0xdc1   :  { %4201 = vpow2.f32 %v1609_v9 }
 0xdc2   :  { %4203 = vpow2.f32 %v1605_v7 }
 0xdc5   :  { %v4190_v53 = vpop.eup %4189 }
 0xdc6   :  { %v4192_v56 = vpop.eup %4191  ;;  %v1561_v57 = vmul.f32 1.0614054, %v4190_v53 }
 0xdc7   :  { %v1559_v59 = vmul.f32 1.0614054, %v4192_v56  ;;  %v4194_v63 = vpop.eup %4193 }
 0xdc8   :  { %v1565_v62 = vadd.f32 -1.4531521, %v1561_v57  ;;  %v1562_v5 = vmul.f32 1.0614054, %v4194_v63  ;;  %v4196_v6 = vpop.eup %4195 }
 0xdc9   :  { %v1563_v1 = vadd.f32 -1.4531521, %v1559_v59  ;;  %v1560_v61 = vmul.f32 1.0614054, %v4196_v6  ;;  %v4198_v48 = vpop.eup %4197 }
 0xdca   :  { %v1569_v3 = vmul.f32 %v4190_v53, %v1565_v62  ;;  %v1566_v17 = vadd.f32 -1.4531521, %v1562_v5  ;;  %v4200_v50 = vpop.eup %4199 }
 0xdcb   :  { %v1567_v8 = vmul.f32 %v4192_v56, %v1563_v1  ;;  %v1564_v22 = vadd.f32 -1.4531521, %v1560_v61  ;;  %v4202_v62 = vpop.eup %4201  ;;  %v1625_v61 = vmul.f32 0.5, %v4772_v26 }
 0xdcc   :  { %v1573_v15 = vadd.f32 1.4214138, %v1569_v3  ;;  %v1570_v21 = vmul.f32 %v4194_v63, %v1566_v17  ;;  %v4204_v30 = vpop.eup %4203 }
 0xdcd   :  { %v1571_v14 = vadd.f32 1.4214138, %v1567_v8  ;;  %v1568_v27 = vmul.f32 %v4196_v6, %v1564_v22 }
 0xdce   :  { %v1577_v18 = vmul.f32 %v4190_v53, %v1573_v15  ;;  %v1574_v25 = vadd.f32 1.4214138, %v1570_v21  ;;  %v1623_v21 = vmul.f32 0.5, %v4774_v28 }
 0xdcf   :  { %v1575_v23 = vmul.f32 %v4192_v56, %v1571_v14  ;;  %v1572_v36 = vadd.f32 1.4214138, %v1568_v27  ;;  %v1540_v14 = vsel %vm1536_vm10, -1.0, %v4345_v0 }
 0xdd0   :  { %v1581_v24 = vadd.f32 -0.28449672, %v1577_v18  ;;  %v1578_v19 = vmul.f32 %v4194_v63, %v1574_v25 }
 0xdd1   :  { %v1579_v29 = vadd.f32 -0.28449672, %v1575_v23  ;;  %v1576_v42 = vmul.f32 %v4196_v6, %v1572_v36 }
 0xdd2   :  { %v1585_v32 = vmul.f32 %v4190_v53, %v1581_v24  ;;  %v1582_v40 = vadd.f32 -0.28449672, %v1578_v19 }
 0xdd3   :  { %v1583_v38 = vmul.f32 %v4192_v56, %v1579_v29  ;;  %v1580_v47 = vadd.f32 -0.28449672, %v1576_v42 }
 0xdd4   :  { %v1589_v39 = vadd.f32 0.2548296, %v1585_v32  ;;  %v1586_v20 = vmul.f32 %v4194_v63, %v1582_v40 }
 0xdd5   :  { %v1587_v44 = vadd.f32 0.2548296, %v1583_v38  ;;  %v1584_v55 = vmul.f32 %v4196_v6, %v1580_v47 }
 0xdd6   :  { %v1593_v46 = vmul.f32 %v4190_v53, %v1589_v39  ;;  %v1590_v54 = vadd.f32 0.2548296, %v1586_v20  ;;  %v1541_v53 = vsel %vm1537_vm7, -1.0, %v4345_v0 }
 0xdd7   :  { %v1591_v49 = vmul.f32 %v4192_v56, %v1587_v44  ;;  %v1588_v60 = vadd.f32 0.2548296, %v1584_v55 }
 0xdd8   :  { %v1613_v51 = vmul.f32 %v4198_v48, %v1593_v46  ;;  %v1594_v59 = vmul.f32 %v4194_v63, %v1590_v54  ;;  %v1542_v63 = vsel %vm1538_vm9, -1.0, %v4345_v0 }
 0xdd9   :  { %v1611_v57 = vmul.f32 %v4200_v50, %v1591_v49  ;;  %v1592_v3 = vmul.f32 %v4196_v6, %v1588_v60  ;;  %v1626_v6 = vmul.f32 0.5, %v4779_v31  ;;  %v3496_v31 = vld [vmem:[%s5171_s12] ss:$0 sm:$0xff] }
 0xdda   :  { %v1617_v58 = vsub.f32 1.0, %v1613_v51  ;;  %v1614_v56 = vmul.f32 %v4202_v62, %v1594_v59 }
 0xddb   :  { %v1615_v1 = vsub.f32 1.0, %v1611_v57  ;;  %v1612_v33 = vmul.f32 %v4204_v30, %v1592_v3 }
 0xddc   :  { %v1621_v2 = vmul.f32 %v1617_v58, %v1541_v53  ;;  %v1618_v8 = vsub.f32 1.0, %v1614_v56 }
 0xddd   :  { %v1619_v5 = vmul.f32 %v1615_v1, %v1539_v4  ;;  %v1616_v17 = vsub.f32 1.0, %v1612_v33 }
 0xdde   :  { %v1629_v11 = vadd.f32 1.0, %v1621_v2  ;;  %v1622_v15 = vmul.f32 %v1618_v8, %v1542_v63  ;;  %v4090_v8 = vld [vmem:[%s5164_s5 + $0x18] sm:$0xff]  }
 0xddf   :  { %v1627_v35 = vadd.f32 1.0, %v1619_v5  ;;  %v1620_v18 = vmul.f32 %v1616_v17, %v1540_v14  ;;  %v4089_v5 = vld [vmem:[%s5164_s5 + $0x10] sm:$0xff]  }
 0xde0   :  { %v1630_v9 = vadd.f32 1.0, %v1622_v15  ;;  %v1633_v22 = vmul.f32 %v1629_v11, %v1625_v61  ;;  %3855 = vmatprep.subr.bf16.mxu0 %v4089_v5 }
 0xde1   :  { %v1628_v7 = vadd.f32 1.0, %v1620_v18  ;;  %v1631_v24 = vmul.f32 %v1627_v35, %v1623_v21  ;;  %3856 = vmatpush3.bf16.msra.mxu0 %v4089_v5 }
 0xde2   :  { %v1634_v23 = vmul.f32 %v1630_v9, %v1626_v6  ;;  %3857 = vmatprep.subr.bf16.mxu0 %v4090_v8 }
 0xde3   :  { %v1632_v27 = vmul.f32 %v1628_v7, %v1624_v37 }
 0xde4   :  { %v1636_v25 = vpack.c.bf16 %v1634_v23, %v1633_v22  ;;  %v3497_v23 = vld [vmem:[%s5163_s4 + $0x50] ss:$0 sm:$0xff] }
 0xde5   :  { %v1635_v29 = vpack.c.bf16 %v1632_v27, %v1631_v24  ;;  %3858 = vmatpush3.bf16.msra.mxu0 %v4090_v8 }
 0xde7   :  { %3851 = vmatprep.mubr.bf16.mxu1 %v1635_v29  ;;  %v3498_v29 = vld [vmem:[%s5163_s4 + $0x51] ss:$0 sm:$0xff] }
 0xde8   :  { %3852 = vmatmul.mubr.bf16.vlgmr.msra.gmra.mrb[20].mxu1 %v1636_v25 }
 0xebb   :  { %v3853_v26 = vpop.f32.mrb[20].mxu1 }
 0xebc   :  { %v1735_v32 = vpop.f32.mrb[21].mxu1  ;;  %v1752_v19 = vadd.f32 %v3853_v26, %v4715_v16 }
 0xebd   :  { %v1750_v28 = vadd.f32 %v1735_v32, %v4704_v10  ;;  %v3854_v36 = vpop.f32.mrb[22].mxu1 }
 0xebe   :  { %v1738_v38 = vpop.f32.mrb[23].mxu1  ;;  %v1753_v39 = vadd.f32 %v3854_v36, %v4707_v12  ;;  %v4817_v42 = vadd.f32 %v3496_v31, %v1752_v19 }
 0xebf   :  { %v4813_v34 = vadd.f32 %v3496_v31, %v1750_v28  ;;  %v1751_v40 = vadd.f32 %v1738_v38, %v4710_v13 }
 0xec0   :  { %v4823_v20 = vadd.f32 %v3496_v31, %v1753_v39  ;;  %v1773_v16 = vsel %vm77_vm0, %v4817_v42, 0.0 }
 0xec1   :  { %v4819_v44 = vadd.f32 %v3496_v31, %v1751_v40  ;;  %v1767_v46 = vsel %vm77_vm0, %v4813_v34, 0.0 }
 0xec2   :  { %1768 = vadd.xlane.f32.xlu0 %v1767_v46  ;;  %v1776_v12 = vsel %vm77_vm0, %v4823_v20, 0.0 }
 0xec3   :  { %v1770_v10 = vsel %vm77_vm0, %v4819_v44, 0.0 }
 0xec4   :  { %1771 = vadd.xlane.f32.xlu1 %v1770_v10 }
 0xec6   :  { %1774 = vadd.xlane.f32.xlu0 %v1773_v16 }
 0xec8   :  { %1777 = vadd.xlane.f32.xlu1 %v1776_v12 }
 0xf4f   :  { %v1769_v13 = vpop.xlane.xlu0 %1768 }
 0xf50   :  { %v1779_v47 = vmul.f32 0.03125, %v1769_v13  ;;  %v3504_v13 = vld [vmem:[%s5165_s6 + $0x1] ss:$0 sm:$0xff] }
 0xf51   :  { %v1772_v48 = vpop.xlane.xlu1 %1771 }
 0xf52   :  { %v1783_v49 = vsub.f32 %v4813_v34, %v1779_v47  ;;  %v1780_v50 = vmul.f32 0.03125, %v1772_v48 }
 0xf53   :  { %v1775_v51 = vpop.xlane.xlu0 %1774 }
 0xf54   :  { %v1784_v54 = vsub.f32 %v4819_v44, %v1780_v50  ;;  %v1781_v55 = vmul.f32 0.03125, %v1775_v51  ;;  %v1787_v57 = vmul.f32 %v1783_v49, %v1783_v49 }
 0xf55   :  { %v1778_v58 = vpop.xlane.xlu1 %1777 }
 0xf56   :  { %v1785_v59 = vsub.f32 %v4817_v42, %v1781_v55  ;;  %v1782_v60 = vmul.f32 0.03125, %v1778_v58  ;;  %v1791_v62 = vsel %vm77_vm0, %v1787_v57, 0.0  ;;  %v1788_v53 = vmul.f32 %v1784_v54, %v1784_v54 }
 0xf57   :  { %1792 = vadd.xlane.f32.xlu0 %v1791_v62 }
 0xf58   :  { %v1786_v1 = vsub.f32 %v4823_v20, %v1782_v60  ;;  %v1794_v2 = vsel %vm77_vm0, %v1788_v53, 0.0  ;;  %v1789_v56 = vmul.f32 %v1785_v59, %v1785_v59 }
 0xf59   :  { %1795 = vadd.xlane.f32.xlu1 %v1794_v2 }
 0xf5a   :  { %v1797_v3 = vsel %vm77_vm0, %v1789_v56, 0.0  ;;  %v1790_v30 = vmul.f32 %v1786_v1, %v1786_v1 }
 0xf5b   :  { %1798 = vadd.xlane.f32.xlu0 %v1797_v3 }
 0xf5c   :  { %v1800_v4 = vsel %vm77_vm0, %v1790_v30, 0.0 }
 0xf5d   :  { %1801 = vadd.xlane.f32.xlu1 %v1800_v4 }
 0xfe4   :  { %v1793_v33 = vpop.xlane.xlu0 %1792 }
 0xfe5   :  { %v1803_v63 = vmul.f32 0.03125, %v1793_v33 }
 0xfe6   :  { %v1796_v11 = vpop.xlane.xlu1 %1795 }
 0xfe7   :  { %v1807_v15 = vadd.f32 1e-05, %v1803_v63  ;;  %v1804_v17 = vmul.f32 0.03125, %v1796_v11 }
 0xfe8   :  { %v1799_v61 = vpop.xlane.xlu0 %1798 }
 0xfe9   :  { %4205 = vrsqrt.f32 %v1807_v15  ;;  %v1808_v14 = vadd.f32 1e-05, %v1804_v17  ;;  %v1805_v35 = vmul.f32 0.03125, %v1799_v61 }
 0xfea   :  { %v1802_v6 = vpop.xlane.xlu1 %1801 }
 0xfeb   :  { %4207 = vrsqrt.f32 %v1808_v14  ;;  %v1809_v9 = vadd.f32 1e-05, %v1805_v35  ;;  %v1806_v18 = vmul.f32 0.03125, %v1802_v6 }
 0xfed   :  { %4209 = vrsqrt.f32 %v1809_v9  ;;  %v1810_v21 = vadd.f32 1e-05, %v1806_v18 }
 0xfef   :  { %4211 = vrsqrt.f32 %v1810_v21 }
 0xff3   :  { %v4206_v22 = vpop.eup %4205 }
 0xff4   :  { %v1815_v37 = vmul.f32 %v4206_v22, %v1783_v49 }
 0xff5   :  { %v4208_v7 = vpop.eup %4207 }
 0xff6   :  { %v1816_v24 = vmul.f32 %v4208_v7, %v1784_v54  ;;  %v1823_v25 = vmul.f32 %v3497_v23, %v1815_v37 }
 0xff7   :  { %v4210_v27 = vpop.eup %4209 }
 0xff8   :  { %v1817_v26 = vmul.f32 %v4210_v27, %v1785_v59  ;;  %v1824_v31 = vmul.f32 %v3497_v23, %v1816_v24  ;;  %v1831_v36 = vadd.f32 %v3498_v29, %v1823_v25 }
 0xff9   :  { %v4212_v32 = vpop.eup %4211 }
 0xffa   :  { %v1825_v19 = vmul.f32 %v3497_v23, %v1817_v26  ;;  %v1818_v28 = vmul.f32 %v4212_v32, %v1786_v1  ;;  %v1832_v38 = vadd.f32 %v3498_v29, %v1824_v31 }
 0xffc   :  { %v1826_v39 = vmul.f32 %v3497_v23, %v1818_v28  ;;  %v1835_v40 = vpack.c.bf16 %v1832_v38, %v1831_v36  ;;  %v1833_v46 = vadd.f32 %v3498_v29, %v1825_v19 }
 0xffe   :  { %3859 = vmatprep.mubr.msk.bf16.mxu0 %vm77_vm0, %v1835_v40  ;;  %v1834_v10 = vadd.f32 %v3498_v29, %v1826_v39 }
0x1000   :  { %v1836_v16 = vpack.c.bf16 %v1834_v10, %v1833_v46 }
0x1002   :  { %3860 = vmatmul.mubr.msk.bf16.vlgmr.msra.gmra.mrb[28].mxu0 %vm77_vm0, %v1836_v16 }
0x10d5   :  { %v3861_v12 = vpop.f32.mrb[28].mxu0 }
0x10d6   :  { %v1902_v47 = vpop.f32.mrb[29].mxu0  ;;  %v1911_v49 = vadd.f32 %v3861_v12, %v3504_v13 }
0x10d7   :  { %v3862_v48 = vpop.f32.mrb[30].mxu0  ;;  %v1903_v54 = vadd.f32 %v3504_v13, %v1902_v47 }
0x10d8   :  { %v1914_v50 = vadd.f32 %v3862_v48, %v3504_v13  ;;  %v1905_v51 = vpop.f32.mrb[31].mxu0 }
0x10d9   :  { %v1906_v55 = vadd.f32 %v3504_v13, %v1905_v51 }
0x10da   :  { %v4856_v57 = vpack.c.bf16 %v1914_v50, %v1911_v49 }
0x10db   :  { %v4858_v58 = vpack.c.bf16 %v1906_v55, %v1903_v54 }
0x10dc   :  { %1930 = vrot.lane.b32.xlu1 %v4856_v57, %s4333_s27 }
0x10dd   :  { %1928 = vrot.lane.b32.xlu0 %v4858_v58, %s4333_s27  ;;  %3867 = vmatprep.mubr.msk.bf16.mxu0 %vm417_vm1, %v4858_v58 }
0x114e   :  { %v1931_v62 = vpop.permute.xlu1 %1930 }
0x114f   :  { %v1929_v59 = vpop.permute.xlu0 %1928  ;;  %v1942_v53 = vsel %vm417_vm1, %v1931_v62, 0 }
0x1150   :  { %v1939_v60 = vsel %vm417_vm1, %v1929_v59, 0  ;;  %4048 = vmatprep.subr.msk.bf16.mxu0 %vm417_vm1, %v1929_v59 }
0x1151   :  { %3864 = vmatpush3.bf16.xpose.msra.mxu0 %v1939_v60 }
0x1152   :  { %4049 = vmatprep.subr.msk.bf16.mxu0 %vm417_vm1, %v1931_v62 }
0x1159   :  { %3866 = vmatpush3.bf16.xpose.msra.mxu0 %v1942_v53 }
0x1160   :  { %3868 = vmatmul.mubr.msk.bf16.vlgmr.msra.gmra.mrb[32].mxu0 %vm417_vm1, %v4856_v57 }
0x1233   :  { %v3869_v1 = vpop.f32.mrb[32].mxu0 }
0x1234   :  { %v1978_v2 = vpop.f32.mrb[33].mxu0  ;;  %v1987_v33 = vadd.f32 %v3869_v1, %v4562_v43 }
0x1235   :  { %v1979_v56 = vadd.f32 %v1978_v2, %v4560_v41  ;;  %v3870_v3 = vpop.f32.mrb[34].mxu0 }
0x1236   :  { %v1981_v30 = vpop.f32.mrb[35].mxu0  ;;  %v1990_v4 = vadd.f32 %v3870_v3, %v4570_v52  ;;  %v1999_v15 = vsel %vm77_vm0, %v1987_v33, -inf }
0x1237   :  { %v1982_v5 = vadd.f32 %v1981_v30, %v4564_v45  ;;  %v1993_v8 = vsel %vm77_vm0, %v1979_v56, -inf }
0x1238   :  { %1994 = vmax.xlane.f32.xlu1 %v1993_v8  ;;  %v2002_v11 = vsel %vm77_vm0, %v1990_v4, -inf  ;;  %v3509_v8 = vld [vmem:[%s5166_s7 + $0x10] sm:$0xf] }
0x1239   :  { %v1996_v63 = vsel %vm77_vm0, %v1982_v5, -inf  ;;  %4050 = vmatprep.subr.msk.bf16.mxu1 %vm594_vm6, %v3509_v8 }
0x123a   :  { %1997 = vmax.xlane.f32.xlu0 %v1996_v63 }
0x123c   :  { %2003 = vmax.xlane.f32.xlu1 %v2002_v11 }
0x123e   :  { %2000 = vmax.xlane.f32.xlu0 %v1999_v15 }
0x124d   :  { %2041 = vrot.lane.b32.xlu1 %v4856_v57, %s4337_s1 }
0x12c5   :  { %v1995_v17 = vpop.xlane.xlu1 %1994 }
0x12c6   :  { %v2005_v6 = vsub.f32 %v1979_v56, %v1995_v17 }
0x12c7   :  { %v1998_v61 = vpop.xlane.xlu0 %1997 }
0x12c8   :  { %v2006_v14 = vsub.f32 %v1982_v5, %v1998_v61  ;;  %v2009_v37 = vmul.f32 1.442695, %v2005_v6 }
0x12c9   :  { %v2004_v35 = vpop.xlane.xlu1 %2003 }
0x12ca   :  { %v2008_v9 = vsub.f32 %v1990_v4, %v2004_v35  ;;  %v2011_v18 = vmul.f32 1.442695, %v2006_v14 }
0x12cb   :  { %v2001_v21 = vpop.xlane.xlu0 %2000 }
0x12cc   :  { %v2015_v22 = vmul.f32 1.442695, %v2008_v9  ;;  %v2007_v23 = vsub.f32 %v1987_v33, %v2001_v21  ;;  %v2109_v33 = vsel %vm594_vm6, %v3509_v8, 0 }
0x12cd   :  { %v2042_v28 = vpop.permute.xlu1 %2041  ;;  %3880 = vmatpush3.bf16.msra.mxu1 %v2109_v33 }
0x12ce   :  { %4213 = vpow2.f32 %v2015_v22  ;;  %v2013_v7 = vmul.f32 1.442695, %v2007_v23 }
0x12cf   :  { %4215 = vpow2.f32 %v2011_v18 }
0x12d0   :  { %4217 = vpow2.f32 %v2013_v7 }
0x12d1   :  { %4219 = vpow2.f32 %v2009_v37 }
0x12d8   :  { %v4214_v24 = vpop.eup %4213 }
0x12d9   :  { %v4216_v25 = vpop.eup %4215  ;;  %v2026_v27 = vsel %vm77_vm0, %v4214_v24, 0.0 }
0x12da   :  { %v4218_v29 = vpop.eup %4217  ;;  %2027 = vadd.xlane.f32.xlu1 %v2026_v27  ;;  %v2020_v32 = vsel %vm77_vm0, %v4216_v25, 0.0 }
0x12db   :  { %v2023_v26 = vsel %vm77_vm0, %v4218_v29, 0.0  ;;  %v4220_v31 = vpop.eup %4219 }
0x12dc   :  { %2024 = vadd.xlane.f32.xlu0 %v2023_v26  ;;  %v2017_v19 = vsel %vm77_vm0, %v4220_v31, 0.0 }
0x12de   :  { %2021 = vadd.xlane.f32.xlu1 %v2020_v32 }
0x12e0   :  { %2018 = vadd.xlane.f32.xlu0 %v2017_v19 }
0x12ef   :  { %2174 = vrot.lane.b32.xlu1 %v4858_v58, %s4334_s28 }
0x12f3   :  { %2176 = vrot.lane.b32.xlu1 %v4856_v57, %s4334_s28 }
0x12f6   :  { %2039 = vrot.lane.b32.xlu0 %v4858_v58, %s4337_s1 }
0x12f7   :  { %2172 = vrot.lane.b32.xlu1 %v4856_v57, %s4335_s29 }
0x12fa   :  { %2170 = vrot.lane.b32.xlu0 %v4858_v58, %s4335_s29 }
0x12fb   :  { %2416 = vrot.lane.b32.xlu1 %v4856_v57, %s4338_s2 }
0x12fe   :  { %2414 = vrot.lane.b32.xlu0 %v4858_v58, %s4338_s2 }
0x12ff   :  { %2412 = vrot.lane.b32.xlu1 %v4856_v57, %s4339_s23 }
0x1302   :  { %2410 = vrot.lane.b32.xlu0 %v4858_v58, %s4339_s23 }
0x1367   :  { %v2028_v36 = vpop.xlane.xlu1 %2027 }
0x1369   :  { %v2025_v38 = vpop.xlane.xlu0 %2024 }
0x136a   :  { %4221 = vrcp.f32 %v2025_v38 }
0x136b   :  { %v2022_v39 = vpop.xlane.xlu1 %2021 }
0x136c   :  { %4223 = vrcp.f32 %v2022_v39 }
0x136d   :  { %4225 = vrcp.f32 %v2028_v36  ;;  %v2019_v40 = vpop.xlane.xlu0 %2018 }
0x136e   :  { %4227 = vrcp.f32 %v2019_v40 }
0x136f   :  { %v2175_v13 = vpop.permute.xlu1 %2174 }
0x1370   :  { %v2185_v60 = vsel %vm417_vm1, %v2175_v13, 0 }
0x1371   :  { %v2040_v46 = vpop.permute.xlu0 %2039 }
0x1372   :  { %3871 = vmatprep.subr.bf16.mxu0 %v2040_v46 }
0x1373   :  { %3872 = vmatpush3.bf16.msra.mxu0 %v2040_v46  ;;  %v2177_v62 = vpop.permute.xlu1 %2176 }
0x1374   :  { %3873 = vmatprep.subr.bf16.mxu0 %v2042_v28  ;;  %v4222_v10 = vpop.eup %4221  ;;  %v2188_v53 = vsel %vm417_vm1, %v2177_v62, 0 }
0x1375   :  { %v2035_v48 = vmul.f32 %v4222_v10, %v4218_v29  ;;  %v2171_v59 = vpop.permute.xlu0 %2170 }
0x1376   :  { %v4224_v16 = vpop.eup %4223 }
0x1377   :  { %v4226_v12 = vpop.eup %4225  ;;  %3874 = vmatpush3.bf16.msra.mxu0 %v2042_v28  ;;  %v2034_v50 = vmul.f32 %v4224_v16, %v4216_v25  ;;  %v2173_v2 = vpop.permute.xlu1 %2172 }
0x1378   :  { %v4228_v47 = vpop.eup %4227  ;;  %4051 = vmatprep.subr.msk.bf16.mxu0 %vm417_vm1, %v2175_v13  ;;  %v2036_v51 = vmul.f32 %v4226_v12, %v4214_v24 }
0x1379   :  { %v2033_v49 = vmul.f32 %v4228_v47, %v4220_v31  ;;  %v2415_v1 = vpop.permute.xlu0 %2414 }
0x137a   :  { %v2038_v55 = vpack.c.bf16 %v2036_v51, %v2035_v48  ;;  %v2425_v56 = vsel %vm417_vm1, %v2415_v1, 0 }
0x137b   :  { %v2037_v54 = vpack.c.bf16 %v2034_v50, %v2033_v49  ;;  %v2417_v30 = vpop.permute.xlu1 %2416 }
0x137c   :  { %v2428_v4 = vsel %vm417_vm1, %v2417_v30, 0 }
0x137d   :  { %3875 = vmatprep.mubr.msk.bf16.mxu0 %vm77_vm0, %v2037_v54  ;;  %v2411_v3 = vpop.permute.xlu0 %2410 }
0x137e   :  { %3876 = vmatmul.mubr.msk.bf16.vlgmr.msra.gmra.mrb[36].mxu0 %vm77_vm0, %v2038_v55 }
0x137f   :  { %3889 = vmatprep.mubr.msk.bf16.mxu0 %vm417_vm1, %v2171_v59  ;;  %v2413_v5 = vpop.permute.xlu1 %2412 }
0x1380   :  { %3886 = vmatpush3.bf16.xpose.msra.mxu0 %v2185_v60 }
0x1381   :  { %4052 = vmatprep.subr.msk.bf16.mxu0 %vm417_vm1, %v2177_v62 }
0x1388   :  { %3888 = vmatpush3.bf16.xpose.msra.mxu0 %v2188_v53 }
0x1389   :  { %4054 = vmatprep.subr.msk.bf16.mxu0 %vm417_vm1, %v2415_v1 }
0x138f   :  { %3890 = vmatmul.mubr.msk.bf16.vlgmr.msra.gmra.mrb[40].mxu0 %vm417_vm1, %v2173_v2 }
0x1390   :  { %3908 = vmatpush3.bf16.xpose.msra.mxu0 %v2425_v56  ;;  %3911 = vmatprep.mubr.msk.bf16.mxu0 %vm417_vm1, %v2411_v3 }
0x1391   :  { %4055 = vmatprep.subr.msk.bf16.mxu0 %vm417_vm1, %v2417_v30 }
0x1398   :  { %3910 = vmatpush3.bf16.xpose.msra.mxu0 %v2428_v4 }
0x139f   :  { %3912 = vmatmul.mubr.msk.bf16.vlgmr.msra.gmra.mrb[44].mxu0 %vm417_vm1, %v2413_v5 }
0x1451   :  { %v3877_v63 = vpop.f32.mrb[36].mxu0 }
0x1452   :  { %v2085_v11 = vpop.f32.mrb[37].mxu0 }
0x1453   :  { %v3878_v15 = vpop.f32.mrb[38].mxu0 }
0x1454   :  { %v2101_v17 = vpack.c.bf16 %v3878_v15, %v3877_v63  ;;  %v2088_v61 = vpop.f32.mrb[39].mxu0 }
0x1455   :  { %v2100_v14 = vpack.c.bf16 %v2088_v61, %v2085_v11 }
0x1457   :  { %3881 = vmatprep.mubr.msk.bf16.mxu1 %vm417_vm1, %v2100_v14 }
0x1458   :  { %3882 = vmatmul.mubr.msk.bf16.vlgmr.msra.gmra.mrb[24].mxu1 %vm417_vm1, %v2101_v17 }
0x1462   :  { %v3891_v35 = vpop.f32.mrb[40].mxu0 }
0x1463   :  { %v2224_v6 = vpop.f32.mrb[41].mxu0  ;;  %v2233_v22 = vadd.f32 %v3891_v35, %v4562_v43 }
0x1464   :  { %v2225_v9 = vadd.f32 %v2224_v6, %v4560_v41  ;;  %v3892_v18 = vpop.f32.mrb[42].mxu0 }
0x1465   :  { %v2227_v21 = vpop.f32.mrb[43].mxu0  ;;  %v2236_v24 = vadd.f32 %v3892_v18, %v4570_v52  ;;  %v2245_v25 = vsel %vm77_vm0, %v2233_v22, -inf }
0x1466   :  { %v2228_v23 = vadd.f32 %v2227_v21, %v4564_v45  ;;  %v2239_v37 = vsel %vm77_vm0, %v2225_v9, -inf }
0x1467   :  { %2240 = vmax.xlane.f32.xlu0 %v2239_v37  ;;  %v2248_v27 = vsel %vm77_vm0, %v2236_v24, -inf }
0x1468   :  { %v2242_v7 = vsel %vm77_vm0, %v2228_v23, -inf }
0x1469   :  { %2243 = vmax.xlane.f32.xlu1 %v2242_v7 }
0x146b   :  { %2246 = vmax.xlane.f32.xlu0 %v2245_v25 }
0x146f   :  { %2249 = vmax.xlane.f32.xlu0 %v2248_v27 }
0x1472   :  { %v3913_v29 = vpop.f32.mrb[44].mxu0 }
0x1473   :  { %v2464_v26 = vpop.f32.mrb[45].mxu0  ;;  %v2473_v53 = vadd.f32 %v3913_v29, %v4562_v43 }
0x1474   :  { %v3914_v31 = vpop.f32.mrb[46].mxu0  ;;  %v2465_v62 = vadd.f32 %v2464_v26, %v4560_v41 }
0x1475   :  { %v2467_v32 = vpop.f32.mrb[47].mxu0  ;;  %v2476_v2 = vadd.f32 %v3914_v31, %v4570_v52  ;;  %v2485_v56 = vsel %vm77_vm0, %v2473_v53, -inf }
0x1476   :  { %v2479_v1 = vsel %vm77_vm0, %v2465_v62, -inf  ;;  %v2468_v3 = vadd.f32 %v2467_v32, %v4564_v45 }
0x1477   :  { %v2488_v30 = vsel %vm77_vm0, %v2476_v2, -inf }
0x1478   :  { %v2482_v4 = vsel %vm77_vm0, %v2468_v3, -inf }
0x14f4   :  { %v2241_v19 = vpop.xlane.xlu0 %2240 }
0x14f5   :  { %v2251_v28 = vsub.f32 %v2225_v9, %v2241_v19 }
0x14f6   :  { %v2244_v36 = vpop.xlane.xlu1 %2243 }
0x14f7   :  { %v2255_v40 = vmul.f32 1.442695, %v2251_v28  ;;  %v2252_v46 = vsub.f32 %v2228_v23, %v2244_v36 }
0x14f8   :  { %v2247_v38 = vpop.xlane.xlu0 %2246 }
0x14f9   :  { %v2253_v39 = vsub.f32 %v2233_v22, %v2247_v38  ;;  %v2257_v13 = vmul.f32 1.442695, %v2252_v46 }
0x14fb   :  { %v2259_v10 = vmul.f32 1.442695, %v2253_v39 }
0x14fc   :  { %v2250_v16 = vpop.xlane.xlu0 %2249 }
0x14fd   :  { %4229 = vpow2.f32 %v2259_v10  ;;  %v2254_v12 = vsub.f32 %v2236_v24, %v2250_v16 }
0x14fe   :  { %4231 = vpow2.f32 %v2255_v40 }
0x14ff   :  { %v2261_v47 = vmul.f32 1.442695, %v2254_v12 }
0x1501   :  { %4233 = vpow2.f32 %v2261_v47 }
0x1502   :  { %4235 = vpow2.f32 %v2257_v13 }
0x1507   :  { %v4230_v48 = vpop.eup %4229 }
0x1508   :  { %v2269_v49 = vsel %vm77_vm0, %v4230_v48, 0.0  ;;  %v4232_v50 = vpop.eup %4231 }
0x1509   :  { %2270 = vadd.xlane.f32.xlu0 %v2269_v49  ;;  %v2263_v54 = vsel %vm77_vm0, %v4232_v50, 0.0 }
0x150b   :  { %v4234_v51 = vpop.eup %4233 }
0x150c   :  { %v2272_v55 = vsel %vm77_vm0, %v4234_v51, 0.0  ;;  %v4236_v59 = vpop.eup %4235 }
0x150d   :  { %2264 = vadd.xlane.f32.xlu0 %v2263_v54  ;;  %2273 = vadd.xlane.f32.xlu1 %v2272_v55  ;;  %v2266_v60 = vsel %vm77_vm0, %v4236_v59, 0.0  ;;  %v3510_v55 = vld [vmem:[%s5166_s7 + $0x14] sm:$0xf] }
0x1511   :  { %2267 = vadd.xlane.f32.xlu1 %v2266_v60 }
0x1522   :  { %2287 = vrot.lane.b32.xlu1 %v4856_v57, %s4340_s25 }
0x1523   :  { %2285 = vrot.lane.b32.xlu0 %v4858_v58, %s4340_s25 }
0x1526   :  { %2654 = vrot.lane.b32.xlu1 %v4858_v58, %s4341_s26 }
0x1527   :  { %2650 = vrot.lane.b32.xlu0 %v4858_v58, %s4342_s30 }
0x152a   :  { %2656 = vrot.lane.b32.xlu1 %v4856_v57, %s4341_s26 }
0x152e   :  { %2652 = vrot.lane.b32.xlu1 %v4856_v57, %s4342_s30 }
0x1546   :  { %2480 = vmax.xlane.f32.xlu0 %v2479_v1 }
0x154a   :  { %2486 = vmax.xlane.f32.xlu0 %v2485_v56 }
0x154e   :  { %2489 = vmax.xlane.f32.xlu0 %v2488_v30 }
0x1552   :  { %2483 = vmax.xlane.f32.xlu1 %v2482_v4 }
0x1596   :  { %v2271_v5 = vpop.xlane.xlu0 %2270 }
0x159a   :  { %v2265_v8 = vpop.xlane.xlu0 %2264  ;;  %v2274_v33 = vpop.xlane.xlu1 %2273 }
0x159b   :  { %4237 = vrcp.f32 %v2274_v33 }
0x159c   :  { %4239 = vrcp.f32 %v2265_v8 }
0x159d   :  { %4241 = vrcp.f32 %v2271_v5 }
0x159e   :  { %v2286_v63 = vpop.permute.xlu0 %2285  ;;  %v2268_v11 = vpop.xlane.xlu1 %2267 }
0x159f   :  { %4243 = vrcp.f32 %v2268_v11  ;;  %3893 = vmatprep.subr.bf16.mxu1 %v2286_v63 }
0x15a0   :  { %3894 = vmatpush3.bf16.msra.mxu1 %v2286_v63 }
0x15a2   :  { %v2651_v15 = vpop.permute.xlu0 %2650  ;;  %v2288_v17 = vpop.permute.xlu1 %2287 }
0x15a3   :  { %3895 = vmatprep.subr.bf16.mxu1 %v2288_v17  ;;  %3933 = vmatprep.mubr.msk.bf16.mxu0 %vm417_vm1, %v2651_v15 }
0x15a4   :  { %3896 = vmatpush3.bf16.msra.mxu1 %v2288_v17 }
0x15a5   :  { %v4238_v61 = vpop.eup %4237  ;;  %4053 = vmatprep.subr.msk.bf16.mxu1 %vm594_vm6, %v3510_v55 }
0x15a6   :  { %v2655_v14 = vpop.permute.xlu1 %2654  ;;  %v4240_v35 = vpop.eup %4239  ;;  %v2282_v21 = vmul.f32 %v4238_v61, %v4234_v51 }
0x15a7   :  { %v2665_v6 = vsel %vm417_vm1, %v2655_v14, 0  ;;  %4057 = vmatprep.subr.msk.bf16.mxu0 %vm417_vm1, %v2655_v14  ;;  %v4242_v9 = vpop.eup %4241  ;;  %v2279_v23 = vmul.f32 %v4240_v35, %v4232_v50 }
0x15a8   :  { %3930 = vmatpush3.bf16.xpose.msra.mxu0 %v2665_v6  ;;  %v2281_v7 = vmul.f32 %v4242_v9, %v4230_v48 }
0x15a9   :  { %v4244_v18 = vpop.eup %4243 }
0x15aa   :  { %v2657_v22 = vpop.permute.xlu1 %2656  ;;  %v2280_v37 = vmul.f32 %v4244_v18, %v4236_v59  ;;  %v2284_v25 = vpack.c.bf16 %v2282_v21, %v2281_v7  ;;  %v2355_v59 = vsel %vm594_vm6, %v3510_v55, 0 }
0x15ab   :  { %4058 = vmatprep.subr.msk.bf16.mxu0 %vm417_vm1, %v2657_v22  ;;  %v2668_v27 = vsel %vm417_vm1, %v2657_v22, 0 }
0x15ac   :  { %v2283_v24 = vpack.c.bf16 %v2280_v37, %v2279_v23 }
0x15ae   :  { %3897 = vmatprep.mubr.msk.bf16.mxu1 %vm77_vm0, %v2283_v24  ;;  %v2653_v29 = vpop.permute.xlu1 %2652 }
0x15af   :  { %3898 = vmatmul.mubr.msk.bf16.vlgmr.msra.gmra.mrb[28].mxu1 %vm77_vm0, %v2284_v25 }
0x15b0   :  { %3932 = vmatpush3.bf16.xpose.msra.mxu0 %v2668_v27  ;;  %3902 = vmatpush3.bf16.msra.mxu1 %v2355_v59 }
0x15b7   :  { %3934 = vmatmul.mubr.msk.bf16.vlgmr.msra.gmra.mrb[48].mxu0 %vm417_vm1, %v2653_v29 }
0x15d3   :  { %v2481_v26 = vpop.xlane.xlu0 %2480 }
0x15d4   :  { %v2491_v31 = vsub.f32 %v2465_v62, %v2481_v26 }
0x15d6   :  { %v2495_v28 = vmul.f32 1.442695, %v2491_v31 }
0x15d7   :  { %v2487_v32 = vpop.xlane.xlu0 %2486 }
0x15d8   :  { %v2493_v19 = vsub.f32 %v2473_v53, %v2487_v32 }
0x15da   :  { %v2499_v36 = vmul.f32 1.442695, %v2493_v19 }
0x15db   :  { %v2490_v38 = vpop.xlane.xlu0 %2489 }
0x15dc   :  { %4245 = vpow2.f32 %v2499_v36  ;;  %v2494_v39 = vsub.f32 %v2476_v2, %v2490_v38 }
0x15dd   :  { %4247 = vpow2.f32 %v2495_v28 }
0x15de   :  { %v2501_v40 = vmul.f32 1.442695, %v2494_v39 }
0x15df   :  { %v2484_v46 = vpop.xlane.xlu1 %2483 }
0x15e0   :  { %4249 = vpow2.f32 %v2501_v40  ;;  %v2492_v10 = vsub.f32 %v2468_v3, %v2484_v46 }
0x15e2   :  { %v2497_v16 = vmul.f32 1.442695, %v2492_v10 }
0x15e4   :  { %4251 = vpow2.f32 %v2497_v16 }
0x15e6   :  { %v4246_v12 = vpop.eup %4245 }
0x15e7   :  { %v2509_v13 = vsel %vm77_vm0, %v4246_v12, 0.0  ;;  %v4248_v47 = vpop.eup %4247 }
0x15e8   :  { %2510 = vadd.xlane.f32.xlu0 %v2509_v13  ;;  %v2503_v49 = vsel %vm77_vm0, %v4248_v47, 0.0 }
0x15ea   :  { %v4250_v48 = vpop.eup %4249 }
0x15eb   :  { %v2512_v50 = vsel %vm77_vm0, %v4250_v48, 0.0 }
0x15ec   :  { %2504 = vadd.xlane.f32.xlu0 %v2503_v49  ;;  %2513 = vadd.xlane.f32.xlu1 %v2512_v50 }
0x15ee   :  { %v4252_v51 = vpop.eup %4251 }
0x15ef   :  { %v2506_v54 = vsel %vm77_vm0, %v4252_v51, 0.0 }
0x15f0   :  { %2507 = vadd.xlane.f32.xlu1 %v2506_v54 }
0x1601   :  { %2527 = vrot.lane.b32.xlu1 %v4856_v57, %s4343_s16 }
0x1602   :  { %2525 = vrot.lane.b32.xlu0 %v4858_v58, %s4343_s16 }
0x1675   :  { %v2511_v60 = vpop.xlane.xlu0 %2510 }
0x1679   :  { %v2505_v62 = vpop.xlane.xlu0 %2504  ;;  %v2514_v53 = vpop.xlane.xlu1 %2513 }
0x167a   :  { %4253 = vrcp.f32 %v2505_v62 }
0x167b   :  { %4255 = vrcp.f32 %v2514_v53 }
0x167d   :  { %v2526_v1 = vpop.permute.xlu0 %2525  ;;  %v2508_v2 = vpop.xlane.xlu1 %2507 }
0x167e   :  { %4257 = vrcp.f32 %v2508_v2  ;;  %3915 = vmatprep.subr.bf16.mxu1 %v2526_v1 }
0x167f   :  { %4259 = vrcp.f32 %v2511_v60 }
0x1681   :  { %v2528_v14 = vpop.permute.xlu1 %2527 }
0x1682   :  { %v3899_v56 = vpop.f32.mrb[28].mxu1 }
0x1683   :  { %v2331_v3 = vpop.f32.mrb[29].mxu1 }
0x1684   :  { %v3900_v30 = vpop.f32.mrb[30].mxu1  ;;  %v4254_v8 = vpop.eup %4253 }
0x1685   :  { %v2347_v4 = vpack.c.bf16 %v3900_v30, %v3899_v56  ;;  %v2334_v5 = vpop.f32.mrb[31].mxu1  ;;  %v4256_v63 = vpop.eup %4255  ;;  %v2519_v15 = vmul.f32 %v4254_v8, %v4248_v47  ;;  %v3512_v8 = vld [vmem:[%s5166_s7 + $0x1c] sm:$0xf] }
0x1686   :  { %v2346_v33 = vpack.c.bf16 %v2334_v5, %v2331_v3  ;;  %v2522_v6 = vmul.f32 %v4256_v63, %v4250_v48 }
0x1688   :  { %v4258_v11 = vpop.eup %4257  ;;  %3903 = vmatprep.mubr.msk.bf16.mxu1 %vm417_vm1, %v2346_v33 }
0x1689   :  { %3904 = vmatmul.mubr.msk.bf16.vlgmr.msra.gmra.mrb[24].mxu1 %vm417_vm1, %v2347_v4  ;;  %v2520_v17 = vmul.f32 %v4258_v11, %v4252_v51  ;;  %v4260_v61 = vpop.eup %4259 }
0x168a   :  { %3916 = vmatpush3.bf16.msra.mxu1 %v2526_v1  ;;  %v3935_v35 = vpop.f32.mrb[48].mxu0  ;;  %v2521_v23 = vmul.f32 %v4260_v61, %v4246_v12 }
0x168b   :  { %3917 = vmatprep.subr.bf16.mxu1 %v2528_v14  ;;  %v2704_v9 = vpop.f32.mrb[49].mxu0  ;;  %v2523_v18 = vpack.c.bf16 %v2520_v17, %v2519_v15  ;;  %v2713_v29 = vadd.f32 %v3935_v35, %v4562_v43 }
0x168c   :  { %v2705_v21 = vadd.f32 %v2704_v9, %v4560_v41  ;;  %v3936_v22 = vpop.f32.mrb[50].mxu0  ;;  %v2524_v27 = vpack.c.bf16 %v2522_v6, %v2521_v23  ;;  %v2835_v9 = vsel %vm594_vm6, %v3512_v8, 0 }
0x168d   :  { %3919 = vmatprep.mubr.msk.bf16.mxu1 %vm77_vm0, %v2523_v18  ;;  %v2707_v37 = vpop.f32.mrb[51].mxu0  ;;  %v2716_v7 = vadd.f32 %v3936_v22, %v4570_v52  ;;  %v2725_v31 = vsel %vm77_vm0, %v2713_v29, -inf }
0x168e   :  { %3918 = vmatpush3.bf16.msra.mxu1 %v2528_v14  ;;  %v2708_v24 = vadd.f32 %v2707_v37, %v4564_v45  ;;  %v2719_v25 = vsel %vm77_vm0, %v2705_v21, -inf  ;;  %v3511_v45 = vld [vmem:[%s5166_s7 + $0x18] sm:$0xf] }
0x168f   :  { %2720 = vmax.xlane.f32.xlu1 %v2719_v25  ;;  %v2728_v41 = vsel %vm77_vm0, %v2716_v7, -inf  ;;  %4056 = vmatprep.subr.msk.bf16.mxu1 %vm594_vm6, %v3511_v45  ;;  %v2595_v52 = vsel %vm594_vm6, %v3511_v45, 0 }
0x1690   :  { %v2722_v26 = vsel %vm77_vm0, %v2708_v24, -inf }
0x1691   :  { %2723 = vmax.xlane.f32.xlu0 %v2722_v26  ;;  %3920 = vmatmul.mubr.msk.bf16.vlgmr.msra.gmra.mrb[32].mxu1 %vm77_vm0, %v2524_v27 }
0x1692   :  { %3924 = vmatpush3.bf16.msra.mxu1 %v2595_v52 }
0x1693   :  { %2729 = vmax.xlane.f32.xlu1 %v2728_v41 }
0x1695   :  { %2726 = vmax.xlane.f32.xlu0 %v2725_v31 }
0x171c   :  { %v2721_v43 = vpop.xlane.xlu1 %2720 }
0x171d   :  { %v2731_v36 = vsub.f32 %v2705_v21, %v2721_v43 }
0x171e   :  { %v2724_v32 = vpop.xlane.xlu0 %2723 }
0x171f   :  { %v2732_v19 = vsub.f32 %v2708_v24, %v2724_v32  ;;  %v2735_v16 = vmul.f32 1.442695, %v2731_v36  ;;  %v3520_v24 = vld [vmem:[%s5167_s8 + $0x1] ss:$0 sm:$0xff] }
0x1720   :  { %v2730_v28 = vpop.xlane.xlu1 %2729 }
0x1721   :  { %v2734_v38 = vsub.f32 %v2716_v7, %v2730_v28  ;;  %v2737_v39 = vmul.f32 1.442695, %v2732_v19 }
0x1722   :  { %v2727_v40 = vpop.xlane.xlu0 %2726 }
0x1723   :  { %v2741_v46 = vmul.f32 1.442695, %v2734_v38  ;;  %v2733_v10 = vsub.f32 %v2713_v29, %v2727_v40 }
0x1725   :  { %4261 = vpow2.f32 %v2741_v46  ;;  %v2739_v12 = vmul.f32 1.442695, %v2733_v10 }
0x1726   :  { %4263 = vpow2.f32 %v2737_v39 }
0x1727   :  { %4265 = vpow2.f32 %v2739_v12 }
0x1728   :  { %4267 = vpow2.f32 %v2735_v16 }
0x172f   :  { %v4262_v13 = vpop.eup %4261 }
0x1730   :  { %v4264_v47 = vpop.eup %4263  ;;  %v2752_v48 = vsel %vm77_vm0, %v4262_v13, 0.0 }
0x1731   :  { %v4266_v49 = vpop.eup %4265  ;;  %2753 = vadd.xlane.f32.xlu1 %v2752_v48  ;;  %v2746_v54 = vsel %vm77_vm0, %v4264_v47, 0.0 }
0x1732   :  { %v2749_v50 = vsel %vm77_vm0, %v4266_v49, 0.0  ;;  %v4268_v51 = vpop.eup %4267 }
0x1733   :  { %2750 = vadd.xlane.f32.xlu0 %v2749_v50  ;;  %v2743_v55 = vsel %vm77_vm0, %v4268_v51, 0.0 }
0x1735   :  { %2747 = vadd.xlane.f32.xlu1 %v2746_v54 }
0x1737   :  { %2744 = vadd.xlane.f32.xlu0 %v2743_v55 }
0x1746   :  { %2767 = vrot.lane.b32.xlu1 %v4856_v57, %s4344_s17 }
0x174d   :  { %2765 = vrot.lane.b32.xlu0 %v4858_v58, %s4344_s17 }
0x1764   :  { %v3921_v59 = vpop.f32.mrb[32].mxu1 }
0x1765   :  { %v2571_v60 = vpop.f32.mrb[33].mxu1 }
0x1766   :  { %v3922_v62 = vpop.f32.mrb[34].mxu1 }
0x1767   :  { %v2587_v53 = vpack.c.bf16 %v3922_v62, %v3921_v59  ;;  %v2574_v1 = vpop.f32.mrb[35].mxu1 }
0x1768   :  { %v2586_v2 = vpack.c.bf16 %v2574_v1, %v2571_v60  ;;  %v4091_v1 = vld [vmem:[%s5168_s9 + $0x10] sm:$0xff]  }
0x1769   :  { %3951 = vmatprep.subr.bf16.mxu0 %v4091_v1 }
0x176a   :  { %3925 = vmatprep.mubr.msk.bf16.mxu1 %vm417_vm1, %v2586_v2  ;;  %v4092_v2 = vld [vmem:[%s5168_s9 + $0x18] sm:$0xff]   ;;  %3952 = vmatpush3.bf16.msra.mxu0 %v4091_v1 }
0x176b   :  { %3926 = vmatmul.mubr.msk.bf16.vlgmr.msra.gmra.mrb[24].mxu1 %vm417_vm1, %v2587_v53  ;;  %3953 = vmatprep.subr.bf16.mxu0 %v4092_v2 }
0x176e   :  { %3954 = vmatpush3.bf16.msra.mxu0 %v4092_v2 }
0x17be   :  { %v2754_v56 = vpop.xlane.xlu1 %2753 }
0x17c0   :  { %v2751_v3 = vpop.xlane.xlu0 %2750 }
0x17c1   :  { %4269 = vrcp.f32 %v2751_v3 }
0x17c2   :  { %v2748_v30 = vpop.xlane.xlu1 %2747 }
0x17c3   :  { %4271 = vrcp.f32 %v2748_v30 }
0x17c4   :  { %4273 = vrcp.f32 %v2754_v56  ;;  %v2745_v57 = vpop.xlane.xlu0 %2744 }
0x17c5   :  { %4275 = vrcp.f32 %v2745_v57 }
0x17c6   :  { %v2768_v58 = vpop.permute.xlu1 %2767 }
0x17c8   :  { %v2766_v4 = vpop.permute.xlu0 %2765 }
0x17c9   :  { %3937 = vmatprep.subr.bf16.mxu1 %v2766_v4 }
0x17ca   :  { %3938 = vmatpush3.bf16.msra.mxu1 %v2766_v4 }
0x17cb   :  { %3939 = vmatprep.subr.bf16.mxu1 %v2768_v58  ;;  %v4270_v5 = vpop.eup %4269 }
0x17cc   :  { %v2761_v15 = vmul.f32 %v4270_v5, %v4266_v49 }
0x17cd   :  { %v4272_v33 = vpop.eup %4271 }
0x17ce   :  { %v4274_v63 = vpop.eup %4273  ;;  %3940 = vmatpush3.bf16.msra.mxu1 %v2768_v58  ;;  %v2760_v61 = vmul.f32 %v4272_v33, %v4264_v47 }
0x17cf   :  { %v4276_v11 = vpop.eup %4275  ;;  %4059 = vmatprep.subr.msk.bf16.mxu1 %vm594_vm6, %v3512_v8  ;;  %v2762_v14 = vmul.f32 %v4274_v63, %v4262_v13 }
0x17d0   :  { %v2759_v17 = vmul.f32 %v4276_v11, %v4268_v51 }
0x17d1   :  { %v2764_v6 = vpack.c.bf16 %v2762_v14, %v2761_v15 }
0x17d2   :  { %v2763_v35 = vpack.c.bf16 %v2760_v61, %v2759_v17  ;;  %v3539_v61 = vld [vmem:[%s5163_s4 + $0x52] ss:$0 sm:$0xff] }
0x17d4   :  { %3941 = vmatprep.mubr.msk.bf16.mxu1 %vm77_vm0, %v2763_v35 }
0x17d5   :  { %3942 = vmatmul.mubr.msk.bf16.vlgmr.msra.gmra.mrb[36].mxu1 %vm77_vm0, %v2764_v6 }
0x17d6   :  { %3946 = vmatpush3.bf16.msra.mxu1 %v2835_v9 }
0x18a8   :  { %v3943_v18 = vpop.f32.mrb[36].mxu1 }
0x18a9   :  { %v2811_v21 = vpop.f32.mrb[37].mxu1 }
0x18aa   :  { %v3944_v22 = vpop.f32.mrb[38].mxu1 }
0x18ab   :  { %v2827_v23 = vpack.c.bf16 %v3944_v22, %v3943_v18  ;;  %v2814_v37 = vpop.f32.mrb[39].mxu1  ;;  %v3540_v18 = vld [vmem:[%s5163_s4 + $0x53] ss:$0 sm:$0xff] }
0x18ac   :  { %v2826_v7 = vpack.c.bf16 %v2814_v37, %v2811_v21 }
0x18ae   :  { %3947 = vmatprep.mubr.msk.bf16.mxu1 %vm417_vm1, %v2826_v7 }
0x18af   :  { %3948 = vmatmul.mubr.msk.bf16.vlgmr.msra.gmra.mrb[24].mxu1 %vm417_vm1, %v2827_v23  ;;  %vm3426_vm1 = vcmask 257024  }
0x1982   :  { %v3949_v25 = vpop.f32.mrb[24].mxu1 }
0x1983   :  { %v2871_v27 = vpop.f32.mrb[25].mxu1  ;;  %v4008_v45 = vadd.f32 %v3949_v25, %v3520_v24 }
0x1984   :  { %v4009_v29 = vadd.f32 %v3520_v24, %v2871_v27  ;;  %v3950_v26 = vpop.f32.mrb[26].mxu1 }
0x1985   :  { %v4010_v41 = vadd.f32 %v3950_v26, %v3520_v24  ;;  %v2874_v31 = vpop.f32.mrb[27].mxu1  ;;  %v5029_v36 = vadd.f32 %v4008_v45, %v4817_v42 }
0x1986   :  { %v5018_v52 = vadd.f32 %v4009_v29, %v4813_v34  ;;  %v4011_v43 = vadd.f32 %v3520_v24, %v2874_v31 }
0x1987   :  { %v5021_v32 = vadd.f32 %v4010_v41, %v4823_v20  ;;  %v2902_v20 = vsel %vm77_vm0, %v5029_v36, 0.0 }
0x1988   :  { %v5024_v19 = vadd.f32 %v4011_v43, %v4819_v44  ;;  %v2896_v28 = vsel %vm77_vm0, %v5018_v52, 0.0  ;;  %v4093_v43 = vld [vmem:[%s5170_s11 + $0x40] sm:$0xff]  }
0x1989   :  { %2897 = vadd.xlane.f32.xlu1 %v2896_v28  ;;  %v2905_v34 = vsel %vm77_vm0, %v5021_v32, 0.0  ;;  %3959 = vmatprep.subr.bf16.mxu1 %v4093_v43  ;;  %v4094_v28 = vld [vmem:[%s5170_s11 + $0x48] sm:$0xff]  }
0x198a   :  { %v2899_v38 = vsel %vm77_vm0, %v5024_v19, 0.0  ;;  %3960 = vmatpush3.bf16.msra.mxu1 %v4093_v43 }
0x198b   :  { %2900 = vadd.xlane.f32.xlu0 %v2899_v38  ;;  %3961 = vmatprep.subr.bf16.mxu1 %v4094_v28  ;;  %v4095_v38 = vld [vmem:[%s5170_s11 + $0x50] sm:$0xff]  }
0x198d   :  { %2906 = vadd.xlane.f32.xlu1 %v2905_v34  ;;  %v4096_v34 = vld [vmem:[%s5170_s11 + $0x58] sm:$0xff]  }
0x198e   :  { %3962 = vmatpush3.bf16.msra.mxu1 %v4094_v28 }
0x198f   :  { %2903 = vadd.xlane.f32.xlu0 %v2902_v20  ;;  %3963 = vmatprep.subr.bf16.mxu1 %v4095_v38  ;;  %v4097_v20 = vld [vmem:[%s5170_s11 + $0x60] sm:$0xff]  }
0x1992   :  { %3964 = vmatpush3.bf16.msra.mxu1 %v4095_v38 }
0x1993   :  { %3965 = vmatprep.subr.bf16.mxu1 %v4096_v34 }
0x1996   :  { %3966 = vmatpush3.bf16.msra.mxu1 %v4096_v34 }
0x1997   :  { %3967 = vmatprep.subr.bf16.mxu1 %v4097_v20 }
0x199a   :  { %3968 = vmatpush3.bf16.msra.mxu1 %v4097_v20 }
0x1a16   :  { %v2898_v44 = vpop.xlane.xlu1 %2897 }
0x1a17   :  { %v2908_v39 = vmul.f32 0.03125, %v2898_v44  ;;  %v4098_v44 = vld [vmem:[%s5170_s11 + $0x68] sm:$0xff]  }
0x1a18   :  { %v2901_v40 = vpop.xlane.xlu0 %2900  ;;  %3969 = vmatprep.subr.bf16.mxu1 %v4098_v44 }
0x1a19   :  { %v2912_v46 = vsub.f32 %v5018_v52, %v2908_v39  ;;  %v2909_v10 = vmul.f32 0.03125, %v2901_v40  ;;  %3970 = vmatpush3.bf16.msra.mxu1 %v4098_v44  ;;  %v4099_v39 = vld [vmem:[%s5170_s11 + $0x70] sm:$0xff]   ;;  %v4100_v40 = vld [vmem:[%s5170_s11 + $0x78] sm:$0xff]  }
0x1a1a   :  { %v2907_v42 = vpop.xlane.xlu1 %2906  ;;  %3971 = vmatprep.subr.bf16.mxu1 %v4099_v39 }
0x1a1b   :  { %v2913_v16 = vsub.f32 %v5024_v19, %v2909_v10  ;;  %v2911_v12 = vmul.f32 0.03125, %v2907_v42  ;;  %v2916_v13 = vmul.f32 %v2912_v46, %v2912_v46 }
0x1a1c   :  { %v2904_v47 = vpop.xlane.xlu0 %2903 }
0x1a1d   :  { %v2915_v48 = vsub.f32 %v5021_v32, %v2911_v12  ;;  %v2910_v49 = vmul.f32 0.03125, %v2904_v47  ;;  %v2920_v50 = vsel %vm77_vm0, %v2916_v13, 0.0  ;;  %v2917_v51 = vmul.f32 %v2913_v16, %v2913_v16  ;;  %3972 = vmatpush3.bf16.msra.mxu1 %v4099_v39 }
0x1a1e   :  { %2921 = vadd.xlane.f32.xlu0 %v2920_v50  ;;  %3973 = vmatprep.subr.bf16.mxu1 %v4100_v40 }
0x1a1f   :  { %v2914_v54 = vsub.f32 %v5029_v36, %v2910_v49  ;;  %v2923_v55 = vsel %vm77_vm0, %v2917_v51, 0.0  ;;  %v2919_v59 = vmul.f32 %v2915_v48, %v2915_v48 }
0x1a20   :  { %2924 = vadd.xlane.f32.xlu1 %v2923_v55 }
0x1a21   :  { %v2918_v60 = vmul.f32 %v2914_v54, %v2914_v54  ;;  %v2929_v62 = vsel %vm77_vm0, %v2919_v59, 0.0  ;;  %3974 = vmatpush3.bf16.msra.mxu1 %v4100_v40 }
0x1a23   :  { %v2926_v53 = vsel %vm77_vm0, %v2918_v60, 0.0 }
0x1a24   :  { %2930 = vadd.xlane.f32.xlu1 %v2929_v62  ;;  %2927 = vadd.xlane.f32.xlu0 %v2926_v53 }
0x1aab   :  { %v2922_v56 = vpop.xlane.xlu0 %2921 }
0x1aac   :  { %v2932_v3 = vmul.f32 0.03125, %v2922_v56 }
0x1aad   :  { %v2925_v30 = vpop.xlane.xlu1 %2924 }
0x1aae   :  { %v2936_v57 = vadd.f32 1e-05, %v2932_v3  ;;  %v2933_v4 = vmul.f32 0.03125, %v2925_v30 }
0x1ab0   :  { %4277 = vrsqrt.f32 %v2936_v57  ;;  %v2937_v58 = vadd.f32 1e-05, %v2933_v4 }
0x1ab1   :  { %v2931_v5 = vpop.xlane.xlu1 %2930  ;;  %v2928_v8 = vpop.xlane.xlu0 %2927 }
0x1ab2   :  { %4279 = vrsqrt.f32 %v2937_v58  ;;  %v2935_v33 = vmul.f32 0.03125, %v2931_v5  ;;  %v2934_v63 = vmul.f32 0.03125, %v2928_v8 }
0x1ab4   :  { %v2939_v11 = vadd.f32 1e-05, %v2935_v33  ;;  %v2938_v15 = vadd.f32 1e-05, %v2934_v63 }
0x1ab6   :  { %4281 = vrsqrt.f32 %v2939_v11 }
0x1ab7   :  { %4283 = vrsqrt.f32 %v2938_v15 }
0x1aba   :  { %v4278_v17 = vpop.eup %4277 }
0x1abb   :  { %v2944_v14 = vmul.f32 %v4278_v17, %v2912_v46  ;;  %v3546_v46 = vld [vmem:[%s5169_s10 + $0x1] ss:$0 sm:$0xff] }
0x1abc   :  { %v4280_v35 = vpop.eup %4279 }
0x1abd   :  { %v2945_v6 = vmul.f32 %v4280_v35, %v2913_v16  ;;  %v2952_v9 = vmul.f32 %v3539_v61, %v2944_v14 }
0x1abf   :  { %v2953_v21 = vmul.f32 %v3539_v61, %v2945_v6  ;;  %v2960_v7 = vadd.f32 %v3540_v18, %v2952_v9 }
0x1ac0   :  { %v4282_v22 = vpop.eup %4281 }
0x1ac1   :  { %v4284_v23 = vpop.eup %4283  ;;  %v2947_v37 = vmul.f32 %v4282_v22, %v2915_v48  ;;  %v2961_v24 = vadd.f32 %v3540_v18, %v2953_v21 }
0x1ac2   :  { %v2946_v25 = vmul.f32 %v4284_v23, %v2914_v54 }
0x1ac3   :  { %v2955_v27 = vmul.f32 %v3539_v61, %v2947_v37  ;;  %v2964_v29 = vpack.c.bf16 %v2961_v24, %v2960_v7 }
0x1ac4   :  { %v2954_v26 = vmul.f32 %v3539_v61, %v2946_v25 }
0x1ac5   :  { %3955 = vmatprep.mubr.msk.bf16.mxu0 %vm77_vm0, %v2964_v29  ;;  %v2963_v41 = vadd.f32 %v3540_v18, %v2955_v27 }
0x1ac6   :  { %v2962_v31 = vadd.f32 %v3540_v18, %v2954_v26 }
0x1ac8   :  { %v2965_v45 = vpack.c.bf16 %v2963_v41, %v2962_v31 }
0x1aca   :  { %3956 = vmatmul.mubr.msk.bf16.vlgmr.msra.gmra.mrb[52].mxu0 %vm77_vm0, %v2965_v45 }
0x1b9d   :  { %v3957_v10 = vpop.f32.mrb[52].mxu0 }
0x1b9e   :  { %v5086_v42 = vadd.f32 %v3957_v10, %v3546_v46  ;;  %v3031_v16 = vpop.f32.mrb[53].mxu0 }
0x1b9f   :  { %v5088_v12 = vadd.f32 %v3546_v46, %v3031_v16  ;;  %v3958_v13 = vpop.f32.mrb[54].mxu0 }
0x1ba0   :  { %v5091_v47 = vmul.f32 0.70710677, %v5086_v42  ;;  %v5093_v48 = vadd.f32 %v3958_v13, %v3546_v46  ;;  %v3034_v49 = vpop.f32.mrb[55].mxu0 }
0x1ba1   :  { %v5096_v50 = vmul.f32 0.70710677, %v5088_v12  ;;  %v5098_v51 = vadd.f32 %v3546_v46, %v3034_v49 }
0x1ba2   :  { %v3060_v54 = vand.u32 2147483647, %v5091_v47  ;;  %v5102_v55 = vmul.f32 0.70710677, %v5093_v48  ;;  %vm3052_vm11 = vcmp.lt.f32.partialorder %v5091_v47, 0.0 }
0x1ba3   :  { %v3058_v59 = vand.u32 2147483647, %v5096_v50  ;;  %v5106_v60 = vmul.f32 0.70710677, %v5098_v51  ;;  %vm3050_vm12 = vcmp.lt.f32.partialorder %v5096_v50, 0.0 }
0x1ba4   :  { %v3064_v62 = vmul.f32 0.3275911, %v3060_v54  ;;  %v3061_v1 = vand.u32 2147483647, %v5102_v55  ;;  %v3112_v5 = vsub.f32 0.0, %v3060_v54  ;;  %vm3053_vm13 = vcmp.lt.f32.partialorder %v5102_v55, 0.0 }
0x1ba5   :  { %v3062_v53 = vmul.f32 0.3275911, %v3058_v59  ;;  %v3059_v56 = vand.u32 2147483647, %v5106_v60  ;;  %v3110_v8 = vsub.f32 0.0, %v3058_v59  ;;  %v3054_v47 = vsel %vm3050_vm12, -1.0, %v4345_v0 }
0x1ba6   :  { %v3068_v2 = vadd.f32 1.0, %v3064_v62  ;;  %v3065_v30 = vmul.f32 0.3275911, %v3061_v1  ;;  %v3116_v63 = vmul.f32 %v3112_v5, %v3060_v54  ;;  %v3113_v11 = vsub.f32 0.0, %v3061_v1 }
0x1ba7   :  { %v3066_v3 = vadd.f32 1.0, %v3062_v53  ;;  %v3063_v57 = vmul.f32 0.3275911, %v3059_v56  ;;  %v3114_v61 = vmul.f32 %v3110_v8, %v3058_v59  ;;  %v3111_v35 = vsub.f32 0.0, %v3059_v56 }
0x1ba8   :  { %4285 = vrcp.f32 %v3068_v2  ;;  %v3069_v4 = vadd.f32 1.0, %v3065_v30  ;;  %v3122_v18 = vmul.f32 1.442695, %v3116_v63  ;;  %v3117_v22 = vmul.f32 %v3113_v11, %v3061_v1 }
0x1ba9   :  { %4287 = vrcp.f32 %v3066_v3  ;;  %v3067_v58 = vadd.f32 1.0, %v3063_v57  ;;  %v3118_v37 = vmul.f32 1.442695, %v3114_v61  ;;  %v3115_v27 = vmul.f32 %v3111_v35, %v3059_v56 }
0x1baa   :  { %4289 = vrcp.f32 %v3069_v4  ;;  %v3124_v45 = vmul.f32 1.442695, %v3117_v22  ;;  %vm3051_vm14 = vcmp.lt.f32.partialorder %v5106_v60, 0.0  ;;  %v3057_v50 = vsel %vm3053_vm13, -1.0, %v4345_v0 }
0x1bab   :  { %4291 = vrcp.f32 %v3067_v58  ;;  %v3120_v20 = vmul.f32 1.442695, %v3115_v27  ;;  %v3055_v27 = vsel %vm3051_vm14, -1.0, %v4345_v0  ;;  %v3139_v60 = vmul.f32 0.5, %v5098_v51 }
0x1bac   :  { %4293 = vpow2.f32 %v3122_v18 }
0x1bad   :  { %4295 = vpow2.f32 %v3118_v37 }
0x1bae   :  { %4297 = vpow2.f32 %v3124_v45 }
0x1baf   :  { %4299 = vpow2.f32 %v3120_v20 }
0x1bb2   :  { %v4286_v33 = vpop.eup %4285 }
0x1bb3   :  { %v4288_v15 = vpop.eup %4287  ;;  %v3076_v17 = vmul.f32 1.0614054, %v4286_v33 }
0x1bb4   :  { %v3074_v14 = vmul.f32 1.0614054, %v4288_v15  ;;  %v4290_v9 = vpop.eup %4289 }
0x1bb5   :  { %v3080_v6 = vadd.f32 -1.4531521, %v3076_v17  ;;  %v3077_v7 = vmul.f32 1.0614054, %v4290_v9  ;;  %v4292_v24 = vpop.eup %4291 }
0x1bb6   :  { %v3078_v21 = vadd.f32 -1.4531521, %v3074_v14  ;;  %v3075_v41 = vmul.f32 1.0614054, %v4292_v24  ;;  %v4294_v3 = vpop.eup %4293  ;;  %v3056_v14 = vsel %vm3052_vm11, -1.0, %v4345_v0 }
0x1bb7   :  { %v3084_v23 = vmul.f32 %v4286_v33, %v3080_v6  ;;  %v3081_v26 = vadd.f32 -1.4531521, %v3077_v7  ;;  %v4296_v57 = vpop.eup %4295  ;;  %v3576_v0 = vld [vmem:[%s5171_s12 + $0x1] ss:$0 sm:$0xff] }
0x1bb8   :  { %v3082_v25 = vmul.f32 %v4288_v15, %v3078_v21  ;;  %v3079_v38 = vadd.f32 -1.4531521, %v3075_v41  ;;  %v4298_v61 = vpop.eup %4297  ;;  %v3138_v41 = vmul.f32 0.5, %v5088_v12 }
0x1bb9   :  { %v3088_v29 = vadd.f32 1.4214138, %v3084_v23  ;;  %v3085_v28 = vmul.f32 %v4290_v9, %v3081_v26  ;;  %v4300_v18 = vpop.eup %4299 }
0x1bba   :  { %v3086_v31 = vadd.f32 1.4214138, %v3082_v25  ;;  %v3083_v40 = vmul.f32 %v4292_v24, %v3079_v38  ;;  %v3140_v25 = vmul.f32 0.5, %v5086_v42 }
0x1bbb   :  { %v3092_v43 = vmul.f32 %v4286_v33, %v3088_v29  ;;  %v3089_v39 = vadd.f32 1.4214138, %v3085_v28 }
0x1bbc   :  { %v3090_v34 = vmul.f32 %v4288_v15, %v3086_v31  ;;  %v3087_v13 = vadd.f32 1.4214138, %v3083_v40 }
0x1bbd   :  { %v3096_v44 = vadd.f32 -0.28449672, %v3092_v43  ;;  %v3093_v16 = vmul.f32 %v4290_v9, %v3089_v39 }
0x1bbe   :  { %v3094_v46 = vadd.f32 -0.28449672, %v3090_v34  ;;  %v3091_v62 = vmul.f32 %v4292_v24, %v3087_v13 }
0x1bbf   :  { %v3100_v10 = vmul.f32 %v4286_v33, %v3096_v44  ;;  %v3097_v59 = vadd.f32 -0.28449672, %v3093_v16 }
0x1bc0   :  { %v3098_v49 = vmul.f32 %v4288_v15, %v3094_v46  ;;  %v3095_v56 = vadd.f32 -0.28449672, %v3091_v62 }
0x1bc1   :  { %v3104_v54 = vadd.f32 0.2548296, %v3100_v10  ;;  %v3101_v2 = vmul.f32 %v4290_v9, %v3097_v59 }
0x1bc2   :  { %v3102_v53 = vadd.f32 0.2548296, %v3098_v49  ;;  %v3099_v5 = vmul.f32 %v4292_v24, %v3095_v56 }
0x1bc3   :  { %v3108_v1 = vmul.f32 %v4286_v33, %v3104_v54  ;;  %v3105_v58 = vadd.f32 0.2548296, %v3101_v2 }
0x1bc4   :  { %v3106_v30 = vmul.f32 %v4288_v15, %v3102_v53  ;;  %v3103_v17 = vadd.f32 0.2548296, %v3099_v5 }
0x1bc5   :  { %v3128_v4 = vmul.f32 %v4294_v3, %v3108_v1  ;;  %v3109_v11 = vmul.f32 %v4290_v9, %v3105_v58 }
0x1bc6   :  { %v3126_v8 = vmul.f32 %v4296_v57, %v3106_v30  ;;  %v3107_v6 = vmul.f32 %v4292_v24, %v3103_v17  ;;  %v3141_v24 = vmul.f32 0.5, %v5093_v48 }
0x1bc7   :  { %v3132_v63 = vsub.f32 1.0, %v3128_v4  ;;  %v3129_v15 = vmul.f32 %v4298_v61, %v3109_v11 }
0x1bc8   :  { %v3130_v33 = vsub.f32 1.0, %v3126_v8  ;;  %v3127_v23 = vmul.f32 %v4300_v18, %v3107_v6 }
0x1bc9   :  { %v3136_v35 = vmul.f32 %v3132_v63, %v3056_v14  ;;  %v3133_v22 = vsub.f32 1.0, %v3129_v15  ;;  %v4348_v15 = vmov 0.0  }
0x1bca   :  { %v3134_v21 = vmul.f32 %v3130_v33, %v3054_v47  ;;  %v3131_v7 = vsub.f32 1.0, %v3127_v23  ;;  %3987 = vmatprep.mubr.msk.f32.mxu0 %vm4347_vm15, %v4348_v15 }
0x1bcb   :  { %v3144_v9 = vadd.f32 1.0, %v3136_v35  ;;  %v3137_v37 = vmul.f32 %v3133_v22, %v3057_v50  ;;  %v4346_v35 = vmov 0.0|0.0  }
0x1bcc   :  { %v3142_v55 = vadd.f32 1.0, %v3134_v21  ;;  %v3135_v26 = vmul.f32 %v3131_v7, %v3055_v27  ;;  %3998 = vmatprep.subr.bf16.mxu0 %v4346_v35 }
0x1bcd   :  { %v3145_v29 = vadd.f32 1.0, %v3137_v37  ;;  %v3148_v31 = vmul.f32 %v3144_v9, %v3140_v25 }
0x1bce   :  { %v3143_v43 = vadd.f32 1.0, %v3135_v26  ;;  %v3146_v28 = vmul.f32 %v3142_v55, %v3138_v41 }
0x1bcf   :  { %v3149_v45 = vmul.f32 %v3145_v29, %v3141_v24  ;;  %v3577_v24 = vld [vmem:[%s5163_s4 + $0x42] ss:$0 sm:$0xff] }
0x1bd0   :  { %v3147_v34 = vmul.f32 %v3143_v43, %v3139_v60  ;;  %v3578_v60 = vld [vmem:[%s5163_s4 + $0x43] ss:$0 sm:$0xff]  ;;  %s4349_s4 = smov [#allocation2]  }
0x1bd1   :  { %v3151_v38 = vpack.c.bf16 %v3149_v45, %v3148_v31  ;;  %s3434_s15 = sshll.u32 %s4349_s4, 4  ;;  %s3435_s15 = int_to_ptr.vmem [resolvable:$true] %s3434_s15 }
0x1bd2   :  { %v3150_v20 = vpack.c.bf16 %v3147_v34, %v3146_v28  ;;  %s4309_s18 = scalar_lea.vmem %s3435_s15, 64  ;;  %p4314_p1 = scmp.lt.s32.totalorder %s3435_s15, %s3435_s15 }
0x1bd3   :  { %p4310_p0 = scmp.ne.s32.totalorder %s3435_s15, %s4309_s18  ;;  %p4315_p2 = scmp.lt.s32.totalorder %s4309_s18, %s4309_s18 }
0x1bd4   :  { %3975 = vmatprep.mubr.bf16.mxu1 %v3150_v20 }
0x1bd5   :  { %3976 = vmatmul.mubr.bf16.vlgmr.msra.gmra.mrb[40].mxu1 %v3151_v38  ;;  %p4316_p3 = por %p4315_p2, %p4314_p1 }
0x1bd7   :  { %p4317_p4 = pnand %p4316_p3, %p4310_p0 }
0x1ca8   :  { %v3977_v42 = vpop.f32.mrb[40].mxu1 }
0x1ca9   :  { %v3251_v48 = vpop.f32.mrb[41].mxu1  ;;  %v3268_v44 = vadd.f32 %v3977_v42, %v5029_v36 }
0x1caa   :  { %v3266_v12 = vadd.f32 %v3251_v48, %v5018_v52  ;;  %v3978_v39 = vpop.f32.mrb[42].mxu1 }
0x1cab   :  { %v3254_v40 = vpop.f32.mrb[43].mxu1  ;;  %v3269_v46 = vadd.f32 %v3978_v39, %v5021_v32  ;;  %v3280_v16 = vadd.f32 %v3576_v0, %v3268_v44 }
0x1cac   :  { %v3278_v51 = vadd.f32 %v3576_v0, %v3266_v12  ;;  %v3267_v10 = vadd.f32 %v3254_v40, %v5024_v19 }
0x1cad   :  { %v3281_v54 = vadd.f32 %v3576_v0, %v3269_v46  ;;  %v3290_v36 = vsel %vm77_vm0, %v3280_v16, 0.0 }
0x1cae   :  { %v3279_v13 = vadd.f32 %v3576_v0, %v3267_v10  ;;  %v3284_v49 = vsel %vm77_vm0, %v3278_v51, 0.0 }
0x1caf   :  { %3285 = vadd.xlane.f32.xlu0 %v3284_v49  ;;  %v3293_v52 = vsel %vm77_vm0, %v3281_v54, 0.0 }
0x1cb0   :  { %v3287_v59 = vsel %vm77_vm0, %v3279_v13, 0.0 }
0x1cb1   :  { %3288 = vadd.xlane.f32.xlu1 %v3287_v59 }
0x1cb3   :  { %3291 = vadd.xlane.f32.xlu0 %v3290_v36 }
0x1cb5   :  { %3294 = vadd.xlane.f32.xlu1 %v3293_v52 }
0x1d3c   :  { %v3286_v62 = vpop.xlane.xlu0 %3285 }
0x1d3d   :  { %v3296_v53 = vmul.f32 0.03125, %v3286_v62 }
0x1d3e   :  { %v3289_v32 = vpop.xlane.xlu1 %3288 }
0x1d3f   :  { %v3300_v1 = vsub.f32 %v3278_v51, %v3296_v53  ;;  %v3297_v19 = vmul.f32 0.03125, %v3289_v32  ;;  %v3352_v51 = vld [vmem:[%s5162_s3] sm:$0xf] }
0x1d40   :  { %v3292_v2 = vpop.xlane.xlu0 %3291 }
0x1d41   :  { %v3301_v56 = vsub.f32 %v3279_v13, %v3297_v19  ;;  %v3298_v3 = vmul.f32 0.03125, %v3292_v2  ;;  %v3304_v30 = vmul.f32 %v3300_v1, %v3300_v1 }
0x1d42   :  { %v3295_v57 = vpop.xlane.xlu1 %3294 }
0x1d43   :  { %v3302_v4 = vsub.f32 %v3280_v16, %v3298_v3  ;;  %v3299_v58 = vmul.f32 0.03125, %v3295_v57  ;;  %v3308_v5 = vsel %vm77_vm0, %v3304_v30, 0.0  ;;  %v3305_v8 = vmul.f32 %v3301_v56, %v3301_v56 }
0x1d44   :  { %3309 = vadd.xlane.f32.xlu0 %v3308_v5 }
0x1d45   :  { %v3303_v63 = vsub.f32 %v3281_v54, %v3299_v58  ;;  %v3311_v11 = vsel %vm77_vm0, %v3305_v8, 0.0  ;;  %v3306_v17 = vmul.f32 %v3302_v4, %v3302_v4 }
0x1d46   :  { %3312 = vadd.xlane.f32.xlu1 %v3311_v11 }
0x1d47   :  { %v3314_v61 = vsel %vm77_vm0, %v3306_v17, 0.0  ;;  %v3307_v14 = vmul.f32 %v3303_v63, %v3303_v63 }
0x1d48   :  { %3315 = vadd.xlane.f32.xlu0 %v3314_v61 }
0x1d49   :  { %v3317_v33 = vsel %vm77_vm0, %v3307_v14, 0.0 }
0x1d4a   :  { %3318 = vadd.xlane.f32.xlu1 %v3317_v33 }
0x1dd1   :  { %v3310_v6 = vpop.xlane.xlu0 %3309 }
0x1dd2   :  { %v3320_v18 = vmul.f32 0.03125, %v3310_v6 }
0x1dd3   :  { %v3313_v47 = vpop.xlane.xlu1 %3312 }
0x1dd4   :  { %v3324_v21 = vadd.f32 1e-05, %v3320_v18  ;;  %v3321_v22 = vmul.f32 0.03125, %v3313_v47 }
0x1dd5   :  { %v3316_v23 = vpop.xlane.xlu0 %3315 }
0x1dd6   :  { %4301 = vrsqrt.f32 %v3324_v21  ;;  %v3325_v50 = vadd.f32 1e-05, %v3321_v22  ;;  %v3322_v9 = vmul.f32 0.03125, %v3316_v23 }
0x1dd7   :  { %v3319_v37 = vpop.xlane.xlu1 %3318 }
0x1dd8   :  { %4303 = vrsqrt.f32 %v3325_v50  ;;  %v3326_v7 = vadd.f32 1e-05, %v3322_v9  ;;  %v3323_v25 = vmul.f32 0.03125, %v3319_v37 }
0x1dda   :  { %4305 = vrsqrt.f32 %v3326_v7  ;;  %v3327_v27 = vadd.f32 1e-05, %v3323_v25 }
0x1ddc   :  { %4307 = vrsqrt.f32 %v3327_v27 }
0x1de0   :  { %v4302_v55 = vpop.eup %4301 }
0x1de1   :  { %v3332_v29 = vmul.f32 %v4302_v55, %v3300_v1 }
0x1de2   :  { %v4304_v26 = vpop.eup %4303 }
0x1de3   :  { %v3333_v41 = vmul.f32 %v4304_v26, %v3301_v56  ;;  %v3340_v31 = vmul.f32 %v3577_v24, %v3332_v29 }
0x1de4   :  { %v4306_v45 = vpop.eup %4305 }
0x1de5   :  { %v3334_v43 = vmul.f32 %v4306_v45, %v3302_v4  ;;  %v3341_v28 = vmul.f32 %v3577_v24, %v3333_v41  ;;  %v3348_v20 = vadd.f32 %v3578_v60, %v3340_v31 }
0x1de6   :  { %v4308_v38 = vpop.eup %4307 }
0x1de7   :  { %v3335_v34 = vmul.f32 %v4308_v38, %v3303_v63  ;;  %v3349_v42 = vadd.f32 %v3578_v60, %v3341_v28  ;;  %v3342_v0 = vmul.f32 %v3577_v24, %v3334_v43 }
0x1de9   :  { %v3999_v48 = vpack.c.bf16 %v3349_v42, %v3348_v20  ;;  %v3343_v44 = vmul.f32 %v3577_v24, %v3335_v34  ;;  %v3350_v12 = vadd.f32 %v3578_v60, %v3342_v0 }
0x1deb   :  { %4000 = vmatpush3.bf16.msra.mxu0 %v3999_v48  ;;  %v3351_v39 = vadd.f32 %v3578_v60, %v3343_v44 }
0x1dec   :  { %4001 = vmatprep.subr.bf16.mxu0 %v4346_v35 }
0x1ded   :  { %v4002_v40 = vpack.c.bf16 %v3351_v39, %v3350_v12 }
0x1def   :  { %4003 = vmatpush3.bf16.msra.mxu0 %v4002_v40 }
0x1df2   :  { %3988 = vmatmul.mubr.msk.f32.vlgmr.msra.gmra.mrb[56].mxu0 %vm77_vm0, %v3352_v51 }
0x1ec5   :  { %v3422_v46 = vpop.f32.mrb[56].mxu0 }
0x1ec6   :  { %3427 = vst.msk [vmem:[#allocation2] sm:$0xf] %vm3426_vm1, %v3422_v46  ;;  %v3989_v10 = vpop.f32.mrb[57].mxu0 }
0x1ec7   :  { %4320 = shalt.err (!%p4317_p4)
}
0x1ec8   :  { %s4321_s3 = scalar_lea.hbm %s5172_s13, 64 }
0x1ec9   :  { %p4322_p5 = scmp.ne.s32.totalorder %s5172_s13, %s4321_s3  ;;  %p4325_p6 = scmp.lt.u32.totalorder %s4321_s3, %s5172_s13 }
0x1ecb   :  { %p4327_p7 = pnand %p4325_p6, %p4322_p5 }
0x1ecd   :  { %4330 = shalt.err (!%p4327_p7)
}
0x1ece   :  { %3437 = dma.vmem_to_hbm [thread:$0]  %s3435_s15, 64, %s5172_s13, [#allocation3]  }
0x1ecf   :  { %4331 = dma.done.wait [#allocation3], 64  }
0x1ed0   :  { %4332 = vsyncadd [#allocation3], 4294967232 }
0x1ed1   :  { %3441 = vsyncpa [#allocation3], 1 }

</bundles_post_ra>
